<compile_context>
chip_gen: v5e
topology: v5e:2x2
jax: 0.10.0
libtpu: 0.0.40
codegen_flags: <defaults>
</compile_context>

<pallas_src>
import math
from functools import partial

import jax
import jax.numpy as jnp
from jax import lax
from jax.experimental import pallas as pl
from jax.experimental.pallas import tpu as pltpu

# ---------------- configuration (small, module-consistent shapes) ----------------
B = 2
IN_CH = 16          # in_channel
INNER = 32          # inner_channel
NODES = 64          # nodes_num (must be 64: FullyConnectGCLayer uses eye(64))
W = H = 16
N = W * H
DIAG_CH = 128       # FullyConnectGCLayer.diag_channel


# --------------------------------- kernel ---------------------------------
def _intra_graph_kernel(x_ref,        # (C, nb*n)
                        w_in_ref,     # (INNER, C)
                        b_in_ref,     # (INNER, 1)
                        protoT_ref,   # (NODES, INNER)   (pre-transposed proto)
                        w_adj_ref,    # (DIAG_CH, INNER)
                        b_adj_ref,    # (DIAG_CH, 1)
                        w_diag_ref,   # (DIAG_CH, INNER)
                        b_diag_ref,   # (DIAG_CH, 1)
                        gcn_w_ref,    # (INNER, INNER)
                        w_out_ref,    # (C, INNER)
                        b_out_ref,    # (C, 1)
                        o_ref,        # (C, nb*n)
                        *, nb, n):
    x = x_ref[...]                                                        # (C, nb*n)

    # ---- in_conv (1x1 conv == channel matmul), all nb batch elements at once ----
    x1 = jnp.dot(w_in_ref[...], x,
                 preferred_element_type=jnp.float32) + b_in_ref[...]      # (INNER, nb*n)

    # ---- prototype likelihood + softmax over nodes (axis 0), lane-dense ----
    likT = jnp.dot(protoT_ref[...], x1,
                   preferred_element_type=jnp.float32)                    # (NODES, nb*n)
    likT = likT - jnp.max(likT, axis=0, keepdims=True)
    e = jnp.exp(likT)
    # softmax denominator via EUP reciprocal; prob = e * r is never materialized:
    r = pl.reciprocal(jnp.sum(e, axis=0, keepdims=True), approx=True)     # (1, nb*n)
    # fold the softmax denominator into x1 (16 vregs) instead of into e (32 vregs)
    x1r = x1 * r                                                          # (INNER, nb*n)

    w_adj = w_adj_ref[...]
    b_adj = b_adj_ref[...]
    w_diag = w_diag_ref[...]
    b_diag = b_diag_ref[...]
    gcn_w = gcn_w_ref[...]
    w_out = w_out_ref[...]
    b_out = b_out_ref[...]

    for bi in range(nb):                       # static loop, nb in {1, 2}
        lo, hi = bi * n, (bi + 1) * n          # 128-aligned lane boundaries
        e_b = e[:, lo:hi]                      # (NODES, n)
        r_b = r[:, lo:hi]                      # (1, n)

        # x2 = x1 @ prob_ ,  prob_ = prob / (1e-6 + sum_spatial prob),  prob = (e*r)^T
        #  -> x2 = ((x1*r) @ e^T) * recip(1e-6 + r @ e^T)   (normalizations folded)
        x2_raw = lax.dot_general(x1r[:, lo:hi], e_b, (((1,), (1,)), ((), ())),
                                 preferred_element_type=jnp.float32)      # (INNER, NODES)
        node_mass = lax.dot_general(r_b, e_b, (((1,), (1,)), ((), ())),
                                    preferred_element_type=jnp.float32)   # (1, NODES)
        x2 = x2_raw * pl.reciprocal(node_mass + 1e-6, approx=True)        # (INNER, NODES)

        # ================= FullyConnectGCLayer =================
        # diagonal branch: avg_pool over nodes commutes with the 1x1 conv (exact):
        #   d = mean_n(w_diag @ x2 + b_diag) = w_diag @ mean_n(x2) + b_diag
        d = jnp.dot(w_diag, jnp.mean(x2, axis=1, keepdims=True),
                    preferred_element_type=jnp.float32) + b_diag          # (DIAG_CH, 1)
        sprime = jax.nn.sigmoid(d) - 0.5                                  # (DIAG_CH, 1)

        xa = jnp.dot(w_adj, x2,
                     preferred_element_type=jnp.float32) + b_adj          # (DIAG_CH, NODES)
        # sigmoid(diag(d)) = 0.5*J + diag(sigmoid(d)-0.5)  (exact), so
        # adj = xa^T @ (xa*sprime + 0.5*colsum(xa))  -- one matmul, no 128x128 temp
        col = jnp.sum(xa, axis=0, keepdims=True)                          # (1, NODES)
        adj = lax.dot_general(xa, xa * sprime + 0.5 * col,
                              (((0,), (0,)), ((), ())),
                              preferred_element_type=jnp.float32)         # (NODES, NODES)
        an = jnp.maximum(adj, 0.0)

        # _normalize with the +I folded in (eye(64) never materialized):
        #   x2 @ D^-1/2 (an + I) D^-1/2 = x2 @ (an * dr * dc) + x2 * dc^2
        # (adj is symmetric, so row/col sums agree up to f32 rounding)
        dr = lax.rsqrt(jnp.sum(an, axis=1, keepdims=True) + 1.0)          # (NODES, 1)
        dc = lax.rsqrt(jnp.sum(an, axis=0, keepdims=True) + 1.0)          # (1, NODES)
        h = jnp.dot(x2, an * dr * dc,
                    preferred_element_type=jnp.float32) + x2 * (dc * dc)  # (INNER, NODES)
        gcn = jnp.dot(gcn_w, h, preferred_element_type=jnp.float32)       # (INNER, NODES)
        x2o = jnp.maximum(gcn, 0.0) + x2
        # ========================================================

        # ---- write-back, reassociated:  out = ((w_out @ x2o) @ e_b) * r_b ----
        out_pre = jnp.dot(w_out, x2o, preferred_element_type=jnp.float32)  # (C, NODES)
        out_sp = jnp.dot(out_pre, e_b,
                         preferred_element_type=jnp.float32) * r_b         # (C, n)
        o_ref[:, lo:hi] = (out_sp + b_out + x[:, lo:hi]).astype(o_ref.dtype)


# --------------------------------- wrapper ---------------------------------
def _default_batch_per_step(batch):
    # Multi-TensorCore chips (v4 / v5p / v7x): keep one batch element per grid
    # step so the "parallel" batch axis is sharded across TensorCores.
    # Single-TC chips (v5e / v6e): fold the whole batch into one grid step --
    # the kernel is latency bound and each extra grid step costs ~0.35 us.
    try:
        kind = jax.devices()[0].device_kind.lower()
    except Exception:
        return batch
    multi_tc = any(t in kind for t in ("v7", "v5p", "v4")) and "lite" not in kind
    return 1 if (multi_tc and batch > 1) else batch


def intra_graph_pallas(x, params, batch_per_step=None):
    (w_in, b_in, proto, w_adj, b_adj, w_diag, b_diag, gcn_w, w_out, b_out) = params
    b, c, w, h = x.shape
    n = w * h
    nb = _default_batch_per_step(b) if batch_per_step is None else batch_per_step
    assert b % nb == 0 and nb >= 1
    num_steps = b // nb

    # channels-first with the batch folded into the (lane-dense) spatial axis
    x_fold = jnp.transpose(x.reshape(b, c, n), (1, 0, 2)).reshape(c, b * n)
    protoT = proto.T                                         # (NODES, INNER)

    def const_spec(arr):
        nd = arr.ndim
        return pl.BlockSpec(arr.shape, lambda i, _nd=nd: (0,) * _nd)

    kernel = partial(_intra_graph_kernel, nb=nb, n=n)

    out_fold = pl.pallas_call(
        kernel,
        out_shape=jax.ShapeDtypeStruct((c, b * n), jnp.float32),
        grid_spec=pltpu.PrefetchScalarGridSpec(
            num_scalar_prefetch=0,
            grid=(num_steps,),
            in_specs=[
                pl.BlockSpec((c, nb * n), lambda i: (0, i)),
                const_spec(w_in), const_spec(b_in), const_spec(protoT),
                const_spec(w_adj), const_spec(b_adj),
                const_spec(w_diag), const_spec(b_diag),
                const_spec(gcn_w), const_spec(w_out), const_spec(b_out),
            ],
            out_specs=pl.BlockSpec((c, nb * n), lambda i: (0, i)),
        ),
        compiler_params=pltpu.CompilerParams(dimension_semantics=("parallel",)),
    )(x_fold, w_in, b_in, protoT, w_adj, b_adj, w_diag, b_diag, gcn_w, w_out, b_out)

    return jnp.transpose(out_fold.reshape(c, b, n), (1, 0, 2)).reshape(b, c, w, h)


# ----------------------------- pure-JAX reference -----------------------------
# Faithful to the PyTorch module (dense diag_sig, explicit eye(64), separate convs,
# exact divides, un-reassociated matmuls) so it independently validates every
# algebraic rewrite used inside the kernel.
def intra_graph_reference(x, params):
    (w_in, b_in, proto, w_adj, b_adj, w_diag, b_diag, gcn_w, w_out, b_out) = params
    b, c, w, h = x.shape
    n = w * h
    xf = x.reshape(b, c, n)

    def one(xi):
        x1 = w_in @ xi + b_in
        lik = x1.T @ proto
        lik = lik - jnp.max(lik, axis=-1, keepdims=True)
        e = jnp.exp(lik)
        prob = e / jnp.sum(e, axis=-1, keepdims=True)
        prob_ = prob / (1e-6 + jnp.sum(prob, axis=0, keepdims=True))
        x2 = x1 @ prob_
        xd = w_diag @ x2 + b_diag
        d = jnp.mean(xd, axis=-1)
        diag_sig = jax.nn.sigmoid(jnp.diag(d))
        xa = w_adj @ x2 + b_adj
        adj = xa.T @ diag_sig @ xa
        adj_hat = jnp.maximum(adj, 0.0) + jnp.eye(NODES, dtype=jnp.float32)
        deg = lax.rsqrt(jnp.sum(adj_hat, axis=1, keepdims=True))
        adj_norm = adj_hat * deg * deg.T
        x2o = jnp.maximum(gcn_w @ (x2 @ adj_norm), 0.0) + x2
        x3 = x2o @ prob.T
        return w_out @ x3 + b_out + xi

    return jax.vmap(one)(xf).reshape(b, c, w, h)


# --------------------------------- main ---------------------------------
if __name__ == "__main__":
    key = jax.random.PRNGKey(0)
    keys = jax.random.split(key, 12)

    # deterministic synthetic parameter init (shapes from the module __init__)
    proto = jax.random.normal(keys[0], (INNER, NODES), jnp.float32) * math.sqrt(2.0 / NODES)
    w_in = jax.random.normal(keys[1], (INNER, IN_CH), jnp.float32) * 0.05
    b_in = jax.random.normal(keys[2], (INNER, 1), jnp.float32) * 0.05
    w_adj = jax.random.normal(keys[3], (DIAG_CH, INNER), jnp.float32) * 0.05
    b_adj = jax.random.normal(keys[4], (DIAG_CH, 1), jnp.float32) * 0.05
    w_diag = jax.random.normal(keys[5], (DIAG_CH, INNER), jnp.float32) * 0.05
    b_diag = jax.random.normal(keys[6], (DIAG_CH, 1), jnp.float32) * 0.05
    gcn_w = jax.random.normal(keys[7], (INNER, INNER), jnp.float32) * 0.01   # normal_(0, 0.01)
    w_out = jax.random.normal(keys[8], (IN_CH, INNER), jnp.float32) * 0.05
    b_out = jax.random.normal(keys[9], (IN_CH, 1), jnp.float32) * 0.05
    params = (w_in, b_in, proto, w_adj, b_adj, w_diag, b_diag, gcn_w, w_out, b_out)

    x = jax.random.normal(keys[10], (B, IN_CH, W, H), jnp.float32)

    out = jax.block_until_ready(jax.jit(intra_graph_pallas)(x, params))
    ref = jax.block_until_ready(intra_graph_reference(x, params))

    assert out.shape == (B, IN_CH, W, H)
    assert jnp.allclose(out, ref, atol=1e-3, rtol=1e-3), "mismatch vs pure-JAX reference"

    print("KERNEL_OK")
</pallas_src>

<mosaic_0001>
module attributes {stable_mosaic.version = 11 : i64} {
  func.func @_intra_graph_kernel(%arg0: i32, %arg1: memref<16x512xf32, #tpu.memory_space<vmem>>, %arg2: memref<32x16xf32, #tpu.memory_space<vmem>>, %arg3: memref<32x1xf32, #tpu.memory_space<vmem>>, %arg4: memref<64x32xf32, #tpu.memory_space<vmem>>, %arg5: memref<128x32xf32, #tpu.memory_space<vmem>>, %arg6: memref<128x1xf32, #tpu.memory_space<vmem>>, %arg7: memref<128x32xf32, #tpu.memory_space<vmem>>, %arg8: memref<128x1xf32, #tpu.memory_space<vmem>>, %arg9: memref<32x32xf32, #tpu.memory_space<vmem>>, %arg10: memref<16x32xf32, #tpu.memory_space<vmem>>, %arg11: memref<16x1xf32, #tpu.memory_space<vmem>>, %arg12: memref<16x512xf32, #tpu.memory_space<vmem>>) attributes {dimension_semantics = [#tpu.dimension_semantics<parallel>], iteration_bounds = array<i64: 1>, scalar_prefetch = 0 : i64, scratch_operands = 0 : i64, tpu.core_type = #tpu.core_type<tc>, window_params = [{transform_indices = @transform_0, window_bounds = array<i64: 16, 512>}, {pipeline_mode = #tpu.pipeline_mode<synchronous>, transform_indices = @transform_1, window_bounds = array<i64: 32, 16>}, {pipeline_mode = #tpu.pipeline_mode<synchronous>, transform_indices = @transform_2, window_bounds = array<i64: 32, 1>}, {pipeline_mode = #tpu.pipeline_mode<synchronous>, transform_indices = @transform_3, window_bounds = array<i64: 64, 32>}, {pipeline_mode = #tpu.pipeline_mode<synchronous>, transform_indices = @transform_4, window_bounds = array<i64: 128, 32>}, {pipeline_mode = #tpu.pipeline_mode<synchronous>, transform_indices = @transform_5, window_bounds = array<i64: 128, 1>}, {pipeline_mode = #tpu.pipeline_mode<synchronous>, transform_indices = @transform_6, window_bounds = array<i64: 128, 32>}, {pipeline_mode = #tpu.pipeline_mode<synchronous>, transform_indices = @transform_7, window_bounds = array<i64: 128, 1>}, {pipeline_mode = #tpu.pipeline_mode<synchronous>, transform_indices = @transform_8, window_bounds = array<i64: 32, 32>}, {pipeline_mode = #tpu.pipeline_mode<synchronous>, transform_indices = @transform_9, window_bounds = array<i64: 16, 32>}, {pipeline_mode = #tpu.pipeline_mode<synchronous>, transform_indices = @transform_10, window_bounds = array<i64: 16, 1>}, {transform_indices = @transform_11, window_bounds = array<i64: 16, 512>}]} {
    %c0 = arith.constant 0 : index
    %c0_0 = arith.constant 0 : index
    %0 = vector.load %arg1[%c0, %c0_0] : memref<16x512xf32, #tpu.memory_space<vmem>>, vector<16x512xf32>
    %c0_1 = arith.constant 0 : index
    %c0_2 = arith.constant 0 : index
    %1 = vector.load %arg2[%c0_1, %c0_2] : memref<32x16xf32, #tpu.memory_space<vmem>>, vector<32x16xf32>
    %cst = arith.constant dense<0.000000e+00> : vector<32x512xf32>
    %2 = tpu.matmul %1, %0, %cst {dimension_numbers = #tpu.dot_dimension_numbers<[1], [0], [0], [1], [0, 0, 1, 1], [], []>} : vector<32x16xf32>, vector<16x512xf32>, vector<32x512xf32> -> vector<32x512xf32>
    %c0_3 = arith.constant 0 : index
    %c0_4 = arith.constant 0 : index
    %3 = vector.load %arg3[%c0_3, %c0_4] : memref<32x1xf32, #tpu.memory_space<vmem>>, vector<32x1xf32>
    %4 = vector.broadcast %3 : vector<32x1xf32> to vector<32x512xf32>
    %5 = arith.addf %2, %4 : vector<32x512xf32>
    %c0_5 = arith.constant 0 : index
    %c0_6 = arith.constant 0 : index
    %6 = vector.load %arg4[%c0_5, %c0_6] : memref<64x32xf32, #tpu.memory_space<vmem>>, vector<64x32xf32>
    %cst_7 = arith.constant dense<0.000000e+00> : vector<64x512xf32>
    %7 = tpu.matmul %6, %5, %cst_7 {dimension_numbers = #tpu.dot_dimension_numbers<[1], [0], [0], [1], [0, 0, 1, 1], [], []>} : vector<64x32xf32>, vector<32x512xf32>, vector<64x512xf32> -> vector<64x512xf32>
    %cst_8 = arith.constant dense<0xFF800000> : vector<512xf32>
    %8 = vector.multi_reduction <maximumf>, %7, %cst_8 [0] : vector<64x512xf32> to vector<512xf32>
    %9 = vector.shape_cast %8 : vector<512xf32> to vector<1x512xf32>
    %10 = vector.broadcast %9 : vector<1x512xf32> to vector<64x512xf32>
    %11 = arith.subf %7, %10 : vector<64x512xf32>
    %12 = math.exp %11 : vector<64x512xf32>
    %cst_9 = arith.constant dense<0.000000e+00> : vector<512xf32>
    %13 = vector.multi_reduction <add>, %12, %cst_9 [0] : vector<64x512xf32> to vector<512xf32>
    %14 = vector.shape_cast %13 : vector<512xf32> to vector<1x512xf32>
    %15 = tpu.reciprocal %14 {approx = true} : vector<1x512xf32> -> vector<1x512xf32>
    %16 = vector.broadcast %15 : vector<1x512xf32> to vector<32x512xf32>
    %17 = arith.mulf %5, %16 : vector<32x512xf32>
    %c0_10 = arith.constant 0 : index
    %c0_11 = arith.constant 0 : index
    %18 = vector.load %arg5[%c0_10, %c0_11] : memref<128x32xf32, #tpu.memory_space<vmem>>, vector<128x32xf32>
    %c0_12 = arith.constant 0 : index
    %c0_13 = arith.constant 0 : index
    %19 = vector.load %arg6[%c0_12, %c0_13] : memref<128x1xf32, #tpu.memory_space<vmem>>, vector<128x1xf32>
    %c0_14 = arith.constant 0 : index
    %c0_15 = arith.constant 0 : index
    %20 = vector.load %arg7[%c0_14, %c0_15] : memref<128x32xf32, #tpu.memory_space<vmem>>, vector<128x32xf32>
    %c0_16 = arith.constant 0 : index
    %c0_17 = arith.constant 0 : index
    %21 = vector.load %arg8[%c0_16, %c0_17] : memref<128x1xf32, #tpu.memory_space<vmem>>, vector<128x1xf32>
    %c0_18 = arith.constant 0 : index
    %c0_19 = arith.constant 0 : index
    %22 = vector.load %arg9[%c0_18, %c0_19] : memref<32x32xf32, #tpu.memory_space<vmem>>, vector<32x32xf32>
    %c0_20 = arith.constant 0 : index
    %c0_21 = arith.constant 0 : index
    %23 = vector.load %arg10[%c0_20, %c0_21] : memref<16x32xf32, #tpu.memory_space<vmem>>, vector<16x32xf32>
    %c0_22 = arith.constant 0 : index
    %c0_23 = arith.constant 0 : index
    %24 = vector.load %arg11[%c0_22, %c0_23] : memref<16x1xf32, #tpu.memory_space<vmem>>, vector<16x1xf32>
    %25 = vector.extract_strided_slice %12 {offsets = [0, 0], sizes = [64, 256], strides = [1, 1]} : vector<64x512xf32> to vector<64x256xf32>
    %26 = vector.extract_strided_slice %15 {offsets = [0, 0], sizes = [1, 256], strides = [1, 1]} : vector<1x512xf32> to vector<1x256xf32>
    %27 = vector.extract_strided_slice %17 {offsets = [0, 0], sizes = [32, 256], strides = [1, 1]} : vector<32x512xf32> to vector<32x256xf32>
    %cst_24 = arith.constant dense<0.000000e+00> : vector<32x64xf32>
    %28 = tpu.matmul %27, %25, %cst_24 {dimension_numbers = #tpu.dot_dimension_numbers<[1], [1], [0], [0], [0, 0, 1, 0], [], []>} : vector<32x256xf32>, vector<64x256xf32>, vector<32x64xf32> -> vector<32x64xf32>
    %cst_25 = arith.constant dense<0.000000e+00> : vector<1x64xf32>
    %29 = tpu.matmul %26, %25, %cst_25 {dimension_numbers = #tpu.dot_dimension_numbers<[1], [1], [0], [0], [0, 0, 1, 0], [], []>} : vector<1x256xf32>, vector<64x256xf32>, vector<1x64xf32> -> vector<1x64xf32>
    %cst_26 = arith.constant 9.99999997E-7 : f32
    %30 = vector.broadcast %cst_26 : f32 to vector<1x64xf32>
    %31 = arith.addf %29, %30 : vector<1x64xf32>
    %32 = tpu.reciprocal %31 {approx = true} : vector<1x64xf32> -> vector<1x64xf32>
    %33 = vector.broadcast %32 : vector<1x64xf32> to vector<32x64xf32>
    %34 = arith.mulf %28, %33 : vector<32x64xf32>
    %cst_27 = arith.constant dense<0.000000e+00> : vector<32xf32>
    %35 = vector.multi_reduction <add>, %34, %cst_27 [1] : vector<32x64xf32> to vector<32xf32>
    %36 = vector.shape_cast %35 : vector<32xf32> to vector<32x1xf32>
    %cst_28 = arith.constant 6.400000e+01 : f32
    %37 = vector.broadcast %cst_28 : f32 to vector<32x1xf32>
    %38 = arith.divf %36, %37 : vector<32x1xf32>
    %cst_29 = arith.constant dense<0.000000e+00> : vector<128x1xf32>
    %39 = tpu.matmul %20, %38, %cst_29 {dimension_numbers = #tpu.dot_dimension_numbers<[1], [0], [0], [1], [0, 0, 1, 1], [], []>} : vector<128x32xf32>, vector<32x1xf32>, vector<128x1xf32> -> vector<128x1xf32>
    %40 = arith.addf %39, %21 : vector<128x1xf32>
    %41 = arith.negf %40 : vector<128x1xf32>
    %42 = math.exp %41 : vector<128x1xf32>
    %cst_30 = arith.constant 1.000000e+00 : f32
    %43 = vector.broadcast %cst_30 : f32 to vector<128x1xf32>
    %44 = arith.addf %43, %42 : vector<128x1xf32>
    %45 = arith.divf %43, %44 : vector<128x1xf32>
    %cst_31 = arith.constant 5.000000e-01 : f32
    %46 = vector.broadcast %cst_31 : f32 to vector<128x1xf32>
    %47 = arith.subf %45, %46 : vector<128x1xf32>
    %cst_32 = arith.constant dense<0.000000e+00> : vector<128x64xf32>
    %48 = tpu.matmul %18, %34, %cst_32 {dimension_numbers = #tpu.dot_dimension_numbers<[1], [0], [0], [1], [0, 0, 1, 1], [], []>} : vector<128x32xf32>, vector<32x64xf32>, vector<128x64xf32> -> vector<128x64xf32>
    %49 = vector.broadcast %19 : vector<128x1xf32> to vector<128x64xf32>
    %50 = arith.addf %48, %49 : vector<128x64xf32>
    %cst_33 = arith.constant dense<0.000000e+00> : vector<64xf32>
    %51 = vector.multi_reduction <add>, %50, %cst_33 [0] : vector<128x64xf32> to vector<64xf32>
    %52 = vector.shape_cast %51 : vector<64xf32> to vector<1x64xf32>
    %53 = vector.broadcast %47 : vector<128x1xf32> to vector<128x64xf32>
    %54 = arith.mulf %50, %53 : vector<128x64xf32>
    %cst_34 = arith.constant 5.000000e-01 : f32
    %55 = vector.broadcast %cst_34 : f32 to vector<1x64xf32>
    %56 = arith.mulf %55, %52 : vector<1x64xf32>
    %57 = vector.broadcast %56 : vector<1x64xf32> to vector<128x64xf32>
    %58 = arith.addf %54, %57 : vector<128x64xf32>
    %cst_35 = arith.constant dense<0.000000e+00> : vector<64x64xf32>
    %59 = tpu.matmul %50, %58, %cst_35 {dimension_numbers = #tpu.dot_dimension_numbers<[0], [0], [1], [1], [0, 1, 1, 1], [], []>} : vector<128x64xf32>, vector<128x64xf32>, vector<64x64xf32> -> vector<64x64xf32>
    %cst_36 = arith.constant 0.000000e+00 : f32
    %60 = vector.broadcast %cst_36 : f32 to vector<64x64xf32>
    %61 = arith.maximumf %59, %60 : vector<64x64xf32>
    %cst_37 = arith.constant dense<0.000000e+00> : vector<64xf32>
    %62 = vector.multi_reduction <add>, %61, %cst_37 [1] : vector<64x64xf32> to vector<64xf32>
    %63 = vector.shape_cast %62 : vector<64xf32> to vector<64x1xf32>
    %cst_38 = arith.constant 1.000000e+00 : f32
    %64 = vector.broadcast %cst_38 : f32 to vector<64x1xf32>
    %65 = arith.addf %63, %64 : vector<64x1xf32>
    %66 = math.rsqrt %65 : vector<64x1xf32>
    %cst_39 = arith.constant dense<0.000000e+00> : vector<64xf32>
    %67 = vector.multi_reduction <add>, %61, %cst_39 [0] : vector<64x64xf32> to vector<64xf32>
    %68 = vector.shape_cast %67 : vector<64xf32> to vector<1x64xf32>
    %cst_40 = arith.constant 1.000000e+00 : f32
    %69 = vector.broadcast %cst_40 : f32 to vector<1x64xf32>
    %70 = arith.addf %68, %69 : vector<1x64xf32>
    %71 = math.rsqrt %70 : vector<1x64xf32>
    %72 = vector.broadcast %66 : vector<64x1xf32> to vector<64x64xf32>
    %73 = arith.mulf %61, %72 : vector<64x64xf32>
    %74 = vector.broadcast %71 : vector<1x64xf32> to vector<64x64xf32>
    %75 = arith.mulf %73, %74 : vector<64x64xf32>
    %cst_41 = arith.constant dense<0.000000e+00> : vector<32x64xf32>
    %76 = tpu.matmul %34, %75, %cst_41 {dimension_numbers = #tpu.dot_dimension_numbers<[1], [0], [0], [1], [0, 0, 1, 1], [], []>} : vector<32x64xf32>, vector<64x64xf32>, vector<32x64xf32> -> vector<32x64xf32>
    %77 = arith.mulf %71, %71 : vector<1x64xf32>
    %78 = vector.broadcast %77 : vector<1x64xf32> to vector<32x64xf32>
    %79 = arith.mulf %34, %78 : vector<32x64xf32>
    %80 = arith.addf %76, %79 : vector<32x64xf32>
    %cst_42 = arith.constant dense<0.000000e+00> : vector<32x64xf32>
    %81 = tpu.matmul %22, %80, %cst_42 {dimension_numbers = #tpu.dot_dimension_numbers<[1], [0], [0], [1], [0, 0, 1, 1], [], []>} : vector<32x32xf32>, vector<32x64xf32>, vector<32x64xf32> -> vector<32x64xf32>
    %cst_43 = arith.constant 0.000000e+00 : f32
    %82 = vector.broadcast %cst_43 : f32 to vector<32x64xf32>
    %83 = arith.maximumf %81, %82 : vector<32x64xf32>
    %84 = arith.addf %83, %34 : vector<32x64xf32>
    %cst_44 = arith.constant dense<0.000000e+00> : vector<16x64xf32>
    %85 = tpu.matmul %23, %84, %cst_44 {dimension_numbers = #tpu.dot_dimension_numbers<[1], [0], [0], [1], [0, 0, 1, 1], [], []>} : vector<16x32xf32>, vector<32x64xf32>, vector<16x64xf32> -> vector<16x64xf32>
    %cst_45 = arith.constant dense<0.000000e+00> : vector<16x256xf32>
    %86 = tpu.matmul %85, %25, %cst_45 {dimension_numbers = #tpu.dot_dimension_numbers<[1], [0], [0], [1], [0, 0, 1, 1], [], []>} : vector<16x64xf32>, vector<64x256xf32>, vector<16x256xf32> -> vector<16x256xf32>
    %87 = vector.broadcast %26 : vector<1x256xf32> to vector<16x256xf32>
    %88 = arith.mulf %86, %87 : vector<16x256xf32>
    %89 = vector.broadcast %24 : vector<16x1xf32> to vector<16x256xf32>
    %90 = arith.addf %88, %89 : vector<16x256xf32>
    %91 = vector.extract_strided_slice %0 {offsets = [0, 0], sizes = [16, 256], strides = [1, 1]} : vector<16x512xf32> to vector<16x256xf32>
    %92 = arith.addf %90, %91 : vector<16x256xf32>
    %c0_46 = arith.constant 0 : index
    %c0_47 = arith.constant 0 : index
    %93 = vector.load %arg12[%c0_46, %c0_47] : memref<16x512xf32, #tpu.memory_space<vmem>>, vector<16x256xf32>
    tpu.vector_store %arg12[%c0_46, %c0_47], %92 {strides = array<i32>} : memref<16x512xf32, #tpu.memory_space<vmem>>, vector<16x256xf32>,
    %94 = vector.extract_strided_slice %12 {offsets = [0, 256], sizes = [64, 256], strides = [1, 1]} : vector<64x512xf32> to vector<64x256xf32>
    %95 = vector.extract_strided_slice %15 {offsets = [0, 256], sizes = [1, 256], strides = [1, 1]} : vector<1x512xf32> to vector<1x256xf32>
    %96 = vector.extract_strided_slice %17 {offsets = [0, 256], sizes = [32, 256], strides = [1, 1]} : vector<32x512xf32> to vector<32x256xf32>
    %cst_48 = arith.constant dense<0.000000e+00> : vector<32x64xf32>
    %97 = tpu.matmul %96, %94, %cst_48 {dimension_numbers = #tpu.dot_dimension_numbers<[1], [1], [0], [0], [0, 0, 1, 0], [], []>} : vector<32x256xf32>, vector<64x256xf32>, vector<32x64xf32> -> vector<32x64xf32>
    %cst_49 = arith.constant dense<0.000000e+00> : vector<1x64xf32>
    %98 = tpu.matmul %95, %94, %cst_49 {dimension_numbers = #tpu.dot_dimension_numbers<[1], [1], [0], [0], [0, 0, 1, 0], [], []>} : vector<1x256xf32>, vector<64x256xf32>, vector<1x64xf32> -> vector<1x64xf32>
    %cst_50 = arith.constant 9.99999997E-7 : f32
    %99 = vector.broadcast %cst_50 : f32 to vector<1x64xf32>
    %100 = arith.addf %98, %99 : vector<1x64xf32>
    %101 = tpu.reciprocal %100 {approx = true} : vector<1x64xf32> -> vector<1x64xf32>
    %102 = vector.broadcast %101 : vector<1x64xf32> to vector<32x64xf32>
    %103 = arith.mulf %97, %102 : vector<32x64xf32>
    %cst_51 = arith.constant dense<0.000000e+00> : vector<32xf32>
    %104 = vector.multi_reduction <add>, %103, %cst_51 [1] : vector<32x64xf32> to vector<32xf32>
    %105 = vector.shape_cast %104 : vector<32xf32> to vector<32x1xf32>
    %cst_52 = arith.constant 6.400000e+01 : f32
    %106 = vector.broadcast %cst_52 : f32 to vector<32x1xf32>
    %107 = arith.divf %105, %106 : vector<32x1xf32>
    %cst_53 = arith.constant dense<0.000000e+00> : vector<128x1xf32>
    %108 = tpu.matmul %20, %107, %cst_53 {dimension_numbers = #tpu.dot_dimension_numbers<[1], [0], [0], [1], [0, 0, 1, 1], [], []>} : vector<128x32xf32>, vector<32x1xf32>, vector<128x1xf32> -> vector<128x1xf32>
    %109 = arith.addf %108, %21 : vector<128x1xf32>
    %110 = arith.negf %109 : vector<128x1xf32>
    %111 = math.exp %110 : vector<128x1xf32>
    %cst_54 = arith.constant 1.000000e+00 : f32
    %112 = vector.broadcast %cst_54 : f32 to vector<128x1xf32>
    %113 = arith.addf %112, %111 : vector<128x1xf32>
    %114 = arith.divf %112, %113 : vector<128x1xf32>
    %cst_55 = arith.constant 5.000000e-01 : f32
    %115 = vector.broadcast %cst_55 : f32 to vector<128x1xf32>
    %116 = arith.subf %114, %115 : vector<128x1xf32>
    %cst_56 = arith.constant dense<0.000000e+00> : vector<128x64xf32>
    %117 = tpu.matmul %18, %103, %cst_56 {dimension_numbers = #tpu.dot_dimension_numbers<[1], [0], [0], [1], [0, 0, 1, 1], [], []>} : vector<128x32xf32>, vector<32x64xf32>, vector<128x64xf32> -> vector<128x64xf32>
    %118 = vector.broadcast %19 : vector<128x1xf32> to vector<128x64xf32>
    %119 = arith.addf %117, %118 : vector<128x64xf32>
    %cst_57 = arith.constant dense<0.000000e+00> : vector<64xf32>
    %120 = vector.multi_reduction <add>, %119, %cst_57 [0] : vector<128x64xf32> to vector<64xf32>
    %121 = vector.shape_cast %120 : vector<64xf32> to vector<1x64xf32>
    %122 = vector.broadcast %116 : vector<128x1xf32> to vector<128x64xf32>
    %123 = arith.mulf %119, %122 : vector<128x64xf32>
    %cst_58 = arith.constant 5.000000e-01 : f32
    %124 = vector.broadcast %cst_58 : f32 to vector<1x64xf32>
    %125 = arith.mulf %124, %121 : vector<1x64xf32>
    %126 = vector.broadcast %125 : vector<1x64xf32> to vector<128x64xf32>
    %127 = arith.addf %123, %126 : vector<128x64xf32>
    %cst_59 = arith.constant dense<0.000000e+00> : vector<64x64xf32>
    %128 = tpu.matmul %119, %127, %cst_59 {dimension_numbers = #tpu.dot_dimension_numbers<[0], [0], [1], [1], [0, 1, 1, 1], [], []>} : vector<128x64xf32>, vector<128x64xf32>, vector<64x64xf32> -> vector<64x64xf32>
    %cst_60 = arith.constant 0.000000e+00 : f32
    %129 = vector.broadcast %cst_60 : f32 to vector<64x64xf32>
    %130 = arith.maximumf %128, %129 : vector<64x64xf32>
    %cst_61 = arith.constant dense<0.000000e+00> : vector<64xf32>
    %131 = vector.multi_reduction <add>, %130, %cst_61 [1] : vector<64x64xf32> to vector<64xf32>
    %132 = vector.shape_cast %131 : vector<64xf32> to vector<64x1xf32>
    %cst_62 = arith.constant 1.000000e+00 : f32
    %133 = vector.broadcast %cst_62 : f32 to vector<64x1xf32>
    %134 = arith.addf %132, %133 : vector<64x1xf32>
    %135 = math.rsqrt %134 : vector<64x1xf32>
    %cst_63 = arith.constant dense<0.000000e+00> : vector<64xf32>
    %136 = vector.multi_reduction <add>, %130, %cst_63 [0] : vector<64x64xf32> to vector<64xf32>
    %137 = vector.shape_cast %136 : vector<64xf32> to vector<1x64xf32>
    %cst_64 = arith.constant 1.000000e+00 : f32
    %138 = vector.broadcast %cst_64 : f32 to vector<1x64xf32>
    %139 = arith.addf %137, %138 : vector<1x64xf32>
    %140 = math.rsqrt %139 : vector<1x64xf32>
    %141 = vector.broadcast %135 : vector<64x1xf32> to vector<64x64xf32>
    %142 = arith.mulf %130, %141 : vector<64x64xf32>
    %143 = vector.broadcast %140 : vector<1x64xf32> to vector<64x64xf32>
    %144 = arith.mulf %142, %143 : vector<64x64xf32>
    %cst_65 = arith.constant dense<0.000000e+00> : vector<32x64xf32>
    %145 = tpu.matmul %103, %144, %cst_65 {dimension_numbers = #tpu.dot_dimension_numbers<[1], [0], [0], [1], [0, 0, 1, 1], [], []>} : vector<32x64xf32>, vector<64x64xf32>, vector<32x64xf32> -> vector<32x64xf32>
    %146 = arith.mulf %140, %140 : vector<1x64xf32>
    %147 = vector.broadcast %146 : vector<1x64xf32> to vector<32x64xf32>
    %148 = arith.mulf %103, %147 : vector<32x64xf32>
    %149 = arith.addf %145, %148 : vector<32x64xf32>
    %cst_66 = arith.constant dense<0.000000e+00> : vector<32x64xf32>
    %150 = tpu.matmul %22, %149, %cst_66 {dimension_numbers = #tpu.dot_dimension_numbers<[1], [0], [0], [1], [0, 0, 1, 1], [], []>} : vector<32x32xf32>, vector<32x64xf32>, vector<32x64xf32> -> vector<32x64xf32>
    %cst_67 = arith.constant 0.000000e+00 : f32
    %151 = vector.broadcast %cst_67 : f32 to vector<32x64xf32>
    %152 = arith.maximumf %150, %151 : vector<32x64xf32>
    %153 = arith.addf %152, %103 : vector<32x64xf32>
    %cst_68 = arith.constant dense<0.000000e+00> : vector<16x64xf32>
    %154 = tpu.matmul %23, %153, %cst_68 {dimension_numbers = #tpu.dot_dimension_numbers<[1], [0], [0], [1], [0, 0, 1, 1], [], []>} : vector<16x32xf32>, vector<32x64xf32>, vector<16x64xf32> -> vector<16x64xf32>
    %cst_69 = arith.constant dense<0.000000e+00> : vector<16x256xf32>
    %155 = tpu.matmul %154, %94, %cst_69 {dimension_numbers = #tpu.dot_dimension_numbers<[1], [0], [0], [1], [0, 0, 1, 1], [], []>} : vector<16x64xf32>, vector<64x256xf32>, vector<16x256xf32> -> vector<16x256xf32>
    %156 = vector.broadcast %95 : vector<1x256xf32> to vector<16x256xf32>
    %157 = arith.mulf %155, %156 : vector<16x256xf32>
    %158 = vector.broadcast %24 : vector<16x1xf32> to vector<16x256xf32>
    %159 = arith.addf %157, %158 : vector<16x256xf32>
    %160 = vector.extract_strided_slice %0 {offsets = [0, 256], sizes = [16, 256], strides = [1, 1]} : vector<16x512xf32> to vector<16x256xf32>
    %161 = arith.addf %159, %160 : vector<16x256xf32>
    %c0_70 = arith.constant 0 : index
    %c256 = arith.constant 256 : index
    %162 = vector.load %arg12[%c0_70, %c256] : memref<16x512xf32, #tpu.memory_space<vmem>>, vector<16x256xf32>
    tpu.vector_store %arg12[%c0_70, %c256], %161 {strides = array<i32>} : memref<16x512xf32, #tpu.memory_space<vmem>>, vector<16x256xf32>,
    return
  }
  func.func @transform_0(%arg0: i32) -> (i32, i32) {
    %c0_i32 = arith.constant 0 : i32
    %c0_i32_0 = arith.constant 0 : i32
    return %c0_i32, %arg0 : i32, i32
  }
  func.func @transform_1(%arg0: i32) -> (i32, i32) {
    %c0_i32 = arith.constant 0 : i32
    %c0_i32_0 = arith.constant 0 : i32
    %c0_i32_1 = arith.constant 0 : i32
    return %c0_i32, %c0_i32_0 : i32, i32
  }
  func.func @transform_2(%arg0: i32) -> (i32, i32) {
    %c0_i32 = arith.constant 0 : i32
    %c0_i32_0 = arith.constant 0 : i32
    %c0_i32_1 = arith.constant 0 : i32
    return %c0_i32, %c0_i32_0 : i32, i32
  }
  func.func @transform_3(%arg0: i32) -> (i32, i32) {
    %c0_i32 = arith.constant 0 : i32
    %c0_i32_0 = arith.constant 0 : i32
    %c0_i32_1 = arith.constant 0 : i32
    return %c0_i32, %c0_i32_0 : i32, i32
  }
  func.func @transform_4(%arg0: i32) -> (i32, i32) {
    %c0_i32 = arith.constant 0 : i32
    %c0_i32_0 = arith.constant 0 : i32
    %c0_i32_1 = arith.constant 0 : i32
    return %c0_i32, %c0_i32_0 : i32, i32
  }
  func.func @transform_5(%arg0: i32) -> (i32, i32) {
    %c0_i32 = arith.constant 0 : i32
    %c0_i32_0 = arith.constant 0 : i32
    %c0_i32_1 = arith.constant 0 : i32
    return %c0_i32, %c0_i32_0 : i32, i32
  }
  func.func @transform_6(%arg0: i32) -> (i32, i32) {
    %c0_i32 = arith.constant 0 : i32
    %c0_i32_0 = arith.constant 0 : i32
    %c0_i32_1 = arith.constant 0 : i32
    return %c0_i32, %c0_i32_0 : i32, i32
  }
  func.func @transform_7(%arg0: i32) -> (i32, i32) {
    %c0_i32 = arith.constant 0 : i32
    %c0_i32_0 = arith.constant 0 : i32
    %c0_i32_1 = arith.constant 0 : i32
    return %c0_i32, %c0_i32_0 : i32, i32
  }
  func.func @transform_8(%arg0: i32) -> (i32, i32) {
    %c0_i32 = arith.constant 0 : i32
    %c0_i32_0 = arith.constant 0 : i32
    %c0_i32_1 = arith.constant 0 : i32
    return %c0_i32, %c0_i32_0 : i32, i32
  }
  func.func @transform_9(%arg0: i32) -> (i32, i32) {
    %c0_i32 = arith.constant 0 : i32
    %c0_i32_0 = arith.constant 0 : i32
    %c0_i32_1 = arith.constant 0 : i32
    return %c0_i32, %c0_i32_0 : i32, i32
  }
  func.func @transform_10(%arg0: i32) -> (i32, i32) {
    %c0_i32 = arith.constant 0 : i32
    %c0_i32_0 = arith.constant 0 : i32
    %c0_i32_1 = arith.constant 0 : i32
    return %c0_i32, %c0_i32_0 : i32, i32
  }
  func.func @transform_11(%arg0: i32) -> (i32, i32) {
    %c0_i32 = arith.constant 0 : i32
    %c0_i32_0 = arith.constant 0 : i32
    return %c0_i32, %arg0 : i32, i32
  }
}

</mosaic_0001>

<bundles_post_ra>
// kernel: intra_graph_pallas.1
= control target key start
LH: loop header
LB: loop body
LE: loop exit
PB: predicated region body
PF: predicated region fallthrough
CT: control target
= control target key end

     0   :  { %v3735_v3 = vmov 0   ;;  %vm74_vm0 = vcmask 130048   ;;  %vm211_vm1 = vcmask 261120   ;;  %vm796_vm2 = vcmask 523264   ;;  %s6139_s0 = inlined_call_operand.vmem [shape: f32[16,512], index: 0, kind: input, shape index: {}]   ;;  %s6140_s1 = inlined_call_operand.vmem [shape: f32[32,16], index: 1, kind: input, shape index: {}]   ;;  %s6141_s2 = inlined_call_operand.vmem [shape: f32[32,1], index: 2, kind: input, shape index: {}]   ;;  %s6142_s3 = inlined_call_operand.vmem [shape: f32[64,32], index: 3, kind: input, shape index: {}]   ;;  %s6143_s4 = inlined_call_operand.vmem [shape: f32[128,32], index: 4, kind: input, shape index: {}]   ;;  %s6144_s5 = inlined_call_operand.vmem [shape: f32[128,1], index: 5, kind: input, shape index: {}]   ;;  %s6145_s6 = inlined_call_operand.vmem [shape: f32[128,32], index: 6, kind: input, shape index: {}]   ;;  %s6146_s7 = inlined_call_operand.vmem [shape: f32[128,1], index: 7, kind: input, shape index: {}]   ;;  %s6147_s8 = inlined_call_operand.vmem [shape: f32[32,32], index: 8, kind: input, shape index: {}]   ;;  %s6148_s9 = inlined_call_operand.vmem [shape: f32[16,32], index: 9, kind: input, shape index: {}]   ;;  %s6149_s10 = inlined_call_operand.vmem [shape: f32[16,1], index: 10, kind: input, shape index: {}]   ;;  %s6150_s11 = inlined_call_operand.vmem [shape: f32[16,512], index: 11, kind: output, shape index: {}]  }
   0x1   :  { %v42_v0 = vld [vmem:[%s6139_s0 + $0x20] sm:$0xff]  ;;  %v43_v1 = vld [vmem:[%s6139_s0 + $0x28] sm:$0xff]  ;;  %v45_v2 = vld [vmem:[%s6139_s0 + $0x38] sm:$0xff]  ;;  %3429 = vset.pattern.permute.xlu1 %v3735_v3  ;;  %3428 = vset.pattern.permute.xlu0 %v3735_v3 }
   0x2   :  { %3366 = vmatpush.msra.mxu2 %v42_v0  ;;  %130 = vmatpush.msra.mxu1 %v43_v1  ;;  %v38_v4 = vld [vmem:[%s6139_s0] sm:$0xff]  ;;  %v39_v5 = vld [vmem:[%s6139_s0 + $0x8] sm:$0xff]  ;;  %v41_v6 = vld [vmem:[%s6139_s0 + $0x18] sm:$0xff] }
   0x3   :  { %3368 = vmatpush.msra.mxu3 %v45_v2  ;;  %v48_v7 = vld [vmem:[%s6140_s1 + $0x10] sm:$0xff]  ;;  %v46_v8 = vld [vmem:[%s6140_s1] sm:$0xff]  ;;  %v47_v9 = vld [vmem:[%s6140_s1 + $0x8] sm:$0xff]  ;;  %101 = vmatpush.msra.mxu0 %v42_v0 }
   0x4   :  { %3367 = vmatpush.msra.mxu2 %v38_v4  ;;  %131 = vmatpush.msra.mxu1 %v39_v5  ;;  %v51_v10 = vld [vmem:[%s6141_s2 + $0x8] sm:$0xff]  ;;  %v44_v11 = vld [vmem:[%s6139_s0 + $0x30] sm:$0xff]  ;;  %v53_v12 = vld [vmem:[%s6141_s2 + $0x18] sm:$0xff] }
   0x5   :  { %3369 = vmatpush.msra.mxu3 %v41_v6  ;;  %3164 = vmatmul.msk.f32.vlgmr.msra.gmra.mxu2 %vm74_vm0, %v48_v7  ;;  %v40_v13 = vld [vmem:[%s6139_s0 + $0x10] sm:$0xff]  ;;  %v49_v14 = vld [vmem:[%s6140_s1 + $0x18] sm:$0xff]  ;;  %v50_v15 = vld [vmem:[%s6141_s2] sm:$0xff] }
   0x6   :  { %3166 = vmatmul.msk.f32.vlgmr.msra.gmra.mxu1 %vm74_vm0, %v46_v8  ;;  %3175 = vmatmul.msk.f32.vlgmr.msra.gmra.mxu3 %vm74_vm0, %v47_v9  ;;  %v52_v16 = vld [vmem:[%s6141_s2 + $0x10] sm:$0xff]  ;;  %v203_v34 = vld [vmem:[%s6142_s3] sm:$0xff]  ;;  %v204_v43 = vld [vmem:[%s6142_s3 + $0x8] sm:$0xff] }
   0x7   :  { %61 = vperm.xlu1 %3429, %v51_v10   ;;  %102 = vmatpush.msra.mxu0 %v38_v4  ;;  %v205_v49 = vld [vmem:[%s6142_s3 + $0x10] sm:$0xff]  ;;  %v206_v51 = vld [vmem:[%s6142_s3 + $0x18] sm:$0xff]  ;;  %v207_v57 = vld [vmem:[%s6142_s3 + $0x20] sm:$0xff] }
   0x8   :  { %3162 = vmatmul.msk.f32.vlgmr.msra.gmra.mxu0 %vm74_vm0, %v46_v8  ;;  %159 = vmatpush.msrb.mxu2 %v44_v11  ;;  %v208_v58 = vld [vmem:[%s6142_s3 + $0x28] sm:$0xff]  ;;  %v209_v59 = vld [vmem:[%s6142_s3 + $0x30] sm:$0xff]  ;;  %v210_v60 = vld [vmem:[%s6142_s3 + $0x38] sm:$0xff] }
   0x9   :  { %71 = vperm.xlu0 %3428, %v53_v12   ;;  %188 = vmatpush.msra.mxu1 %v45_v2 }
   0xa   :  { %160 = vmatpush.msrb.mxu2 %v40_v13  ;;  %3430 = vset.pattern.permute.xlu2 %v3735_v3 }
   0xb   :  { %189 = vmatpush.msra.mxu1 %v41_v6 }
   0xd   :  { %3165 = vmatmul.msk.f32.gmra.mxu2 %vm74_vm0, %v49_v14 }
   0xe   :  { %3167 = vmatmul.msk.f32.gmra.mxu1 %vm74_vm0, %v47_v9  ;;  %3176 = vmatmul.msk.f32.gmra.mxu3 %vm74_vm0, %v48_v7 }
   0xf   :  { %56 = vperm.xlu1 %3429, %v50_v15  }
  0x10   :  { %3163 = vmatmul.msk.f32.gmra.mxu0 %vm74_vm0, %v47_v9 }
  0x11   :  { %66 = vperm.xlu0 %3428, %v52_v16  }
  0x15   :  { %3170 = vmatmul.msk.f32.vlgmr.msrb.gmra.mxu2 %vm74_vm0, %v46_v8 }
  0x16   :  { %3168 = vmatmul.msk.f32.gmra.mxu1 %vm74_vm0, %v48_v7  ;;  %3177 = vmatmul.msk.f32.gmra.mxu3 %vm74_vm0, %v49_v14 }
  0x1d   :  { %3171 = vmatmul.msk.f32.gmra.mxu2 %vm74_vm0, %v47_v9 }
  0x1e   :  { %3169 = vmatmul.msk.f32.gmra.mxu1 %vm74_vm0, %v49_v14 }
  0x25   :  { %3172 = vmatmul.msk.f32.gmra.mxu2 %vm74_vm0, %v48_v7 }
  0x26   :  { %3174 = vmatmul.msk.f32.vlgmr.msra.gmra.mxu1 %vm74_vm0, %v46_v8 }
  0x2d   :  { %3173 = vmatmul.msk.f32.gmra.mxu2 %vm74_vm0, %v49_v14 }
  0x79   :  { %v62_v22 = vpop.permute.xlu1 %61 }
  0x7b   :  { %v72_v18 = vpop.permute.xlu0 %71 }
  0x81   :  { %v57_v32 = vpop.permute.xlu1 %56 }
  0x83   :  { %v133_v17 = vpop.f32.mrf.mxu1  ;;  %v67_v24 = vpop.permute.xlu0 %66 }
  0x84   :  { %v3899_v46 = vadd.f32 %v133_v17, %v57_v32 }
  0x85   :  { %v104_v19 = vpop.f32.mrf.mxu0 }
  0x86   :  { %v3870_v33 = vadd.f32 %v104_v19, %v57_v32 }
  0x88   :  { %v110_v20 = vpop.f32.mrf.mxu2 }
  0x89   :  { %v194_v21 = vpop.f32.mrf.mxu3  ;;  %v3865_v29 = vadd.f32 %v110_v20, %v67_v24 }
  0x8a   :  { %v3890_v42 = vadd.f32 %v194_v21, %v62_v22 }
  0x8b   :  { %v136_v23 = vpop.f32.mrf.mxu1 }
  0x8c   :  { %v3895_v44 = vadd.f32 %v136_v23, %v62_v22 }
  0x8d   :  { %v107_v26 = vpop.f32.mrf.mxu0 }
  0x8e   :  { %v3868_v31 = vadd.f32 %v107_v26, %v62_v22 }
  0x90   :  { %v113_v25 = vpop.f32.mrf.mxu2 }
  0x91   :  { %v3863_v27 = vadd.f32 %v113_v25, %v72_v18  ;;  %v197_v28 = vpop.f32.mrf.mxu3 }
  0x92   :  { %v3884_v40 = vadd.f32 %v197_v28, %v67_v24 }
  0x93   :  { %v139_v30 = vpop.f32.mrf.mxu1  ;;  %248 = vmatpush.msra.mxu0 %v3863_v27 }
  0x94   :  { %v3886_v41 = vadd.f32 %v139_v30, %v67_v24 }
  0x95   :  { %249 = vmatpush.msra.mxu0 %v3865_v29 }
  0x97   :  { %250 = vmatpush.msra.mxu0 %v3868_v31 }
  0x98   :  { %v162_v35 = vpop.f32.mrf.mxu2 }
  0x99   :  { %v200_v36 = vpop.f32.mrf.mxu3  ;;  %251 = vmatpush.msra.mxu0 %v3870_v33  ;;  %v3928_v56 = vadd.f32 %v162_v35, %v57_v32 }
  0x9a   :  { %3178 = vmatmul.msk.f32.vlgmr.msra.gmra.mxu0 %vm211_vm1, %v203_v34  ;;  %v3879_v37 = vadd.f32 %v200_v36, %v72_v18 }
  0x9b   :  { %v142_v38 = vpop.f32.mrf.mxu1  ;;  %6240 = vst [vmem:[#allocation5_spill] sm:$0xff] %v3928_v56 }
  0x9c   :  { %v3881_v39 = vadd.f32 %v142_v38, %v72_v18  ;;  %371 = vmatpush.msrb.mxu3 %v3879_v37 }
  0x9e   :  { %289 = vmatpush.msra.mxu1 %v3881_v39  ;;  %372 = vmatpush.msrb.mxu3 %v3884_v40 }
  0xa0   :  { %290 = vmatpush.msra.mxu1 %v3886_v41  ;;  %373 = vmatpush.msrb.mxu3 %v3890_v42  ;;  %v165_v45 = vpop.f32.mrf.mxu2 }
  0xa1   :  { %v3924_v55 = vadd.f32 %v165_v45, %v62_v22 }
  0xa2   :  { %291 = vmatpush.msra.mxu1 %v3895_v44  ;;  %3179 = vmatmul.msk.f32.gmra.mxu0 %vm211_vm1, %v204_v43 }
  0xa3   :  { %v191_v47 = vpop.f32.mrf.mxu1  ;;  %6239 = vst [vmem:[#allocation4_spill] sm:$0xff] %v3924_v55 }
  0xa4   :  { %292 = vmatpush.msra.mxu1 %v3899_v46  ;;  %v3904_v48 = vadd.f32 %v191_v47, %v57_v32 }
  0xa5   :  { %3186 = vmatmul.msk.f32.vlgmr.msra.gmra.mxu1 %vm211_vm1, %v203_v34 }
  0xa6   :  { %374 = vmatpush.msrb.mxu3 %v3904_v48 }
  0xa7   :  { %3202 = vmatmul.msk.f32.vlgmr.msrb.gmra.mxu3 %vm211_vm1, %v203_v34 }
  0xa8   :  { %v168_v50 = vpop.f32.mrf.mxu2 }
  0xa9   :  { %v3921_v54 = vadd.f32 %v168_v50, %v67_v24 }
  0xaa   :  { %3180 = vmatmul.msk.f32.gmra.mxu0 %vm211_vm1, %v205_v49 }
  0xab   :  { %6238 = vst [vmem:[#allocation3_spill] sm:$0xff] %v3921_v54 }
  0xad   :  { %3187 = vmatmul.msk.f32.gmra.mxu1 %vm211_vm1, %v204_v43 }
  0xaf   :  { %3203 = vmatmul.msk.f32.gmra.mxu3 %vm211_vm1, %v204_v43 }
  0xb0   :  { %v171_v52 = vpop.f32.mrf.mxu2 }
  0xb1   :  { %v3918_v53 = vadd.f32 %v171_v52, %v72_v18 }
  0xb2   :  { %3181 = vmatmul.msk.f32.gmra.mxu0 %vm211_vm1, %v206_v51 }
  0xb3   :  { %6237 = vst [vmem:[#allocation2_spill] sm:$0xff] %v3918_v53  ;;  %330 = vmatpush.msra.mxu2 %v3918_v53 }
  0xb5   :  { %3188 = vmatmul.msk.f32.gmra.mxu1 %vm211_vm1, %v205_v49  ;;  %331 = vmatpush.msra.mxu2 %v3921_v54 }
  0xb7   :  { %3204 = vmatmul.msk.f32.gmra.mxu3 %vm211_vm1, %v205_v49  ;;  %332 = vmatpush.msra.mxu2 %v3924_v55 }
  0xb9   :  { %333 = vmatpush.msra.mxu2 %v3928_v56 }
  0xba   :  { %3182 = vmatmul.msk.f32.gmra.mxu0 %vm211_vm1, %v207_v57  ;;  %3194 = vmatmul.msk.f32.vlgmr.msra.gmra.mxu2 %vm211_vm1, %v203_v34 }
  0xbd   :  { %3189 = vmatmul.msk.f32.gmra.mxu1 %vm211_vm1, %v206_v51 }
  0xbf   :  { %3205 = vmatmul.msk.f32.gmra.mxu3 %vm211_vm1, %v206_v51 }
  0xc2   :  { %3183 = vmatmul.msk.f32.gmra.mxu0 %vm211_vm1, %v208_v58  ;;  %3195 = vmatmul.msk.f32.gmra.mxu2 %vm211_vm1, %v204_v43 }
  0xc5   :  { %3190 = vmatmul.msk.f32.gmra.mxu1 %vm211_vm1, %v207_v57 }
  0xc7   :  { %3206 = vmatmul.msk.f32.gmra.mxu3 %vm211_vm1, %v207_v57 }
  0xca   :  { %3184 = vmatmul.msk.f32.gmra.mxu0 %vm211_vm1, %v209_v59  ;;  %3196 = vmatmul.msk.f32.gmra.mxu2 %vm211_vm1, %v205_v49 }
  0xcd   :  { %3191 = vmatmul.msk.f32.gmra.mxu1 %vm211_vm1, %v208_v58 }
  0xcf   :  { %3207 = vmatmul.msk.f32.gmra.mxu3 %vm211_vm1, %v208_v58 }
  0xd2   :  { %3185 = vmatmul.msk.f32.gmra.mxu0 %vm211_vm1, %v210_v60  ;;  %3197 = vmatmul.msk.f32.gmra.mxu2 %vm211_vm1, %v206_v51 }
  0xd5   :  { %3192 = vmatmul.msk.f32.gmra.mxu1 %vm211_vm1, %v209_v59 }
  0xd7   :  { %3208 = vmatmul.msk.f32.gmra.mxu3 %vm211_vm1, %v209_v59 }
  0xda   :  { %3198 = vmatmul.msk.f32.gmra.mxu2 %vm211_vm1, %v207_v57 }
  0xdd   :  { %3193 = vmatmul.msk.f32.gmra.mxu1 %vm211_vm1, %v210_v60 }
  0xdf   :  { %3209 = vmatmul.msk.f32.gmra.mxu3 %vm211_vm1, %v210_v60 }
  0xe2   :  { %3199 = vmatmul.msk.f32.gmra.mxu2 %vm211_vm1, %v208_v58 }
  0xea   :  { %3200 = vmatmul.msk.f32.gmra.mxu2 %vm211_vm1, %v209_v59 }
  0xf2   :  { %3201 = vmatmul.msk.f32.gmra.mxu2 %vm211_vm1, %v210_v60 }
 0x117   :  { %v253_v61 = vpop.f32.mrf.mxu0 }
 0x11f   :  { %v256_v62 = vpop.f32.mrf.mxu0 }
 0x120   :  { %v400_v8 = vmax.f32 %v253_v61, %v256_v62 }
 0x122   :  { %v3967_v63 = vpop.f32.mrf.mxu1 }
 0x127   :  { %v259_v0 = vpop.f32.mrf.mxu0 }
 0x128   :  { %v401_v9 = vmax.f32 %v400_v8, %v259_v0 }
 0x12a   :  { %v3969_v1 = vpop.f32.mrf.mxu1 }
 0x12b   :  { %v413_v16 = vmax.f32 %v3967_v63, %v3969_v1 }
 0x12f   :  { %v262_v2 = vpop.f32.mrf.mxu0 }
 0x130   :  { %v402_v11 = vmax.f32 %v401_v9, %v262_v2 }
 0x132   :  { %v3971_v3 = vpop.f32.mrf.mxu1 }
 0x133   :  { %v414_v19 = vmax.f32 %v413_v16, %v3971_v3 }
 0x137   :  { %v265_v4 = vpop.f32.mrf.mxu0 }
 0x138   :  { %v403_v12 = vmax.f32 %v402_v11, %v265_v4 }
 0x13a   :  { %v3973_v5 = vpop.f32.mrf.mxu1 }
 0x13b   :  { %v415_v22 = vmax.f32 %v414_v19, %v3973_v5 }
 0x13f   :  { %v268_v6 = vpop.f32.mrf.mxu0 }
 0x140   :  { %v404_v14 = vmax.f32 %v403_v12, %v268_v6 }
 0x142   :  { %v3975_v7 = vpop.f32.mrf.mxu1 }
 0x143   :  { %v416_v24 = vmax.f32 %v415_v22, %v3975_v7 }
 0x147   :  { %v271_v10 = vpop.f32.mrf.mxu0 }
 0x148   :  { %v405_v15 = vmax.f32 %v404_v14, %v271_v10 }
 0x14a   :  { %v3977_v13 = vpop.f32.mrf.mxu1 }
 0x14b   :  { %v417_v26 = vmax.f32 %v416_v24, %v3977_v13 }
 0x14f   :  { %v274_v17 = vpop.f32.mrf.mxu0 }
 0x150   :  { %v406_v18 = vmax.f32 %v405_v15, %v274_v17 }
 0x152   :  { %v407_v20 = vrot.slane %v406_v18, 4  ;;  %v312_v21 = vpop.f32.mrf.mxu1 }
 0x153   :  { %v418_v30 = vmax.f32 %v417_v26, %v312_v21 }
 0x154   :  { %v408_v23 = vmax.f32 %v406_v18, %v407_v20 }
 0x156   :  { %v409_v25 = vrot.slane %v408_v23, 2 }
 0x158   :  { %v410_v28 = vmax.f32 %v408_v23, %v409_v25 }
 0x15a   :  { %v411_v32 = vrot.slane %v410_v28, 1  ;;  %v315_v34 = vpop.f32.mrf.mxu1 }
 0x15b   :  { %v419_v35 = vmax.f32 %v418_v30, %v315_v34 }
 0x15c   :  { %v412_v36 = vmax.f32 %v410_v28, %v411_v32 }
 0x15d   :  { %v420_v38 = vrot.slane %v419_v35, 4 }
 0x15e   :  { %v480_v43 = vsub.f32 %v274_v17, %v412_v36  ;;  %v476_v45 = vsub.f32 %v271_v10, %v412_v36  ;;  %v456_v50 = vsub.f32 %v256_v62, %v412_v36  ;;  %v472_v52 = vsub.f32 %v268_v6, %v412_v36 }
 0x15f   :  { %v421_v47 = vmax.f32 %v419_v35, %v420_v38  ;;  %v452_v58 = vsub.f32 %v253_v61, %v412_v36  ;;  %v468_v60 = vsub.f32 %v265_v4, %v412_v36  ;;  %v460_v8 = vsub.f32 %v259_v0, %v412_v36 }
 0x160   :  { %v540_v49 = vmul.f32 1.442695, %v480_v43  ;;  %v532_v57 = vmul.f32 1.442695, %v476_v45  ;;  %v492_v9 = vmul.f32 1.442695, %v456_v50  ;;  %v464_v14 = vsub.f32 %v262_v2, %v412_v36 }
 0x161   :  { %v422_v51 = vrot.slane %v421_v47, 2  ;;  %v524_v12 = vmul.f32 1.442695, %v472_v52  ;;  %v484_v15 = vmul.f32 1.442695, %v452_v58 }
 0x162   :  { %3431 = vpow2.f32 %v540_v49  ;;  %v516_v17 = vmul.f32 1.442695, %v468_v60  ;;  %v500_v18 = vmul.f32 1.442695, %v460_v8  ;;  %v508_v0 = vmul.f32 1.442695, %v464_v14 }
 0x163   :  { %v423_v59 = vmax.f32 %v421_v47, %v422_v51  ;;  %3433 = vpow2.f32 %v532_v57 }
 0x164   :  { %3435 = vpow2.f32 %v492_v9 }
 0x165   :  { %v424_v11 = vrot.slane %v423_v59, 1  ;;  %3437 = vpow2.f32 %v524_v12 }
 0x166   :  { %3439 = vpow2.f32 %v484_v15 }
 0x167   :  { %v425_v16 = vmax.f32 %v423_v59, %v424_v11  ;;  %3441 = vpow2.f32 %v516_v17 }
 0x168   :  { %v3985_v10 = vpop.eup %3431  ;;  %3443 = vpow2.f32 %v500_v18 }
 0x169   :  { %v481_v62 = vsub.f32 %v315_v34, %v425_v16  ;;  %700 = vmatpush.xpose.msra.mxu0 %v3985_v10  ;;  %758 = vmatpush.xpose.msrb.mxu2 %v3985_v10  ;;  %v477_v61 = vsub.f32 %v312_v21, %v425_v16  ;;  %v3989_v6 = vpop.eup %3433  ;;  %v457_v2 = vsub.f32 %v3969_v1, %v425_v16 }
 0x16a   :  { %6241 = vst [vmem:[#allocation6_spill] sm:$0xff] %v3989_v6  ;;  %v473_v20 = vsub.f32 %v3977_v13, %v425_v16  ;;  %v453_v22 = vsub.f32 %v3967_v63, %v425_v16  ;;  %v3996_v21 = vpop.eup %3435  ;;  %v461_v23 = vsub.f32 %v3971_v3, %v425_v16  ;;  %v465_v1 = vsub.f32 %v3973_v5, %v425_v16 }
 0x16b   :  { %v542_v4 = vmul.f32 1.442695, %v481_v62  ;;  %v534_v19 = vmul.f32 1.442695, %v477_v61  ;;  %6242 = vst [vmem:[#allocation7_spill] sm:$0xff] %v3996_v21  ;;  %v3999_v24 = vpop.eup %3437  ;;  %v469_v13 = vsub.f32 %v3975_v7, %v425_v16 }
 0x16c   :  { %6243 = vst [vmem:[#allocation8_spill] sm:$0xff] %v3999_v24  ;;  %v494_v25 = vmul.f32 1.442695, %v457_v2  ;;  %v4001_v26 = vpop.eup %3439  ;;  %v486_v28 = vmul.f32 1.442695, %v453_v22 }
 0x16d   :  { %3445 = vpow2.f32 %v542_v4  ;;  %701 = vmatpush.xpose.msra.mxu0 %v3989_v6  ;;  %759 = vmatpush.xpose.msrb.mxu2 %v3989_v6  ;;  %6244 = vst [vmem:[#allocation9_spill] sm:$0xff] %v4001_v26  ;;  %v4004_v30 = vpop.eup %3441  ;;  %v526_v63 = vmul.f32 1.442695, %v473_v20  ;;  %v548_v3 = vadd.f32 %v4001_v26, %v3996_v21  ;;  %v502_v34 = vmul.f32 1.442695, %v461_v23 }
 0x16e   :  { %3447 = vpow2.f32 %v508_v0  ;;  %6245 = vst [vmem:[#allocation10_spill] sm:$0xff] %v4004_v30  ;;  %v4011_v32 = vpop.eup %3443  ;;  %v510_v38 = vmul.f32 1.442695, %v465_v1  ;;  %v518_v7 = vmul.f32 1.442695, %v469_v13 }
 0x16f   :  { %3449 = vpow2.f32 %v534_v19  ;;  %6246 = vst [vmem:[#allocation11_spill] sm:$0xff] %v4011_v32  ;;  %v549_v5 = vadd.f32 %v4011_v32, %v548_v3 }
 0x170   :  { %3451 = vpow2.f32 %v494_v25 }
 0x171   :  { %702 = vmatpush.xpose.msra.mxu0 %v3999_v24  ;;  %760 = vmatpush.xpose.msrb.mxu2 %v3999_v24  ;;  %3453 = vpow2.f32 %v486_v28 }
 0x172   :  { %3455 = vpow2.f32 %v526_v63 }
 0x173   :  { %v4013_v35 = vpop.eup %3445  ;;  %3457 = vpow2.f32 %v502_v34 }
 0x174   :  { %6247 = vst [vmem:[#allocation12_spill] sm:$0xff] %v4013_v35  ;;  %v4016_v36 = vpop.eup %3447  ;;  %729 = vmatpush.xpose.msra.mxu1 %v4013_v35  ;;  %778 = vmatpush.xpose.msra.mxu3 %v4013_v35  ;;  %3459 = vpow2.f32 %v510_v38 }
 0x175   :  { %6248 = vst [vmem:[#allocation13_spill] sm:$0xff] %v4016_v36  ;;  %703 = vmatpush.xpose.msra.mxu0 %v4004_v30  ;;  %761 = vmatpush.xpose.msrb.mxu2 %v4004_v30  ;;  %v550_v43 = vadd.f32 %v4016_v36, %v549_v5  ;;  %v4023_v45 = vpop.eup %3449  ;;  %3461 = vpow2.f32 %v518_v7  ;;  %v4093_v7 = vpop.f32.mrf.mxu2 }
 0x176   :  { %6249 = vst [vmem:[#allocation14_spill] sm:$0xff] %v4023_v45  ;;  %v4028_v49 = vpop.eup %3451 }
 0x177   :  { %v551_v47 = vadd.f32 %v4004_v30, %v550_v43  ;;  %6250 = vst [vmem:[#allocation15_spill] sm:$0xff] %v4028_v49  ;;  %v4033_v51 = vpop.eup %3453 }
 0x178   :  { %730 = vmatpush.xpose.msra.mxu1 %v4023_v45  ;;  %779 = vmatpush.xpose.msra.mxu3 %v4023_v45  ;;  %6251 = vst [vmem:[#allocation16_spill] sm:$0xff] %v4033_v51  ;;  %v4035_v52 = vpop.eup %3455  ;;  %v561_v58 = vadd.f32 %v4033_v51, %v4028_v49 }
 0x179   :  { %704 = vmatpush.xpose.msra.mxu0 %v4016_v36  ;;  %762 = vmatpush.xpose.msrb.mxu2 %v4016_v36  ;;  %v552_v50 = vadd.f32 %v3999_v24, %v551_v47  ;;  %6252 = vst [vmem:[#allocation17_spill] sm:$0xff] %v4035_v52  ;;  %v4040_v59 = vpop.eup %3457 }
 0x17a   :  { %6253 = vst [vmem:[#allocation18_spill] sm:$0xff] %v4040_v59  ;;  %v562_v8 = vadd.f32 %v4040_v59, %v561_v58  ;;  %v4048_v9 = vpop.eup %3459 }
 0x17b   :  { %v553_v57 = vadd.f32 %v3989_v6, %v552_v50  ;;  %6254 = vst [vmem:[#allocation19_spill] sm:$0xff] %v4048_v9  ;;  %v4050_v11 = vpop.eup %3461 }
 0x17c   :  { %731 = vmatpush.xpose.msra.mxu1 %v4035_v52  ;;  %780 = vmatpush.xpose.msra.mxu3 %v4035_v52  ;;  %6255 = vst [vmem:[#allocation20_spill] sm:$0xff] %v4050_v11  ;;  %v563_v14 = vadd.f32 %v4048_v9, %v562_v8 }
 0x17d   :  { %705 = vmatpush.xpose.msra.mxu0 %v4011_v32  ;;  %763 = vmatpush.xpose.msrb.mxu2 %v4011_v32  ;;  %v554_v60 = vadd.f32 %v3985_v10, %v553_v57  ;;  %v4097_v43 = vpop.f32.mrf.mxu2 }
 0x17e   :  { %v564_v16 = vadd.f32 %v4050_v11, %v563_v14  ;;  %v426_v58 = vmax.f32 %v4093_v7, %v4097_v43 }
 0x17f   :  { %v555_v12 = vrot.slane %v554_v60, 4 }
 0x180   :  { %732 = vmatpush.xpose.msra.mxu1 %v4050_v11  ;;  %781 = vmatpush.xpose.msra.mxu3 %v4050_v11  ;;  %v565_v18 = vadd.f32 %v4035_v52, %v564_v16 }
 0x181   :  { %706 = vmatpush.xpose.msra.mxu0 %v3996_v21  ;;  %764 = vmatpush.xpose.msrb.mxu2 %v3996_v21  ;;  %v556_v15 = vadd.f32 %v555_v12, %v554_v60 }
 0x182   :  { %v566_v61 = vadd.f32 %v4023_v45, %v565_v18 }
 0x183   :  { %v557_v17 = vrot.slane %v556_v15, 2 }
 0x184   :  { %733 = vmatpush.xpose.msra.mxu1 %v4048_v9  ;;  %782 = vmatpush.xpose.msra.mxu3 %v4048_v9  ;;  %v567_v4 = vadd.f32 %v4013_v35, %v566_v61 }
 0x185   :  { %v558_v62 = vadd.f32 %v557_v17, %v556_v15  ;;  %707 = vmatpush.xpose.msra.mxu0 %v4001_v26  ;;  %765 = vmatpush.xpose.msrb.mxu2 %v4001_v26  ;;  %v4101_v47 = vpop.f32.mrf.mxu2 }
 0x186   :  { %v568_v19 = vrot.slane %v567_v4, 4  ;;  %v427_v8 = vmax.f32 %v426_v58, %v4101_v47 }
 0x187   :  { %v559_v0 = vrot.slane %v558_v62, 1 }
 0x188   :  { %734 = vmatpush.xpose.msra.mxu1 %v4040_v59  ;;  %783 = vmatpush.xpose.msra.mxu3 %v4040_v59  ;;  %v569_v20 = vadd.f32 %v568_v19, %v567_v4 }
 0x189   :  { %v560_v2 = vadd.f32 %v559_v0, %v558_v62 }
 0x18a   :  { %v570_v22 = vrot.slane %v569_v20, 2 }
 0x18b   :  { %3463 = vrcp.f32 %v560_v2 }
 0x18c   :  { %735 = vmatpush.xpose.msra.mxu1 %v4028_v49  ;;  %784 = vmatpush.xpose.msra.mxu3 %v4028_v49  ;;  %v571_v23 = vadd.f32 %v570_v22, %v569_v20 }
 0x18d   :  { %v4105_v50 = vpop.f32.mrf.mxu2 }
 0x18e   :  { %v572_v1 = vrot.slane %v571_v23, 1  ;;  %v428_v14 = vmax.f32 %v427_v8, %v4105_v50 }
 0x190   :  { %736 = vmatpush.xpose.msra.mxu1 %v4033_v51  ;;  %785 = vmatpush.xpose.msra.mxu3 %v4033_v51  ;;  %v573_v63 = vadd.f32 %v572_v1, %v571_v23 }
 0x191   :  { %v4071_v25 = vpop.eup %3463 }
 0x192   :  { %6256 = vst [vmem:[#allocation21_spill] sm:$0xff] %v4071_v25  ;;  %766 = vmatmul.f32.vlgmr.msrb.gmra.mxu2 %v4071_v25  ;;  %v604_v28 = vmul.f32 %v4071_v25, %v3870_v33  ;;  %3465 = vrcp.f32 %v573_v63  ;;  %v608_v13 = vmul.f32 %v4071_v25, %v3868_v31  ;;  %v612_v5 = vmul.f32 %v4071_v25, %v3865_v29  ;;  %v4095_v29 = vpop.f32.mrf.mxu3 }
 0x193   :  { %v616_v31 = vmul.f32 %v4071_v25, %v3863_v27  ;;  %v662_v25 = vld [vmem:[%s6145_s6 + $0x50] sm:$0xff] }
 0x194   :  { %708 = vmatmul.f32.vlgmr.msra.gmra.mxu0 %v604_v28 }
 0x195   :  { %v4109_v57 = vpop.f32.mrf.mxu2 }
 0x196   :  { %v429_v16 = vmax.f32 %v428_v14, %v4109_v57 }
 0x198   :  { %v4078_v3 = vpop.eup %3465 }
 0x199   :  { %6257 = vst [vmem:[#allocation22_spill] sm:$0xff] %v4078_v3  ;;  %786 = vmatmul.f32.vlgmr.msra.gmra.mxu3 %v4078_v3  ;;  %v605_v34 = vmul.f32 %v4078_v3, %v3899_v46  ;;  %v609_v33 = vmul.f32 %v4078_v3, %v3895_v44  ;;  %v613_v38 = vmul.f32 %v4078_v3, %v3886_v41 }
 0x19a   :  { %v617_v46 = vmul.f32 %v4078_v3, %v3881_v39  ;;  %v4099_v44 = vpop.f32.mrf.mxu3 }
 0x19b   :  { %737 = vmatmul.f32.vlgmr.msra.gmra.mxu1 %v605_v34 }
 0x19c   :  { %711 = vmatmul.f32.gmra.mxu0 %v608_v13 }
 0x19d   :  { %v350_v60 = vpop.f32.mrf.mxu2 }
 0x19e   :  { %v430_v18 = vmax.f32 %v429_v16, %v350_v60 }
 0x1a2   :  { %v4103_v27 = vpop.f32.mrf.mxu3 }
 0x1a3   :  { %740 = vmatmul.f32.gmra.mxu1 %v609_v33 }
 0x1a4   :  { %714 = vmatmul.f32.gmra.mxu0 %v612_v5 }
 0x1a5   :  { %v353_v15 = vpop.f32.mrf.mxu2 }
 0x1a6   :  { %v431_v62 = vmax.f32 %v430_v18, %v353_v15 }
 0x1aa   :  { %v4107_v41 = vpop.f32.mrf.mxu3 }
 0x1ab   :  { %743 = vmatmul.f32.gmra.mxu1 %v613_v38 }
 0x1ac   :  { %717 = vmatmul.f32.gmra.mxu0 %v616_v31 }
 0x1ad   :  { %v356_v61 = vpop.f32.mrf.mxu2 }
 0x1ae   :  { %v432_v2 = vmax.f32 %v431_v62, %v356_v61 }
 0x1b0   :  { %v433_v19 = vrot.slane %v432_v2, 4 }
 0x1b2   :  { %v4111_v39 = vpop.f32.mrf.mxu3  ;;  %v434_v1 = vmax.f32 %v432_v2, %v433_v19 }
 0x1b3   :  { %746 = vmatmul.f32.gmra.mxu1 %v617_v46 }
 0x1b4   :  { %v435_v34 = vrot.slane %v434_v1, 2 }
 0x1b6   :  { %v436_v33 = vmax.f32 %v434_v1, %v435_v34 }
 0x1b8   :  { %v437_v14 = vrot.slane %v436_v33, 1 }
 0x1ba   :  { %v4116_v12 = vpop.f32.mrf.mxu3 }
 0x1c2   :  { %v4120_v17 = vpop.f32.mrf.mxu3 }
 0x1ca   :  { %v4122_v4 = vpop.f32.mrf.mxu3 }
 0x211   :  { %v709_v0 = vpop.f32.mrf.mxu0 }
 0x215   :  { %v767_v20 = vpop.f32.mrf.mxu2 }
 0x216   :  { %v768_v23 = vadd.f32 1e-06, %v767_v20  ;;  %v4132_v20 = vmax.f32 %v436_v33, %v437_v14 }
 0x218   :  { %v738_v22 = vpop.f32.mrf.mxu1 }
 0x219   :  { %v712_v28 = vpop.f32.mrf.mxu0  ;;  %v739_v38 = vadd.f32 %v738_v22, %v709_v0  ;;  %v482_v0 = vsub.f32 %v356_v61, %v4132_v20  ;;  %v474_v61 = vsub.f32 %v350_v60, %v4132_v20  ;;  %v640_v60 = vld [vmem:[%s6144_s5 + $0x20] sm:$0xff] }
 0x21c   :  { %v787_v63 = vpop.f32.mrf.mxu3 }
 0x21d   :  { %v788_v13 = vadd.f32 %v787_v63, %v768_v23  ;;  %v544_v63 = vmul.f32 1.442695, %v482_v0 }
 0x21f   :  { %3467 = vrcp.f32 %v788_v13  ;;  %v478_v13 = vsub.f32 %v353_v15, %v4132_v20  ;;  %v620_v15 = vld [vmem:[%s6143_s4] sm:$0xff] }
 0x220   :  { %v741_v5 = vpop.f32.mrf.mxu1  ;;  %3469 = vpow2.f32 %v544_v63 }
 0x221   :  { %v715_v58 = vpop.f32.mrf.mxu0  ;;  %v742_v8 = vadd.f32 %v741_v5, %v712_v28  ;;  %v536_v33 = vmul.f32 1.442695, %v478_v13  ;;  %v622_v13 = vld [vmem:[%s6143_s4 + $0x10] sm:$0xff] }
 0x223   :  { %3471 = vpow2.f32 %v536_v33  ;;  %v454_v33 = vsub.f32 %v4093_v7, %v4132_v20  ;;  %v649_v7 = vld [vmem:[%s6144_s5 + $0x68] sm:$0xff] }
 0x225   :  { %v3468_v31 = vpop.eup %3467 }
 0x226   :  { %v791_v46 = vperm.slane %v3468_v31, 0 }
 0x228   :  { %v4124_v16 = vmul.f32 %v791_v46, %v739_v38  ;;  %v4126_v18 = vmul.f32 %v791_v46, %v742_v8  ;;  %v744_v62 = vpop.f32.mrf.mxu1  ;;  %v528_v38 = vmul.f32 1.442695, %v474_v61 }
 0x229   :  { %v718_v22 = vpop.f32.mrf.mxu0  ;;  %v745_v1 = vadd.f32 %v744_v62, %v715_v58  ;;  %v4152_v58 = vpop.eup %3469 }
 0x22a   :  { %v797_v2 = vsel %vm796_vm2, %v4124_v16, 0.0  ;;  %v800_v19 = vsel %vm796_vm2, %v4126_v18, 0.0  ;;  %6258 = vst [vmem:[#allocation23_spill] sm:$0xff] %v4152_v58  ;;  %3473 = vpow2.f32 %v528_v38  ;;  %v4163_v62 = vpop.eup %3471 }
 0x22b   :  { %798 = vadd.xlane.f32.xlu1 %v797_v2  ;;  %801 = vadd.xlane.f32.xlu0 %v800_v19  ;;  %v4138_v5 = vmul.f32 %v791_v46, %v745_v1  ;;  %6259 = vst [vmem:[#allocation24_spill] sm:$0xff] %v4163_v62  ;;  %v641_v2 = vld [vmem:[%s6144_s5 + $0x28] sm:$0xff] }
 0x22c   :  { %v621_v19 = vld [vmem:[%s6143_s4 + $0x8] sm:$0xff] }
 0x22d   :  { %v803_v8 = vsel %vm796_vm2, %v4138_v5, 0.0 }
 0x230   :  { %v747_v23 = vpop.f32.mrf.mxu1 }
 0x231   :  { %v748_v28 = vadd.f32 %v747_v23, %v718_v22  ;;  %v462_v22 = vsub.f32 %v4101_v47, %v4132_v20  ;;  %v4174_v23 = vpop.eup %3473  ;;  %v645_v47 = vld [vmem:[%s6144_s5 + $0x48] sm:$0xff] }
 0x232   :  { %6260 = vst [vmem:[#allocation25_spill] sm:$0xff] %v4174_v23 }
 0x233   :  { %v4136_v34 = vmul.f32 %v791_v46, %v748_v28  ;;  %v470_v46 = vsub.f32 %v4109_v57, %v4132_v20  ;;  %v466_v57 = vsub.f32 %v4105_v50, %v4132_v20  ;;  %v644_v50 = vld [vmem:[%s6144_s5 + $0x40] sm:$0xff]  ;;  %v504_v1 = vmul.f32 1.442695, %v462_v22  ;;  %v626_v22 = vld [vmem:[%s6143_s4 + $0x30] sm:$0xff] }
 0x234   :  { %v458_v28 = vsub.f32 %v4097_v43, %v4132_v20  ;;  %v650_v43 = vld [vmem:[%s6144_s5 + $0x70] sm:$0xff]  ;;  %v623_v20 = vld [vmem:[%s6143_s4 + $0x18] sm:$0xff] }
 0x235   :  { %1393 = vmatpush.msrb.mxu3 %v4136_v34  ;;  %v806_v31 = vsel %vm796_vm2, %v4136_v34, 0.0  ;;  %v520_v14 = vmul.f32 1.442695, %v470_v46  ;;  %v512_v0 = vmul.f32 1.442695, %v466_v57  ;;  %v636_v46 = vld [vmem:[%s6144_s5] sm:$0xff] }
 0x236   :  { %807 = vadd.xlane.f32.xlu2 %v806_v31  ;;  %v496_v31 = vmul.f32 1.442695, %v458_v28  ;;  %v624_v57 = vld [vmem:[%s6143_s4 + $0x20] sm:$0xff]  ;;  %v642_v28 = vld [vmem:[%s6144_s5 + $0x30] sm:$0xff] }
 0x237   :  { %1394 = vmatpush.msrb.mxu3 %v4138_v5  ;;  %3475 = vpow2.f32 %v520_v14 }
 0x238   :  { %3477 = vpow2.f32 %v512_v0  ;;  %v638_v0 = vld [vmem:[%s6144_s5 + $0x10] sm:$0xff] }
 0x239   :  { %1395 = vmatpush.msrb.mxu3 %v4126_v18  ;;  %3479 = vpow2.f32 %v504_v1  ;;  %v627_v1 = vld [vmem:[%s6143_s4 + $0x38] sm:$0xff] }
 0x23a   :  { %3481 = vpow2.f32 %v496_v31  ;;  %v643_v31 = vld [vmem:[%s6144_s5 + $0x38] sm:$0xff] }
 0x23b   :  { %1396 = vmatpush.msrb.mxu3 %v4124_v16 }
 0x23c   :  { %3258 = vmatmul.msk.f32.vlgmr.msrb.gmra.mxu3 %vm211_vm1, %v620_v15  ;;  %v488_v15 = vmul.f32 1.442695, %v454_v33 }
 0x23d   :  { %2097 = vmatpush.xpose.msra.mxu3 %v4152_v58  ;;  %v4183_v63 = vpop.eup %3475 }
 0x23e   :  { %804 = vadd.xlane.f32.xlu2 %v803_v8  ;;  %6261 = vst [vmem:[#allocation26_spill] sm:$0xff] %v4183_v63  ;;  %v4194_v61 = vpop.eup %3477  ;;  %3483 = vpow2.f32 %v488_v15  ;;  %v647_v8 = vld [vmem:[%s6144_s5 + $0x58] sm:$0xff] }
 0x23f   :  { %1275 = vperm.xlu0 %3428, %v640_v60   ;;  %6262 = vst [vmem:[#allocation27_spill] sm:$0xff] %v4194_v61  ;;  %v4201_v38 = vpop.eup %3479 }
 0x240   :  { %6263 = vst [vmem:[#allocation28_spill] sm:$0xff] %v4201_v38  ;;  %v4213_v60 = vpop.eup %3481 }
 0x241   :  { %2098 = vmatpush.xpose.msra.mxu3 %v4163_v62  ;;  %6264 = vst [vmem:[#allocation29_spill] sm:$0xff] %v4213_v60 }
 0x244   :  { %1280 = vperm.xlu1 %3429, %v641_v2   ;;  %3259 = vmatmul.msk.f32.gmra.mxu3 %vm211_vm1, %v621_v19  ;;  %v4220_v14 = vpop.eup %3483  ;;  %v637_v2 = vld [vmem:[%s6144_s5 + $0x8] sm:$0xff] }
 0x245   :  { %2099 = vmatpush.xpose.msra.mxu3 %v4174_v23  ;;  %6265 = vst [vmem:[#allocation30_spill] sm:$0xff] %v4220_v14  ;;  %v625_v19 = vld [vmem:[%s6143_s4 + $0x28] sm:$0xff]  ;;  %v574_v15 = vadd.f32 %v4220_v14, %v4213_v60 }
 0x247   :  { %1295 = vperm.xlu0 %3428, %v644_v50   ;;  %v639_v50 = vld [vmem:[%s6144_s5 + $0x18] sm:$0xff] }
 0x249   :  { %2100 = vmatpush.xpose.msra.mxu3 %v4183_v63 }
 0x24c   :  { %1300 = vperm.xlu1 %3429, %v645_v47   ;;  %3260 = vmatmul.msk.f32.gmra.mxu3 %vm211_vm1, %v622_v13  ;;  %v439_v47 = vmax.f32 %v4095_v29, %v4099_v44  ;;  %v628_v13 = vld [vmem:[%s6143_s4 + $0x40] sm:$0xff] }
 0x24d   :  { %2101 = vmatpush.xpose.msra.mxu3 %v4194_v61 }
 0x24e   :  { %v440_v33 = vmax.f32 %v439_v47, %v4103_v27  ;;  %v631_v47 = vld [vmem:[%s6143_s4 + $0x58] sm:$0xff] }
 0x24f   :  { %1325 = vperm.xlu0 %3428, %v650_v43  }
 0x250   :  { %v441_v43 = vmax.f32 %v440_v33, %v4107_v41 }
 0x251   :  { %2102 = vmatpush.xpose.msra.mxu3 %v4201_v38 }
 0x254   :  { %1320 = vperm.xlu1 %3429, %v649_v7   ;;  %3261 = vmatmul.msk.f32.gmra.mxu3 %vm211_vm1, %v623_v20  ;;  %v629_v7 = vld [vmem:[%s6143_s4 + $0x48] sm:$0xff]  ;;  %v442_v20 = vmax.f32 %v441_v43, %v4111_v39 }
 0x255   :  { %2103 = vmatpush.xpose.msra.mxu3 %v4213_v60 }
 0x256   :  { %1255 = vperm.xlu2 %3430, %v636_v46   ;;  %v575_v46 = vadd.f32 %v4201_v38, %v574_v15 }
 0x257   :  { %1310 = vperm.xlu0 %3428, %v647_v8   ;;  %v443_v8 = vmax.f32 %v442_v20, %v4116_v12  ;;  %v632_v20 = vld [vmem:[%s6143_s4 + $0x60] sm:$0xff] }
 0x259   :  { %2104 = vmatpush.xpose.msra.mxu3 %v4220_v14 }
 0x25c   :  { %3262 = vmatmul.msk.f32.gmra.mxu3 %vm211_vm1, %v624_v57  ;;  %v576_v57 = vadd.f32 %v4194_v61, %v575_v46 }
 0x25e   :  { %1260 = vperm.xlu2 %3430, %v637_v2   ;;  %v630_v2 = vld [vmem:[%s6143_s4 + $0x50] sm:$0xff] }
 0x264   :  { %3263 = vmatmul.msk.f32.gmra.mxu3 %vm211_vm1, %v625_v19  ;;  %v651_v19 = vld [vmem:[%s6144_s5 + $0x78] sm:$0xff] }
 0x266   :  { %1265 = vperm.xlu2 %3430, %v638_v0   ;;  %v444_v0 = vmax.f32 %v443_v8, %v4120_v17 }
 0x26c   :  { %3264 = vmatmul.msk.f32.gmra.mxu3 %vm211_vm1, %v626_v22  ;;  %v577_v22 = vadd.f32 %v4183_v63, %v576_v57 }
 0x26e   :  { %1270 = vperm.xlu2 %3430, %v639_v50   ;;  %v3736_v50 = vmov 64.0  }
 0x26f   :  { %3485 = vrcp.f32 %v3736_v50  ;;  %v633_v50 = vld [vmem:[%s6143_s4 + $0x68] sm:$0xff] }
 0x274   :  { %3265 = vmatmul.msk.f32.gmra.mxu3 %vm211_vm1, %v627_v1  ;;  %v445_v1 = vmax.f32 %v444_v0, %v4122_v4 }
 0x275   :  { %v3486_v43 = vpop.eup %3485 }
 0x276   :  { %1285 = vperm.xlu2 %3430, %v642_v28   ;;  %v578_v28 = vadd.f32 %v4174_v23, %v577_v22  ;;  %v810_v46 = vmul.f32 64.0, %v3486_v43  ;;  %vm814_vm3 = vweird.f32 %v3486_v43 }
 0x278   :  { %v579_v33 = vadd.f32 %v4163_v62, %v578_v28  ;;  %v676_v62 = vld [vmem:[%s6146_s7 + $0x40] sm:$0xff] }
 0x27c   :  { %3266 = vmatmul.msk.f32.gmra.mxu3 %vm211_vm1, %v628_v13  ;;  %v646_v13 = vld [vmem:[%s6144_s5 + $0x50] sm:$0xff] }
 0x27e   :  { %1290 = vperm.xlu2 %3430, %v643_v31   ;;  %v446_v31 = vrot.slane %v445_v1, 4 }
 0x280   :  { %v447_v15 = vmax.f32 %v445_v1, %v446_v31  ;;  %v648_v1 = vld [vmem:[%s6144_s5 + $0x60] sm:$0xff] }
 0x282   :  { %v448_v8 = vrot.slane %v447_v15, 2 }
 0x284   :  { %3267 = vmatmul.msk.f32.gmra.mxu3 %vm211_vm1, %v629_v7  ;;  %v580_v7 = vadd.f32 %v4152_v58, %v579_v33 }
 0x286   :  { %1330 = vperm.xlu2 %3430, %v651_v19   ;;  %v581_v57 = vrot.slane %v580_v7, 4  ;;  %v449_v19 = vmax.f32 %v447_v15, %v448_v8 }
 0x288   :  { %v582_v0 = vadd.f32 %v581_v57, %v580_v7  ;;  %v450_v28 = vrot.slane %v449_v19, 1 }
 0x28a   :  { %v4303_v31 = vmax.f32 %v449_v19, %v450_v28 }
 0x28c   :  { %3268 = vmatmul.msk.f32.gmra.mxu3 %vm211_vm1, %v630_v2  ;;  %v811_v2 = vsub.f32 1.0, %v810_v46  ;;  %v483_v8 = vsub.f32 %v4122_v4, %v4303_v31  ;;  %v479_v19 = vsub.f32 %v4120_v17, %v4303_v31 }
 0x28e   :  { %1305 = vperm.xlu2 %3430, %v646_v13   ;;  %v812_v22 = vmul.f32 %v3486_v43, %v811_v2  ;;  %v546_v2 = vmul.f32 1.442695, %v483_v8  ;;  %v538_v4 = vmul.f32 1.442695, %v479_v19 }
 0x290   :  { %v813_v13 = vadd.f32 %v3486_v43, %v812_v22  ;;  %3487 = vpow2.f32 %v546_v2 }
 0x292   :  { %v4305_v15 = vsel %vm814_vm3, %v3486_v43, %v813_v13 }
 0x293   :  { %6266 = vst [vmem:[#allocation31_spill] sm:$0xff] %v4305_v15 }
 0x294   :  { %3269 = vmatmul.msk.f32.gmra.mxu3 %vm211_vm1, %v631_v47  ;;  %v583_v47 = vrot.slane %v582_v0, 2 }
 0x296   :  { %1315 = vperm.xlu2 %3430, %v648_v1   ;;  %v584_v33 = vadd.f32 %v583_v47, %v582_v0  ;;  %v475_v47 = vsub.f32 %v4116_v12, %v4303_v31  ;;  %v4330_v12 = vpop.eup %3487 }
 0x297   :  { %6267 = vst [vmem:[#allocation32_spill] sm:$0xff] %v4330_v12 }
 0x298   :  { %v585_v57 = vrot.slane %v584_v33, 1 }
 0x29a   :  { %v586_v43 = vadd.f32 %v585_v57, %v584_v33  ;;  %v652_v33 = vld [vmem:[%s6145_s6] sm:$0xff]  ;;  %v467_v57 = vsub.f32 %v4107_v41, %v4303_v31 }
 0x29c   :  { %3270 = vmatmul.msk.f32.gmra.mxu3 %vm211_vm1, %v632_v20  ;;  %v634_v20 = vld [vmem:[%s6143_s4 + $0x70] sm:$0xff]  ;;  %3489 = vrcp.f32 %v586_v43  ;;  %v514_v43 = vmul.f32 1.442695, %v467_v57  ;;  %v657_v57 = vld [vmem:[%s6145_s6 + $0x28] sm:$0xff] }
 0x29d   :  { %3491 = vpow2.f32 %v538_v4 }
 0x29e   :  { %v802_v0 = vpop.xlane.xlu0 %801  ;;  %v799_v28 = vpop.xlane.xlu1 %798 }
 0x29f   :  { %v817_v13 = vmul.f32 %v4305_v15, %v802_v0  ;;  %v816_v17 = vmul.f32 %v4305_v15, %v799_v28  ;;  %v463_v0 = vsub.f32 %v4103_v27, %v4303_v31  ;;  %v654_v28 = vld [vmem:[%s6145_s6 + $0x10] sm:$0xff] }
 0x2a1   :  { %v506_v41 = vmul.f32 1.442695, %v463_v0 }
 0x2a4   :  { %3271 = vmatmul.msk.f32.gmra.mxu3 %vm211_vm1, %v633_v50  ;;  %v635_v50 = vld [vmem:[%s6143_s4 + $0x78] sm:$0xff] }
 0x2a9   :  { %v808_v7 = vpop.xlane.xlu2 %807 }
 0x2aa   :  { %v819_v46 = vmul.f32 %v4305_v15, %v808_v7  ;;  %v530_v7 = vmul.f32 1.442695, %v475_v47  ;;  %v455_v47 = vsub.f32 %v4095_v29, %v4303_v31 }
 0x2ac   :  { %880 = vmatpush.msra.mxu2 %v819_v46  ;;  %3272 = vmatmul.msk.f32.gmra.mxu3 %vm211_vm1, %v634_v20  ;;  %v471_v20 = vsub.f32 %v4111_v39, %v4303_v31  ;;  %v4334_v46 = vpop.eup %3489  ;;  %3493 = vpow2.f32 %v530_v7  ;;  %v653_v39 = vld [vmem:[%s6145_s6 + $0x8] sm:$0xff] }
 0x2ad   :  { %6268 = vst [vmem:[#allocation33_spill] sm:$0xff] %v4334_v46  ;;  %v4339_v2 = vpop.eup %3491 }
 0x2ae   :  { %v522_v8 = vmul.f32 1.442695, %v471_v20  ;;  %6269 = vst [vmem:[#allocation34_spill] sm:$0xff] %v4339_v2  ;;  %v656_v20 = vld [vmem:[%s6145_s6 + $0x20] sm:$0xff] }
 0x2b0   :  { %3495 = vpow2.f32 %v522_v8 }
 0x2b1   :  { %v805_v22 = vpop.xlane.xlu2 %804  ;;  %3497 = vpow2.f32 %v514_v43  ;;  %v658_v43 = vld [vmem:[%s6145_s6 + $0x30] sm:$0xff] }
 0x2b2   :  { %v818_v1 = vmul.f32 %v4305_v15, %v805_v22  ;;  %v4349_v22 = vpop.eup %3493  ;;  %3499 = vpow2.f32 %v506_v41  ;;  %v659_v41 = vld [vmem:[%s6145_s6 + $0x38] sm:$0xff] }
 0x2b3   :  { %6270 = vst [vmem:[#allocation35_spill] sm:$0xff] %v4349_v22 }
 0x2b4   :  { %881 = vmatpush.msra.mxu2 %v818_v1  ;;  %3273 = vmatmul.msk.f32.gmra.mxu3 %vm211_vm1, %v635_v50  ;;  %v459_v50 = vsub.f32 %v4099_v44, %v4303_v31  ;;  %v490_v44 = vmul.f32 1.442695, %v455_v47 }
 0x2b6   :  { %882 = vmatpush.msra.mxu2 %v817_v13  ;;  %v4355_v1 = vpop.eup %3495  ;;  %v498_v4 = vmul.f32 1.442695, %v459_v50 }
 0x2b7   :  { %6271 = vst [vmem:[#allocation36_spill] sm:$0xff] %v4355_v1  ;;  %v4365_v13 = vpop.eup %3497 }
 0x2b8   :  { %883 = vmatpush.msra.mxu2 %v816_v17  ;;  %6272 = vst [vmem:[#allocation37_spill] sm:$0xff] %v4365_v13  ;;  %3501 = vpow2.f32 %v498_v4  ;;  %v4369_v17 = vpop.eup %3499  ;;  %v660_v4 = vld [vmem:[%s6145_s6 + $0x40] sm:$0xff] }
 0x2b9   :  { %3210 = vmatmul.msk.f32.vlgmr.msra.gmra.mxu2 %vm211_vm1, %v652_v33  ;;  %6273 = vst [vmem:[#allocation38_spill] sm:$0xff] %v4369_v17  ;;  %v655_v33 = vld [vmem:[%s6145_s6 + $0x18] sm:$0xff]  ;;  %3503 = vpow2.f32 %v490_v44 }
 0x2ba   :  { %2068 = vmatpush.xpose.msrb.mxu2 %v4330_v12 }
 0x2bc   :  { %2105 = vmatmul.f32.vlgmr.msra.gmra.mxu3 %v4334_v46 }
 0x2be   :  { %2069 = vmatpush.xpose.msrb.mxu2 %v4339_v2  ;;  %v4377_v29 = vpop.eup %3501 }
 0x2bf   :  { %v4345_v19 = vpop.f32.mrf.mxu3  ;;  %6274 = vst [vmem:[#allocation39_spill] sm:$0xff] %v4377_v29  ;;  %v4381_v31 = vpop.eup %3503 }
 0x2c0   :  { %6275 = vst [vmem:[#allocation40_spill] sm:$0xff] %v4381_v31  ;;  %v587_v44 = vadd.f32 %v4381_v31, %v4377_v29 }
 0x2c1   :  { %3211 = vmatmul.msk.f32.gmra.mxu2 %vm211_vm1, %v653_v39 }
 0x2c2   :  { %2070 = vmatpush.xpose.msrb.mxu2 %v4349_v22 }
 0x2c6   :  { %2071 = vmatpush.xpose.msrb.mxu2 %v4355_v1 }
 0x2c7   :  { %v4361_v27 = vpop.f32.mrf.mxu3 }
 0x2c9   :  { %3212 = vmatmul.msk.f32.gmra.mxu2 %vm211_vm1, %v654_v28  ;;  %v4407_v28 = vpop.permute.xlu2 %1255 }
 0x2ca   :  { %2072 = vmatpush.xpose.msrb.mxu2 %v4365_v13  ;;  %6276 = vst [vmem:[#allocation41_spill] sm:$0xff] %v4407_v28 }
 0x2ce   :  { %2073 = vmatpush.xpose.msrb.mxu2 %v4369_v17 }
 0x2cf   :  { %v4375_v7 = vpop.f32.mrf.mxu3 }
 0x2d1   :  { %3213 = vmatmul.msk.f32.gmra.mxu2 %vm211_vm1, %v655_v33  ;;  %v4418_v33 = vpop.permute.xlu2 %1260 }
 0x2d2   :  { %2074 = vmatpush.xpose.msrb.mxu2 %v4377_v29  ;;  %6277 = vst [vmem:[#allocation42_spill] sm:$0xff] %v4418_v33 }
 0x2d6   :  { %2075 = vmatpush.xpose.msrb.mxu2 %v4381_v31  ;;  %v665_v31 = vld [vmem:[%s6145_s6 + $0x68] sm:$0xff] }
 0x2d7   :  { %v4387_v8 = vpop.f32.mrf.mxu3 }
 0x2d9   :  { %3214 = vmatmul.msk.f32.gmra.mxu2 %vm211_vm1, %v656_v20  ;;  %v588_v20 = vadd.f32 %v4369_v17, %v587_v44  ;;  %v4428_v3 = vpop.permute.xlu2 %1265  ;;  %v666_v17 = vld [vmem:[%s6145_s6 + $0x70] sm:$0xff] }
 0x2da   :  { %6278 = vst [vmem:[#allocation43_spill] sm:$0xff] %v4428_v3 }
 0x2df   :  { %v4393_v39 = vpop.f32.mrf.mxu3 }
 0x2e1   :  { %3215 = vmatmul.msk.f32.gmra.mxu2 %vm211_vm1, %v657_v57  ;;  %v661_v57 = vld [vmem:[%s6145_s6 + $0x48] sm:$0xff] }
 0x2e7   :  { %v4399_v0 = vpop.f32.mrf.mxu3 }
 0x2e9   :  { %3216 = vmatmul.msk.f32.gmra.mxu2 %vm211_vm1, %v658_v43 }
 0x2ef   :  { %v4405_v50 = vpop.f32.mrf.mxu3 }
 0x2f1   :  { %3217 = vmatmul.msk.f32.gmra.mxu2 %vm211_vm1, %v659_v41  ;;  %v589_v41 = vadd.f32 %v4365_v13, %v588_v20  ;;  %v4440_v20 = vpop.permute.xlu2 %1270 }
 0x2f2   :  { %6279 = vst [vmem:[#allocation44_spill] sm:$0xff] %v4440_v20 }
 0x2f7   :  { %v4413_v47 = vpop.f32.mrf.mxu3 }
 0x2f9   :  { %3218 = vmatmul.msk.f32.gmra.mxu2 %vm211_vm1, %v660_v4  ;;  %v590_v4 = vadd.f32 %v4355_v1, %v589_v41  ;;  %v4447_v46 = vpop.permute.xlu2 %1285 }
 0x2fa   :  { %6280 = vst [vmem:[#allocation45_spill] sm:$0xff] %v4447_v46 }
 0x2fb   :  { %v591_v44 = vadd.f32 %v4349_v22, %v590_v4 }
 0x2fd   :  { %v592_v53 = vadd.f32 %v4339_v2, %v591_v44 }
 0x2ff   :  { %v4424_v43 = vpop.f32.mrf.mxu3  ;;  %v593_v41 = vadd.f32 %v4330_v12, %v592_v53 }
 0x301   :  { %3219 = vmatmul.msk.f32.gmra.mxu2 %vm211_vm1, %v661_v57  ;;  %v663_v57 = vld [vmem:[%s6145_s6 + $0x58] sm:$0xff]  ;;  %v594_v55 = vrot.slane %v593_v41, 4  ;;  %v4455_v53 = vpop.permute.xlu2 %1290 }
 0x302   :  { %6282 = vst [vmem:[#allocation47_spill] sm:$0xff] %v4455_v53 }
 0x303   :  { %v595_v44 = vadd.f32 %v594_v55, %v593_v41 }
 0x305   :  { %v596_v56 = vrot.slane %v595_v44, 2 }
 0x307   :  { %v1425_v15 = vpop.f32.mrf.mxu3  ;;  %v597_v29 = vadd.f32 %v596_v56, %v595_v44  ;;  %v667_v56 = vld [vmem:[%s6145_s6 + $0x78] sm:$0xff] }
 0x309   :  { %3220 = vmatmul.msk.f32.gmra.mxu2 %vm211_vm1, %v662_v25  ;;  %v664_v25 = vld [vmem:[%s6145_s6 + $0x60] sm:$0xff]  ;;  %v598_v60 = vrot.slane %v597_v29, 1  ;;  %v4463_v41 = vpop.permute.xlu2 %1330 }
 0x30a   :  { %6284 = vst [vmem:[#allocation49_spill] sm:$0xff] %v4463_v41 }
 0x30b   :  { %v599_v38 = vadd.f32 %v598_v60, %v597_v29 }
 0x30d   :  { %3505 = vrcp.f32 %v599_v38 }
 0x30f   :  { %v1428_v54 = vpop.f32.mrf.mxu3 }
 0x311   :  { %3221 = vmatmul.msk.f32.gmra.mxu2 %vm211_vm1, %v663_v57  ;;  %v4453_v57 = vpop.permute.xlu0 %1275  ;;  %v4474_v61 = vpop.permute.xlu2 %1305 }
 0x312   :  { %6281 = vst [vmem:[#allocation46_spill] sm:$0xff] %v4453_v57 }
 0x313   :  { %6287 = vst [vmem:[#allocation52_spill] sm:$0xff] %v4474_v61  ;;  %v4476_v1 = vpop.eup %3505 }
 0x314   :  { %6288 = vst [vmem:[#allocation53_spill] sm:$0xff] %v4476_v1  ;;  %v607_v60 = vmul.f32 %v4476_v1, %v3904_v48 }
 0x317   :  { %v1431_v4 = vpop.f32.mrf.mxu3 }
 0x319   :  { %3222 = vmatmul.msk.f32.gmra.mxu2 %vm211_vm1, %v664_v25  ;;  %v4461_v25 = vpop.permute.xlu1 %1280  ;;  %v4466_v13 = vpop.permute.xlu0 %1295 }
 0x31a   :  { %6283 = vst [vmem:[#allocation48_spill] sm:$0xff] %v4461_v25  ;;  %v4491_v22 = vpop.permute.xlu2 %1315 }
 0x31b   :  { %6285 = vst [vmem:[#allocation50_spill] sm:$0xff] %v4466_v13 }
 0x31c   :  { %6291 = vst [vmem:[#allocation56_spill] sm:$0xff] %v4491_v22 }
 0x31f   :  { %v1434_v14 = vpop.f32.mrf.mxu3 }
 0x320   :  { %v4500_v48 = vadd.f32 %v1434_v14, %v4491_v22 }
 0x321   :  { %3223 = vmatmul.msk.f32.gmra.mxu2 %vm211_vm1, %v665_v31  ;;  %v4471_v44 = vpop.permute.xlu1 %1300  ;;  %v4478_v63 = vpop.permute.xlu0 %1325 }
 0x322   :  { %6286 = vst [vmem:[#allocation51_spill] sm:$0xff] %v4471_v44  ;;  %v4516_v14 = vadd.f32 %v1425_v15, %v4471_v44  ;;  %v4533_v15 = vadd.f32 %v4405_v50, %v4447_v46  ;;  %v4550_v50 = vadd.f32 %v4387_v8, %v4440_v20  ;;  %v679_v44 = vld [vmem:[%s6146_s7 + $0x58] sm:$0xff] }
 0x323   :  { %6289 = vst [vmem:[#allocation54_spill] sm:$0xff] %v4478_v63 }
 0x327   :  { %v1437_v55 = vpop.f32.mrf.mxu3 }
 0x329   :  { %3224 = vmatmul.msk.f32.gmra.mxu2 %vm211_vm1, %v666_v17 }
 0x32f   :  { %v1440_v31 = vpop.f32.mrf.mxu3 }
 0x330   :  { %v4486_v29 = vadd.f32 %v1440_v31, %v4478_v63  ;;  %v4503_v31 = vpop.permute.xlu0 %1310 }
 0x331   :  { %3225 = vmatmul.msk.f32.gmra.mxu2 %vm211_vm1, %v667_v56  ;;  %v4489_v56 = vpop.permute.xlu1 %1320  ;;  %6292 = vst [vmem:[#allocation57_spill] sm:$0xff] %v4503_v31 }
 0x332   :  { %6290 = vst [vmem:[#allocation55_spill] sm:$0xff] %v4489_v56  ;;  %v4494_v23 = vadd.f32 %v1437_v55, %v4489_v56  ;;  %v4512_v55 = vadd.f32 %v1428_v54, %v4474_v61  ;;  %v4528_v54 = vadd.f32 %v4413_v47, %v4455_v53  ;;  %v619_v47 = vmul.f32 %v4476_v1, %v3879_v37  ;;  %v668_v61 = vld [vmem:[%s6146_s7] sm:$0xff] }
 0x333   :  { %v4565_v37 = vadd.f32 %v4345_v19, %v4407_v28  ;;  %v669_v19 = vld [vmem:[%s6146_s7 + $0x8] sm:$0xff] }
 0x337   :  { %v1443_v17 = vpop.f32.mrf.mxu3 }
 0x338   :  { %v4483_v38 = vadd.f32 %v1443_v17, %v4463_v41  ;;  %v611_v17 = vmul.f32 %v4476_v1, %v3890_v42  ;;  %v4521_v42 = vadd.f32 %v4424_v43, %v4466_v13  ;;  %v4538_v43 = vadd.f32 %v4399_v0, %v4461_v25  ;;  %v675_v13 = vld [vmem:[%s6146_s7 + $0x38] sm:$0xff] }
 0x339   :  { %2076 = vmatmul.f32.vlgmr.msrb.gmra.mxu2 %v607_v60  ;;  %v4508_v60 = vadd.f32 %v1431_v4, %v4503_v31  ;;  %v615_v4 = vmul.f32 %v4476_v1, %v3884_v40  ;;  %v4543_v40 = vadd.f32 %v4393_v39, %v4453_v57  ;;  %v4555_v0 = vadd.f32 %v4375_v7, %v4428_v3 }
 0x33a   :  { %3373 = vmatpush.lsf.msrb.mxu0 %v4483_v38  ;;  %v4560_v39 = vadd.f32 %v4361_v27, %v4418_v33  ;;  %v678_v33 = vld [vmem:[%s6146_s7 + $0x50] sm:$0xff] }
 0x33c   :  { %v4496_v2 = vpop.f32.mrf.mxu2  ;;  %3374 = vmatpush.lsf.msrb.mxu0 %v4486_v29 }
 0x33e   :  { %3375 = vmatpush.lsf.msrb.mxu0 %v4494_v23 }
 0x340   :  { %3376 = vmatpush.lsf.msrb.mxu0 %v4500_v48 }
 0x341   :  { %2079 = vmatmul.f32.gmra.mxu2 %v611_v17 }
 0x342   :  { %3377 = vmatpush.lsf.msrb.mxu0 %v4508_v60 }
 0x344   :  { %v888_v22 = vpop.f32.mrf.mxu2  ;;  %3378 = vmatpush.lsf.msrb.mxu0 %v4512_v55 }
 0x345   :  { %v889_v25 = vadd.f32 %v888_v22, %v669_v19 }
 0x346   :  { %3379 = vmatpush.lsf.msrb.mxu0 %v4516_v14 }
 0x347   :  { %v3227_v53 = vmul.f32 -1.442695, %v889_v25  ;;  %v886_v25 = vadd.f32 %v4496_v2, %v668_v61  ;;  %v671_v61 = vld [vmem:[%s6146_s7 + $0x18] sm:$0xff] }
 0x348   :  { %3380 = vmatpush.lsf.msrb.mxu0 %v4521_v42 }
 0x349   :  { %2082 = vmatmul.f32.gmra.mxu2 %v615_v4  ;;  %v3226_v12 = vmul.f32 -1.442695, %v886_v25 }
 0x34a   :  { %3381 = vmatpush.lsf.msrb.mxu0 %v4528_v54 }
 0x34c   :  { %v891_v17 = vpop.f32.mrf.mxu2  ;;  %3382 = vmatpush.lsf.msrb.mxu0 %v4533_v15 }
 0x34e   :  { %3383 = vmatpush.lsf.msrb.mxu0 %v4538_v43 }
 0x350   :  { %3384 = vmatpush.lsf.msrb.mxu0 %v4543_v40 }
 0x351   :  { %2085 = vmatmul.f32.gmra.mxu2 %v619_v47 }
 0x352   :  { %3385 = vmatpush.lsf.msrb.mxu0 %v4550_v50 }
 0x354   :  { %v894_v4 = vpop.f32.mrf.mxu2  ;;  %3386 = vmatpush.lsf.msrb.mxu0 %v4555_v0 }
 0x356   :  { %3387 = vmatpush.lsf.msrb.mxu0 %v4560_v39 }
 0x358   :  { %3388 = vmatpush.lsf.msrb.mxu0 %v4565_v37 }
 0x359   :  { %3389 = vllmr.8.mxu0 }
 0x35c   :  { %v897_v7 = vpop.f32.mrf.mxu2 }
 0x364   :  { %v900_v8 = vpop.f32.mrf.mxu2 }
 0x36c   :  { %v4569_v47 = vpop.f32.mrf.mxu2 }
 0x374   :  { %v906_v3 = vpop.f32.mrf.mxu2 }
 0x37c   :  { %v909_v20 = vpop.f32.mrf.mxu2 }
 0x384   :  { %v4571_v27 = vpop.f32.mrf.mxu2 }
 0x38c   :  { %v915_v28 = vpop.f32.mrf.mxu2 }
 0x38d   :  { %v916_v57 = vadd.f32 %v915_v28, %v678_v33  ;;  %v672_v28 = vld [vmem:[%s6146_s7 + $0x20] sm:$0xff]  ;;  %v907_v33 = vadd.f32 %v906_v3, %v675_v13 }
 0x38e   :  { %v898_v31 = vadd.f32 %v897_v7, %v672_v28  ;;  %v680_v3 = vld [vmem:[%s6146_s7 + $0x60] sm:$0xff]  ;;  %v895_v28 = vadd.f32 %v894_v4, %v671_v61 }
 0x38f   :  { %v3236_v46 = vmul.f32 -1.442695, %v916_v57  ;;  %v3233_v1 = vmul.f32 -1.442695, %v907_v33 }
 0x390   :  { %v3230_v2 = vmul.f32 -1.442695, %v898_v31 }
 0x391   :  { %3507 = vpow2.f32 %v3236_v46  ;;  %v670_v46 = vld [vmem:[%s6146_s7 + $0x10] sm:$0xff] }
 0x392   :  { %3509 = vpow2.f32 %v3227_v53  ;;  %v892_v63 = vadd.f32 %v891_v17, %v670_v46 }
 0x394   :  { %v918_v22 = vpop.f32.mrf.mxu2  ;;  %v3228_v53 = vmul.f32 -1.442695, %v892_v63 }
 0x395   :  { %v919_v57 = vadd.f32 %v918_v22, %v679_v44  ;;  %v910_v44 = vadd.f32 %v909_v20, %v676_v62  ;;  %v3229_v20 = vmul.f32 -1.442695, %v895_v28 }
 0x397   :  { %v3508_v19 = vpop.eup %3507  ;;  %v3237_v56 = vmul.f32 -1.442695, %v919_v57  ;;  %v3234_v25 = vmul.f32 -1.442695, %v910_v44 }
 0x398   :  { %v4595_v41 = vadd.f32 1.0, %v3508_v19  ;;  %v3510_v13 = vpop.eup %3509 }
 0x399   :  { %3511 = vpow2.f32 %v3237_v56  ;;  %v673_v56 = vld [vmem:[%s6146_s7 + $0x28] sm:$0xff]  ;;  %v4610_v46 = vadd.f32 1.0, %v3510_v13 }
 0x39a   :  { %3513 = vrcp.f32 %v4595_v41  ;;  %v901_v31 = vadd.f32 %v900_v8, %v673_v56  ;;  %v677_v8 = vld [vmem:[%s6146_s7 + $0x48] sm:$0xff]  ;;  %vm1152_vm5 = vweird.f32 %v4595_v41 }
 0x39b   :  { %3515 = vpow2.f32 %v3233_v1 }
 0x39c   :  { %v921_v17 = vpop.f32.mrf.mxu2  ;;  %3517 = vpow2.f32 %v3226_v12  ;;  %v681_v12 = vld [vmem:[%s6146_s7 + $0x68] sm:$0xff] }
 0x39d   :  { %v922_v7 = vadd.f32 %v921_v17, %v680_v3  ;;  %3519 = vpow2.f32 %v3230_v2  ;;  %v3231_v3 = vmul.f32 -1.442695, %v901_v31  ;;  %v1158_v2 = vand.u32 2147483648, %v4595_v41 }
 0x39e   :  { %3521 = vpow2.f32 %v3228_v53  ;;  %v1156_v17 = vand.u32 2147483647, %v4595_v41 }
 0x39f   :  { %v3512_v22 = vpop.eup %3511  ;;  %v3238_v33 = vmul.f32 -1.442695, %v922_v7 }
 0x3a0   :  { %v3514_v57 = vpop.eup %3513  ;;  %v4612_v63 = vadd.f32 1.0, %v3512_v22  ;;  %v913_v22 = vadd.f32 %v4571_v27, %v677_v8  ;;  %vm1157_vm7 = vcmp.eq.f32.partialorder %v1156_v17, 8.507059e+37 }
 0x3a1   :  { %3523 = vpow2.f32 %v3238_v33  ;;  %v1148_v62 = vmul.f32 %v3514_v57, %v4595_v41  ;;  %v3516_v1 = vpop.eup %3515  ;;  %vm1153_vm4 = vweird.f32 %v3514_v57  ;;  %v682_v41 = vld [vmem:[%s6146_s7 + $0x70] sm:$0xff] }
 0x3a2   :  { %3525 = vrcp.f32 %v4612_v63  ;;  %v3518_v19 = vpop.eup %3517  ;;  %v4625_v7 = vadd.f32 1.0, %v3516_v1  ;;  %vm1154_vm6 = vmor %vm1152_vm5, %vm1153_vm4  ;;  %vm1167_vm9 = vweird.f32 %v4612_v63 }
 0x3a3   :  { %3527 = vrcp.f32 %v4610_v46  ;;  %v1149_v4 = vsub.f32 1.0, %v1148_v62  ;;  %v3520_v13 = vpop.eup %3519 }
 0x3a4   :  { %3529 = vpow2.f32 %v3234_v25  ;;  %v924_v61 = vpop.f32.mrf.mxu2  ;;  %v3522_v56 = vpop.eup %3521  ;;  %v4629_v62 = vadd.f32 1.0, %v3520_v13 }
 0x3a5   :  { %v925_v53 = vadd.f32 %v924_v61, %v681_v12  ;;  %v1150_v44 = vmul.f32 %v3514_v57, %v1149_v4  ;;  %3531 = vpow2.f32 %v3229_v20  ;;  %v1159_v4 = vor.u32 1.1754944e-38, %v1158_v2 }
 0x3a6   :  { %3533 = vpow2.f32 %v3231_v3  ;;  %v674_v3 = vld [vmem:[%s6146_s7 + $0x30] sm:$0xff]  ;;  %v3235_v2 = vmul.f32 -1.442695, %v913_v22 }
 0x3a7   :  { %v3524_v28 = vpop.eup %3523  ;;  %v3239_v33 = vmul.f32 -1.442695, %v925_v53  ;;  %v1151_v31 = vadd.f32 %v3514_v57, %v1150_v44  ;;  %v4644_v44 = vadd.f32 1.0, %v3522_v56  ;;  %v904_v58 = vadd.f32 %v4569_v47, %v674_v3 }
 0x3a8   :  { %v3526_v25 = vpop.eup %3525  ;;  %v4631_v12 = vadd.f32 1.0, %v3524_v28  ;;  %v1173_v28 = vand.u32 2147483648, %v4612_v63 }
 0x3a9   :  { %v4633_v61 = vpop.eup %3527  ;;  %3535 = vpow2.f32 %v3239_v33  ;;  %v1155_v20 = vsel %vm1154_vm6, %v3514_v57, %v1151_v31  ;;  %v1163_v1 = vmul.f32 %v3526_v25, %v4612_v63  ;;  %vm1168_vm8 = vweird.f32 %v3526_v25 }
 0x3aa   :  { %v3530_v27 = vpop.eup %3529  ;;  %3537 = vrcp.f32 %v4631_v12  ;;  %v1160_v8 = vsel %vm1157_vm7, %v1159_v4, %v1155_v20  ;;  %v1171_v4 = vand.u32 2147483647, %v4612_v63  ;;  %v1013_v56 = vmul.f32 %v4633_v61, %v4610_v46  ;;  %vm1169_vm10 = vmor %vm1167_vm9, %vm1168_vm8 }
 0x3ab   :  { %3539 = vrcp.f32 %v4625_v7  ;;  %v3252_v13 = vadd.f32 -0.5, %v1160_v8  ;;  %v1164_v57 = vsub.f32 1.0, %v1163_v1  ;;  %v3532_v53 = vpop.eup %3531  ;;  %v4650_v22 = vadd.f32 1.0, %v3530_v27 }
 0x3ac   :  { %3541 = vrcp.f32 %v4629_v62  ;;  %v927_v17 = vpop.f32.mrf.mxu2  ;;  %v3534_v20 = vpop.eup %3533  ;;  %v1174_v47 = vor.u32 1.1754944e-38, %v1173_v28  ;;  %vm1172_vm11 = vcmp.eq.f32.partialorder %v1171_v4, 8.507059e+37  ;;  %v3232_v63 = vmul.f32 -1.442695, %v904_v58 }
 0x3ad   :  { %v928_v33 = vadd.f32 %v927_v17, %v682_v41  ;;  %1535 = vperm.xlu2 %3430, %v3252_v13   ;;  %v1165_v31 = vmul.f32 %v3526_v25, %v1164_v57  ;;  %3543 = vpow2.f32 %v3235_v2  ;;  %v4655_v13 = vadd.f32 1.0, %v3518_v19  ;;  %v683_v19 = vld [vmem:[%s6146_s7 + $0x78] sm:$0xff] }
 0x3ae   :  { %3545 = vrcp.f32 %v4644_v44  ;;  %v1188_v4 = vand.u32 2147483648, %v4631_v12  ;;  %vm1182_vm13 = vweird.f32 %v4631_v12  ;;  %vm1062_vm6 = vweird.f32 %v4629_v62 }
 0x3af   :  { %v3536_v1 = vpop.eup %3535  ;;  %v3240_v8 = vmul.f32 -1.442695, %v928_v33  ;;  %v1166_v51 = vadd.f32 %v3526_v25, %v1165_v31  ;;  %v1014_v31 = vsub.f32 1.0, %v1013_v56  ;;  %vm1107_vm8 = vweird.f32 %v4625_v7 }
 0x3b0   :  { %v3538_v41 = vpop.eup %3537  ;;  %v4658_v57 = vadd.f32 1.0, %v3536_v1  ;;  %v4670_v1 = vadd.f32 1.0, %v3534_v20  ;;  %v1186_v20 = vand.u32 2147483647, %v4631_v12 }
 0x3b1   :  { %v4661_v27 = vpop.eup %3539  ;;  %3547 = vpow2.f32 %v3240_v8  ;;  %v1170_v3 = vsel %vm1169_vm10, %v3526_v25, %v1166_v51  ;;  %v1178_v2 = vmul.f32 %v3538_v41, %v4631_v12  ;;  %vm1183_vm12 = vweird.f32 %v3538_v41 }
 0x3b2   :  { %v4664_v17 = vpop.eup %3541  ;;  %3549 = vrcp.f32 %v4658_v57  ;;  %v1175_v33 = vsel %vm1172_vm11, %v1174_v47, %v1170_v3  ;;  %v1103_v58 = vmul.f32 %v4661_v27, %v4625_v7  ;;  %v4680_v47 = vadd.f32 1.0, %v3532_v53  ;;  %vm1184_vm14 = vmor %vm1182_vm13, %vm1183_vm12 }
 0x3b3   :  { %3551 = vrcp.f32 %v4650_v22  ;;  %v3253_v28 = vadd.f32 -0.5, %v1175_v33  ;;  %v1179_v51 = vsub.f32 1.0, %v1178_v2  ;;  %v3544_v8 = vpop.eup %3543  ;;  %v1058_v3 = vmul.f32 %v4664_v17, %v4629_v62 }
 0x3b4   :  { %3553 = vrcp.f32 %v4655_v13  ;;  %v930_v25 = vpop.f32.mrf.mxu2  ;;  %v4678_v56 = vpop.eup %3545  ;;  %v1015_v2 = vmul.f32 %v4633_v61, %v1014_v31  ;;  %v1189_v53 = vor.u32 1.1754944e-38, %v1188_v4  ;;  %vm1187_vm15 = vcmp.eq.f32.partialorder %v1186_v20, 8.507059e+37 }
 0x3b5   :  { %v931_v49 = vadd.f32 %v930_v25, %v683_v19  ;;  %1540 = vperm.xlu0 %3428, %v3253_v28   ;;  %v1180_v59 = vmul.f32 %v3538_v41, %v1179_v51  ;;  %3555 = vpow2.f32 %v3232_v63  ;;  %v4687_v51 = vadd.f32 1.0, %v3544_v8 }
 0x3b6   :  { %3557 = vrcp.f32 %v4670_v1  ;;  %v1104_v63 = vsub.f32 1.0, %v1103_v58  ;;  %v1059_v12 = vsub.f32 1.0, %v1058_v3  ;;  %v4700_v8 = vmul.f32 %v4678_v56, %v4644_v44 }
 0x3b7   :  { %v3548_v33 = vpop.eup %3547  ;;  %v3241_v9 = vmul.f32 -1.442695, %v931_v49  ;;  %v1181_v19 = vadd.f32 %v3538_v41, %v1180_v59  ;;  %v1203_v20 = vand.u32 2147483648, %v4658_v57  ;;  %vm1197_vm3 = vweird.f32 %v4658_v57 }
 0x3b8   :  { %v3550_v28 = vpop.eup %3549  ;;  %v4689_v25 = vadd.f32 1.0, %v3548_v33  ;;  %v1060_v58 = vmul.f32 %v4664_v17, %v1059_v12  ;;  %vm1108_vm4 = vweird.f32 %v4661_v27  ;;  %vm1063_vm11 = vweird.f32 %v4664_v17 }
 0x3b9   :  { %v4692_v11 = vpop.eup %3551  ;;  %3559 = vpow2.f32 %v3241_v9  ;;  %v1185_v31 = vsel %vm1184_vm14, %v3538_v41, %v1181_v19  ;;  %v1193_v52 = vmul.f32 %v3550_v28, %v4658_v57  ;;  %v1105_v19 = vmul.f32 %v4661_v27, %v1104_v63  ;;  %vm4738_vm9 = vmor %vm1107_vm8, %vm1108_vm4 }
 0x3ba   :  { %v4695_v49 = vpop.eup %3553  ;;  %3561 = vrcp.f32 %v4689_v25  ;;  %v1190_v59 = vsel %vm1187_vm15, %v1189_v53, %v1185_v31  ;;  %v1118_v3 = vmul.f32 %v4692_v11, %v4650_v22  ;;  %vm1198_vm0 = vweird.f32 %v3550_v28  ;;  %vm4767_vm4 = vmor %vm1062_vm6, %vm1063_vm11 }
 0x3bb   :  { %v3254_v33 = vadd.f32 -0.5, %v1190_v59  ;;  %v1194_v4 = vsub.f32 1.0, %v1193_v52  ;;  %v3556_v41 = vpop.eup %3555  ;;  %3563 = vrcp.f32 %v4687_v51  ;;  %v1201_v52 = vand.u32 2147483647, %v4658_v57  ;;  %vm1199_vm5 = vmor %vm1197_vm3, %vm1198_vm0 }
 0x3bc   :  { %v4709_v53 = vpop.eup %3557  ;;  %v4713_v59 = vadd.f32 %v4633_v61, %v1015_v2  ;;  %3565 = vrcp.f32 %v4680_v47  ;;  %v1068_v9 = vand.u32 2147483648, %v4629_v62  ;;  %v4719_v35 = vadd.f32 1.0, %v3556_v41 }
 0x3bd   :  { %1545 = vperm.xlu1 %3429, %v3254_v33   ;;  %v1195_v31 = vmul.f32 %v3550_v28, %v1194_v4  ;;  %v1204_v2 = vor.u32 1.1754944e-38, %v1203_v20  ;;  %v1106_v21 = vadd.f32 %v4661_v27, %v1105_v19  ;;  %v1119_v12 = vsub.f32 1.0, %v1118_v3 }
 0x3be   :  { %vm1202_vm7 = vcmp.eq.f32.partialorder %v1201_v52, 8.507059e+37  ;;  %v1113_v20 = vand.u32 2147483648, %v4625_v7  ;;  %v1216_v36 = vand.u32 2147483647, %v4689_v25  ;;  %v1061_v24 = vadd.f32 %v4664_v17, %v1060_v58 }
 0x3bf   :  { %v3560_v45 = vpop.eup %3559  ;;  %v1196_v26 = vadd.f32 %v3550_v28, %v1195_v31  ;;  %v1073_v31 = vmul.f32 %v4709_v53, %v4670_v1  ;;  %v1120_v63 = vmul.f32 %v4692_v11, %v1119_v12  ;;  %v1069_v6 = vor.u32 1.1754944e-38, %v1068_v9 }
 0x3c0   :  { %v3562_v33 = vpop.eup %3561  ;;  %v4723_v4 = vadd.f32 1.0, %v3560_v45  ;;  %v1114_v30 = vor.u32 1.1754944e-38, %v1113_v20  ;;  %vm1212_vm12 = vweird.f32 %v4689_v25  ;;  %vm1018_vm14 = vweird.f32 %v4633_v61 }
 0x3c1   :  { %v1200_v32 = vsel %vm1199_vm5, %v3550_v28, %v1196_v26  ;;  %v1208_v41 = vmul.f32 %v3562_v33, %v4689_v25  ;;  %v4730_v57 = vpop.eup %3563  ;;  %v1111_v28 = vand.u32 2147483647, %v4625_v7  ;;  %vm1213_vm10 = vweird.f32 %v3562_v33 }
 0x3c2   :  { %3567 = vrcp.f32 %v4723_v4  ;;  %v1205_v45 = vsel %vm1202_vm7, %v1204_v2, %v1200_v32  ;;  %v4743_v52 = vpop.eup %3565  ;;  %v1218_v32 = vand.u32 2147483648, %v4689_v25  ;;  %v1110_v2 = vsel %vm4738_vm9, %v4661_v27, %v1106_v21  ;;  %vm1214_vm15 = vmor %vm1212_vm12, %vm1213_vm10 }
 0x3c3   :  { %3569 = vrcp.f32 %v4719_v35  ;;  %v3255_v19 = vadd.f32 -0.5, %v1205_v45  ;;  %v1209_v3 = vsub.f32 1.0, %v1208_v41  ;;  %v1066_v41 = vand.u32 2147483647, %v4629_v62 }
 0x3c4   :  { %v1133_v7 = vmul.f32 %v4730_v57, %v4687_v51  ;;  %vm1112_vm13 = vcmp.eq.f32.partialorder %v1111_v28, 8.507059e+37  ;;  %v1074_v21 = vsub.f32 1.0, %v1073_v31  ;;  %v1219_v12 = vor.u32 1.1754944e-38, %v1218_v32 }
 0x3c5   :  { %1550 = vperm.xlu2 %3430, %v3255_v19   ;;  %v1210_v45 = vmul.f32 %v3562_v33, %v1209_v3  ;;  %v1115_v19 = vsel %vm1112_vm13, %v1114_v30, %v1110_v2  ;;  %v1121_v3 = vadd.f32 %v4692_v11, %v1120_v63  ;;  %vm1123_vm0 = vweird.f32 %v4692_v11 }
 0x3c6   :  { %vm1217_vm3 = vcmp.eq.f32.partialorder %v1216_v36, 8.507059e+37  ;;  %v1134_v31 = vsub.f32 1.0, %v1133_v7  ;;  %vm1017_vm5 = vweird.f32 %v4610_v46  ;;  %vm1122_vm7 = vweird.f32 %v4650_v22 }
 0x3c7   :  { %v1211_v26 = vadd.f32 %v3562_v33, %v1210_v45  ;;  %v1128_v63 = vand.u32 2147483648, %v4650_v22  ;;  %v1065_v36 = vsel %vm4767_vm4, %v4664_v17, %v1061_v24  ;;  %v3249_v28 = vadd.f32 -0.5, %v1115_v19  ;;  %vm4779_vm6 = vmor %vm1122_vm7, %vm1123_vm0 }
 0x3c8   :  { %v3568_v27 = vpop.eup %3567  ;;  %v1126_v2 = vand.u32 2147483647, %v4650_v22  ;;  %v1233_v45 = vand.u32 2147483648, %v4723_v4  ;;  %v1125_v7 = vsel %vm4779_vm6, %v4692_v11, %v1121_v3  ;;  %v1135_v19 = vmul.f32 %v4730_v57, %v1134_v31  ;;  %vm4806_vm4 = vmor %vm1017_vm5, %vm1018_vm14 }
 0x3c9   :  { %v4760_v20 = vpop.eup %3569  ;;  %v1215_v58 = vsel %vm1214_vm15, %v3562_v33, %v1211_v26  ;;  %v1223_v9 = vmul.f32 %v3568_v27, %v4723_v4  ;;  %v1075_v26 = vmul.f32 %v4709_v53, %v1074_v21  ;;  %vm1228_vm8 = vweird.f32 %v3568_v27 }
 0x3ca   :  { %v1220_v30 = vsel %vm1217_vm3, %v1219_v12, %v1215_v58  ;;  %v1088_v24 = vmul.f32 %v4760_v20, %v4719_v35  ;;  %v1231_v12 = vand.u32 2147483647, %v4723_v4  ;;  %v1129_v22 = vor.u32 1.1754944e-38, %v1128_v63 }
 0x3cb   :  { %v3256_v33 = vadd.f32 -0.5, %v1220_v30  ;;  %v1224_v32 = vsub.f32 1.0, %v1223_v9  ;;  %vm1067_vm9 = vcmp.eq.f32.partialorder %v1066_v41, 8.507059e+37  ;;  %vm1077_vm10 = vweird.f32 %v4670_v1 }
 0x3cc   :  { %vm1078_vm11 = vweird.f32 %v4709_v53  ;;  %vm1227_vm12 = vweird.f32 %v4723_v4  ;;  %vm1127_vm13 = vcmp.eq.f32.partialorder %v1126_v2, 8.507059e+37  ;;  %v1070_v21 = vsel %vm1067_vm9, %v1069_v6, %v1065_v36 }
 0x3cd   :  { %1555 = vperm.xlu0 %3428, %v3256_v33   ;;  %1520 = vperm.xlu2 %3430, %v3249_v28   ;;  %v1225_v17 = vmul.f32 %v3568_v27, %v1224_v32  ;;  %vm1229_vm15 = vmor %vm1227_vm12, %vm1228_vm8  ;;  %v1234_v3 = vor.u32 1.1754944e-38, %v1233_v45  ;;  %v1130_v58 = vsel %vm1127_vm13, %v1129_v22, %v1125_v7  ;;  %v1076_v9 = vadd.f32 %v4709_v53, %v1075_v26 }
 0x3ce   :  { %v1089_v25 = vsub.f32 1.0, %v1088_v24  ;;  %vm1232_vm0 = vcmp.eq.f32.partialorder %v1231_v12, 8.507059e+37  ;;  %v1136_v31 = vadd.f32 %v4730_v57, %v1135_v19  ;;  %vm1138_vm3 = vweird.f32 %v4730_v57  ;;  %vm4816_vm6 = vmor %vm1077_vm10, %vm1078_vm11 }
 0x3cf   :  { %v1226_v11 = vadd.f32 %v3568_v27, %v1225_v17  ;;  %v1143_v63 = vand.u32 2147483648, %v4687_v51  ;;  %v1081_v33 = vand.u32 2147483647, %v4670_v1  ;;  %v1083_v4 = vand.u32 2147483648, %v4670_v1 }
 0x3d0   :  { %v3250_v36 = vadd.f32 -0.5, %v1130_v58  ;;  %vm1137_vm7 = vweird.f32 %v4687_v51  ;;  %v1141_v28 = vand.u32 2147483647, %v4687_v51  ;;  %v3246_v62 = vadd.f32 -0.5, %v1070_v21 }
 0x3d1   :  { %v1230_v30 = vsel %vm1229_vm15, %v3568_v27, %v1226_v11  ;;  %vm4820_vm8 = vmor %vm1137_vm7, %vm1138_vm3  ;;  %v1020_v45 = vsel %vm4806_vm4, %v4633_v61, %v4713_v59  ;;  %v6305_v51 = vsub.f32 1.0, %v4700_v8  ;;  %v1043_v1 = vmul.f32 %v4743_v52, %v4680_v47 }
 0x3d2   :  { %v1235_v41 = vsel %vm1232_vm0, %v1234_v3, %v1230_v30  ;;  %v1140_v26 = vsel %vm4820_vm8, %v4730_v57, %v1136_v31  ;;  %v1080_v24 = vsel %vm4816_vm6, %v4709_v53, %v1076_v9  ;;  %v1090_v17 = vmul.f32 %v4760_v20, %v1089_v25 }
 0x3d3   :  { %v3257_v27 = vadd.f32 -0.5, %v1235_v41  ;;  %v1030_v7 = vmul.f32 %v4678_v56, %v6305_v51  ;;  %v1144_v61 = vor.u32 1.1754944e-38, %v1143_v63  ;;  %v1084_v8 = vor.u32 1.1754944e-38, %v1083_v4 }
 0x3d4   :  { %v6306_v59 = vand.u32 2147483648, %v4610_v46  ;;  %vm1142_vm14 = vcmp.eq.f32.partialorder %v1141_v28, 8.507059e+37  ;;  %vm1082_vm5 = vcmp.eq.f32.partialorder %v1081_v33, 8.507059e+37  ;;  %v6307_v19 = vand.u32 2147483647, %v4610_v46 }
 0x3d5   :  { %1560 = vperm.xlu1 %3429, %v3257_v27   ;;  %1525 = vperm.xlu0 %3428, %v3250_v36   ;;  %v1145_v22 = vsel %vm1142_vm14, %v1144_v61, %v1140_v26  ;;  %v1085_v11 = vsel %vm1082_vm5, %v1084_v8, %v1080_v24  ;;  %vm1033_vm10 = vweird.f32 %v4678_v56  ;;  %v1091_v53 = vadd.f32 %v4760_v20, %v1090_v17 }
 0x3d6   :  { %1505 = vperm.xlu2 %3430, %v3246_v62   ;;  %v1024_v12 = vor.u32 1.1754944e-38, %v6306_v59  ;;  %vm1022_vm9 = vcmp.eq.f32.partialorder %v6307_v19, 8.507059e+37  ;;  %vm1093_vm11 = vweird.f32 %v4760_v20  ;;  %v1031_v21 = vadd.f32 %v4678_v56, %v1030_v7 }
 0x3d7   :  { %v1044_v3 = vsub.f32 1.0, %v1043_v1  ;;  %v1098_v58 = vand.u32 2147483648, %v4719_v35  ;;  %vm1032_vm12 = vweird.f32 %v4644_v44  ;;  %v1036_v9 = vand.u32 2147483647, %v4644_v44 }
 0x3d8   :  { %v1025_v57 = vsel %vm1022_vm9, %v1024_v12, %v1020_v45  ;;  %v1038_v46 = vand.u32 2147483648, %v4644_v44  ;;  %v3251_v25 = vadd.f32 -0.5, %v1145_v22  ;;  %v3247_v30 = vadd.f32 -0.5, %v1085_v11  ;;  %vm4854_vm15 = vmor %vm1032_vm12, %vm1033_vm10 }
 0x3d9   :  { %vm1092_vm13 = vweird.f32 %v4719_v35  ;;  %v1096_v31 = vand.u32 2147483647, %v4719_v35  ;;  %v3243_v63 = vadd.f32 -0.5, %v1025_v57  ;;  %v998_v33 = vmul.f32 %v4695_v49, %v4655_v13 }
 0x3da   :  { %vm1094_vm0 = vmor %vm1092_vm13, %vm1093_vm11  ;;  %v1035_v44 = vsel %vm4854_vm15, %v4678_v56, %v1031_v21  ;;  %v1045_v6 = vmul.f32 %v4743_v52, %v1044_v3  ;;  %v1099_v35 = vor.u32 1.1754944e-38, %v1098_v58  ;;  %v1039_v27 = vor.u32 1.1754944e-38, %v1038_v46 }
 0x3db   :  { %v1095_v4 = vsel %vm1094_vm0, %v4760_v20, %v1091_v53  ;;  %vm1097_vm3 = vcmp.eq.f32.partialorder %v1096_v31, 8.507059e+37  ;;  %vm1037_vm4 = vcmp.eq.f32.partialorder %v1036_v9, 8.507059e+37  ;;  %vm1048_vm7 = vweird.f32 %v4743_v52 }
 0x3dc   :  { %v1100_v36 = vsel %vm1097_vm3, %v1099_v35, %v1095_v4  ;;  %v1040_v28 = vsel %vm1037_vm4, %v1039_v27, %v1035_v44  ;;  %v1046_v32 = vadd.f32 %v4743_v52, %v1045_v6  ;;  %v999_v62 = vsub.f32 1.0, %v998_v33 }
 0x3dd   :  { %1530 = vperm.xlu1 %3429, %v3251_v25   ;;  %1510 = vperm.xlu0 %3428, %v3247_v30   ;;  %v1053_v20 = vand.u32 2147483648, %v4680_v47  ;;  %v3248_v2 = vadd.f32 -0.5, %v1100_v36  ;;  %v3244_v45 = vadd.f32 -0.5, %v1040_v28  ;;  %vm1047_vm6 = vweird.f32 %v4680_v47 }
 0x3de   :  { %1490 = vperm.xlu2 %3430, %v3243_v63   ;;  %v1051_v56 = vand.u32 2147483647, %v4680_v47  ;;  %vm1049_vm8 = vmor %vm1047_vm6, %vm1048_vm7  ;;  %v1000_v7 = vmul.f32 %v4695_v49, %v999_v62  ;;  %vm1003_vm5 = vweird.f32 %v4695_v49  ;;  %v1008_v17 = vand.u32 2147483648, %v4655_v13 }
 0x3df   :  { %v1050_v51 = vsel %vm1049_vm8, %v4743_v52, %v1046_v32  ;;  %v1054_v1 = vor.u32 1.1754944e-38, %v1053_v20  ;;  %vm1002_vm9 = vweird.f32 %v4655_v13  ;;  %v1006_v47 = vand.u32 2147483647, %v4655_v13 }
 0x3e0   :  { %vm1052_vm14 = vcmp.eq.f32.partialorder %v1051_v56, 8.507059e+37  ;;  %v1001_v24 = vadd.f32 %v4695_v49, %v1000_v7  ;;  %vm1004_vm10 = vmor %vm1002_vm9, %vm1003_vm5  ;;  %v1009_v8 = vor.u32 1.1754944e-38, %v1008_v17  ;;  %v1446_v19 = vsel %vm796_vm2, %v4565_v37, 0.0 }
 0x3e1   :  { %v1055_v26 = vsel %vm1052_vm14, %v1054_v1, %v1050_v51  ;;  %vm1007_vm11 = vcmp.eq.f32.partialorder %v1006_v47, 8.507059e+37  ;;  %v1447_v22 = vsel %vm796_vm2, %v4560_v39, 0.0  ;;  %v1449_v57 = vsel %vm796_vm2, %v4555_v0, 0.0 }
 0x3e2   :  { %v3245_v61 = vadd.f32 -0.5, %v1055_v26  ;;  %v1005_v52 = vsel %vm1004_vm10, %v4695_v49, %v1001_v24  ;;  %v1448_v11 = vadd.f32 %v1447_v22, %v1446_v19  ;;  %v1451_v53 = vsel %vm796_vm2, %v4550_v50, 0.0 }
 0x3e3   :  { %v1010_v59 = vsel %vm1007_vm11, %v1009_v8, %v1005_v52  ;;  %v1453_v21 = vsel %vm796_vm2, %v4543_v40, 0.0  ;;  %v1455_v3 = vsel %vm796_vm2, %v4538_v43, 0.0  ;;  %v1457_v9 = vsel %vm796_vm2, %v4533_v15, 0.0 }
 0x3e4   :  { %v3242_v12 = vadd.f32 -0.5, %v1010_v59  ;;  %v1450_v13 = vadd.f32 %v1449_v57, %v1448_v11  ;;  %v1459_v25 = vsel %vm796_vm2, %v4528_v54, 0.0  ;;  %v1461_v31 = vsel %vm796_vm2, %v4521_v42, 0.0 }
 0x3e5   :  { %1515 = vperm.xlu1 %3429, %v3248_v2   ;;  %1495 = vperm.xlu0 %3428, %v3244_v45   ;;  %v1463_v63 = vsel %vm796_vm2, %v4516_v14, 0.0  ;;  %v1465_v4 = vsel %vm796_vm2, %v4512_v55, 0.0  ;;  %v1467_v6 = vsel %vm796_vm2, %v4508_v60, 0.0  ;;  %v1469_v27 = vsel %vm796_vm2, %v4500_v48, 0.0 }
 0x3e6   :  { %v1452_v49 = vadd.f32 %v1451_v53, %v1450_v13  ;;  %v1471_v28 = vsel %vm796_vm2, %v4494_v23, 0.0  ;;  %v1473_v62 = vsel %vm796_vm2, %v4486_v29, 0.0  ;;  %v1475_v2 = vsel %vm796_vm2, %v4483_v38, 0.0 }
 0x3e8   :  { %v1454_v58 = vadd.f32 %v1453_v21, %v1452_v49 }
 0x3ea   :  { %v1456_v46 = vadd.f32 %v1455_v3, %v1454_v58 }
 0x3ec   :  { %v1458_v30 = vadd.f32 %v1457_v9, %v1456_v46 }
 0x3ed   :  { %1500 = vperm.xlu1 %3429, %v3245_v61  }
 0x3ee   :  { %v1460_v41 = vadd.f32 %v1459_v25, %v1458_v30 }
 0x3f0   :  { %v1462_v33 = vadd.f32 %v1461_v31, %v1460_v41 }
 0x3f2   :  { %v1464_v44 = vadd.f32 %v1463_v63, %v1462_v33 }
 0x3f4   :  { %v1466_v35 = vadd.f32 %v1465_v4, %v1464_v44 }
 0x3f5   :  { %1485 = vperm.xlu1 %3429, %v3242_v12  }
 0x3f6   :  { %v1468_v36 = vadd.f32 %v1467_v6, %v1466_v35 }
 0x3f8   :  { %v1470_v32 = vadd.f32 %v1469_v27, %v1468_v36 }
 0x3fa   :  { %v1472_v20 = vadd.f32 %v1471_v28, %v1470_v32 }
 0x3fc   :  { %v1474_v45 = vadd.f32 %v1473_v62, %v1472_v20 }
 0x3fe   :  { %v1476_v56 = vadd.f32 %v1475_v2, %v1474_v45 }
 0x400   :  { %v1477_v51 = vrot.slane %v1476_v56, 4 }
 0x402   :  { %v1478_v7 = vadd.f32 %v1477_v51, %v1476_v56 }
 0x404   :  { %v1479_v26 = vrot.slane %v1478_v7, 2 }
 0x406   :  { %v1480_v17 = vadd.f32 %v1479_v26, %v1478_v7 }
 0x407   :  { %v1536_v24 = vpop.permute.xlu2 %1535 }
 0x408   :  { %v1481_v52 = vrot.slane %v1480_v17, 1  ;;  %v1573_v25 = vmul.f32 %v1536_v24, %v4512_v55 }
 0x40a   :  { %v1482_v59 = vadd.f32 %v1481_v52, %v1480_v17 }
 0x40c   :  { %v1579_v19 = vmul.f32 0.5, %v1482_v59 }
 0x40e   :  { %v1590_v31 = vadd.f32 %v1579_v19, %v1573_v25 }
 0x41f   :  { %v1551_v8 = vpop.permute.xlu2 %1550 }
 0x420   :  { %v1576_v13 = vmul.f32 %v1551_v8, %v4494_v23 }
 0x422   :  { %v1593_v58 = vadd.f32 %v1579_v19, %v1576_v13 }
 0x427   :  { %v1541_v1 = vpop.permute.xlu0 %1540  ;;  %v1521_v49 = vpop.permute.xlu2 %1520 }
 0x428   :  { %v1574_v9 = vmul.f32 %v1541_v1, %v4508_v60  ;;  %v1570_v63 = vmul.f32 %v1521_v49, %v4528_v54 }
 0x42a   :  { %v1587_v44 = vadd.f32 %v1579_v19, %v1570_v63 }
 0x42f   :  { %v1546_v61 = vpop.permute.xlu1 %1545 }
 0x430   :  { %v1575_v21 = vmul.f32 %v1546_v61, %v4500_v48  ;;  %v1506_v48 = vpop.permute.xlu2 %1505 }
 0x432   :  { %v1592_v30 = vadd.f32 %v1579_v19, %v1575_v21 }
 0x438   :  { %v1491_v36 = vpop.permute.xlu2 %1490 }
 0x43f   :  { %v1556_v47 = vpop.permute.xlu0 %1555 }
 0x440   :  { %v1577_v22 = vmul.f32 %v1556_v47, %v4486_v29  ;;  %v1591_v29 = vadd.f32 %v1579_v19, %v1574_v9 }
 0x442   :  { %v1594_v3 = vadd.f32 %v1579_v19, %v1577_v22 }
 0x447   :  { %v1561_v12 = vpop.permute.xlu1 %1560  ;;  %v1526_v57 = vpop.permute.xlu0 %1525 }
 0x448   :  { %v1578_v11 = vmul.f32 %v1561_v12, %v4483_v38  ;;  %v1571_v41 = vmul.f32 %v1526_v57, %v4521_v42 }
 0x44a   :  { %v1595_v53 = vadd.f32 %v1579_v19, %v1578_v11  ;;  %v1588_v4 = vadd.f32 %v1579_v19, %v1571_v41 }
 0x44c   :  { %1628 = vmatpush.msra.mxu0 %v1595_v53 }
 0x44e   :  { %1629 = vmatpush.msra.mxu0 %v1594_v3 }
 0x44f   :  { %v1531_v46 = vpop.permute.xlu1 %1530  ;;  %v1511_v23 = vpop.permute.xlu0 %1510 }
 0x450   :  { %1630 = vmatpush.msra.mxu0 %v1593_v58  ;;  %v1572_v38 = vmul.f32 %v1531_v46, %v4516_v14  ;;  %v1568_v6 = vmul.f32 %v1511_v23, %v4538_v43  ;;  %v1567_v14 = vmul.f32 %v1506_v48, %v4543_v40 }
 0x452   :  { %1631 = vmatpush.msra.mxu0 %v1592_v30  ;;  %v1589_v33 = vadd.f32 %v1579_v19, %v1572_v38  ;;  %v1585_v27 = vadd.f32 %v1579_v19, %v1568_v6  ;;  %v1584_v28 = vadd.f32 %v1579_v19, %v1567_v14 }
 0x454   :  { %1632 = vmatpush.msra.mxu0 %v1591_v29 }
 0x456   :  { %1633 = vmatpush.msra.mxu0 %v1590_v31 }
 0x457   :  { %v1516_v60 = vpop.permute.xlu1 %1515  ;;  %v1496_v42 = vpop.permute.xlu0 %1495 }
 0x458   :  { %v1569_v55 = vmul.f32 %v1516_v60, %v4533_v15  ;;  %1634 = vmatpush.msra.mxu0 %v1589_v33  ;;  %v1565_v32 = vmul.f32 %v1496_v42, %v4555_v0  ;;  %v1564_v15 = vmul.f32 %v1491_v36, %v4560_v39 }
 0x45a   :  { %1635 = vmatpush.msra.mxu0 %v1588_v4  ;;  %v1586_v35 = vadd.f32 %v1579_v19, %v1569_v55  ;;  %v1582_v43 = vadd.f32 %v1579_v19, %v1565_v32  ;;  %v1581_v40 = vadd.f32 %v1579_v19, %v1564_v15 }
 0x45c   :  { %1636 = vmatpush.msra.mxu0 %v1587_v44 }
 0x45e   :  { %1637 = vmatpush.msra.mxu0 %v1586_v35 }
 0x45f   :  { %v1501_v54 = vpop.permute.xlu1 %1500 }
 0x460   :  { %v1566_v62 = vmul.f32 %v1501_v54, %v4550_v50  ;;  %1638 = vmatpush.msra.mxu0 %v1585_v27 }
 0x462   :  { %v1583_v20 = vadd.f32 %v1579_v19, %v1566_v62  ;;  %1639 = vmatpush.msra.mxu0 %v1584_v28 }
 0x464   :  { %1640 = vmatpush.msra.mxu0 %v1583_v20 }
 0x466   :  { %1641 = vmatpush.msra.mxu0 %v1582_v43 }
 0x467   :  { %v1486_v2 = vpop.permute.xlu1 %1485 }
 0x468   :  { %v1563_v45 = vmul.f32 %v1486_v2, %v4565_v37  ;;  %1642 = vmatpush.msra.mxu0 %v1581_v40 }
 0x46a   :  { %v1580_v56 = vadd.f32 %v1579_v19, %v1563_v45 }
 0x46c   :  { %1643 = vmatpush.msra.mxu0 %v1580_v56 }
 0x46d   :  { %3390 = vmatmul.lmr.bf16.vlgmr.msra.gmra.8.mxu0 }
 0x475   :  { %3391 = vmatmul.lmr.bf16.gmra.8.mxu0 }
 0x47d   :  { %3392 = vmatmul.lmr.bf16.gmra.8.mxu0 }
 0x485   :  { %3393 = vmatmul.lmr.bf16.gmra.8.mxu0 }
 0x48d   :  { %3394 = vmatmul.lmr.bf16.gmra.8.mxu0 }
 0x495   :  { %3395 = vmatmul.lmr.bf16.gmra.8.mxu0 }
 0x49d   :  { %3396 = vmatmul.lmr.bf16.gmra.8.mxu0 }
 0x4a5   :  { %3397 = vmatmul.lmr.bf16.gmra.8.mxu0 }
 0x4ea   :  { %v4926_v50 = vpop.f32.mrf.mxu0 }
 0x4eb   :  { %v1669_v0 = vmax.f32 %v4926_v50, 0.0 }
 0x4ed   :  { %v1677_v37 = vsel %vm796_vm2, %v1669_v0, 0.0 }
 0x4f2   :  { %v4929_v39 = vpop.f32.mrf.mxu0 }
 0x4f3   :  { %v1670_v51 = vmax.f32 %v4929_v39, 0.0 }
 0x4f5   :  { %v1680_v7 = vsel %vm796_vm2, %v1670_v51, 0.0 }
 0x4f6   :  { %v1789_v1 = vadd.f32 %v1680_v7, %v1677_v37 }
 0x4fa   :  { %v4938_v26 = vpop.f32.mrf.mxu0 }
 0x4fb   :  { %v1671_v24 = vmax.f32 %v4938_v26, 0.0 }
 0x4fd   :  { %v1683_v17 = vsel %vm796_vm2, %v1671_v24, 0.0 }
 0x4fe   :  { %v1790_v61 = vadd.f32 %v1789_v1, %v1683_v17 }
 0x502   :  { %v4944_v47 = vpop.f32.mrf.mxu0 }
 0x503   :  { %v1672_v52 = vmax.f32 %v4944_v47, 0.0 }
 0x505   :  { %v1686_v8 = vsel %vm796_vm2, %v1672_v52, 0.0 }
 0x506   :  { %v1791_v59 = vadd.f32 %v1790_v61, %v1686_v8 }
 0x50a   :  { %v4950_v12 = vpop.f32.mrf.mxu0 }
 0x50b   :  { %v1673_v19 = vmax.f32 %v4950_v12, 0.0 }
 0x50d   :  { %v1689_v22 = vsel %vm796_vm2, %v1673_v19, 0.0 }
 0x50e   :  { %v1792_v11 = vadd.f32 %v1791_v59, %v1689_v22 }
 0x512   :  { %v4956_v57 = vpop.f32.mrf.mxu0 }
 0x513   :  { %v1674_v13 = vmax.f32 %v4956_v57, 0.0  ;;  %v6325_v57 = vld [vmem:[#allocation12_spill] sm:$0xff] }
 0x515   :  { %v1692_v53 = vsel %vm796_vm2, %v1674_v13, 0.0 }
 0x516   :  { %1693 = vadd.xlane.f32.xlu1 %v1692_v53  ;;  %v1793_v49 = vadd.f32 %v1792_v11, %v1692_v53 }
 0x51a   :  { %v4962_v21 = vpop.f32.mrf.mxu0 }
 0x51b   :  { %v1675_v3 = vmax.f32 %v4962_v21, 0.0 }
 0x51d   :  { %v1695_v58 = vsel %vm796_vm2, %v1675_v3, 0.0 }
 0x51e   :  { %1684 = vadd.xlane.f32.xlu1 %v1683_v17  ;;  %1696 = vadd.xlane.f32.xlu2 %v1695_v58  ;;  %v1794_v9 = vadd.f32 %v1793_v49, %v1695_v58 }
 0x522   :  { %v4968_v46 = vpop.f32.mrf.mxu0 }
 0x523   :  { %v1676_v25 = vmax.f32 %v4968_v46, 0.0 }
 0x525   :  { %v1698_v30 = vsel %vm796_vm2, %v1676_v25, 0.0 }
 0x526   :  { %1687 = vadd.xlane.f32.xlu2 %v1686_v8  ;;  %1699 = vadd.xlane.f32.xlu0 %v1698_v30  ;;  %v1795_v29 = vadd.f32 %v1794_v9, %v1698_v30 }
 0x528   :  { %v1796_v38 = vrot.slane %v1795_v29, 4 }
 0x52a   :  { %v1797_v23 = vadd.f32 %v1796_v38, %v1795_v29 }
 0x52c   :  { %v1798_v31 = vrot.slane %v1797_v23, 2 }
 0x52e   :  { %1678 = vadd.xlane.f32.xlu2 %v1677_v37  ;;  %1690 = vadd.xlane.f32.xlu0 %v1689_v22  ;;  %v1799_v41 = vadd.f32 %v1798_v31, %v1797_v23 }
 0x530   :  { %v1800_v48 = vrot.slane %v1799_v41, 1 }
 0x532   :  { %v1801_v63 = vadd.f32 %v1800_v48, %v1799_v41 }
 0x534   :  { %v4974_v60 = vadd.f32 1.0, %v1801_v63 }
 0x536   :  { %1681 = vadd.xlane.f32.xlu0 %v1680_v7  ;;  %3571 = vrsqrt.f32 %v4974_v60  ;;  %vm1809_vm14 = vweird.f32 %v4974_v60 }
 0x53c   :  { %v4980_v14 = vpop.eup %3571 }
 0x53d   :  { %v1804_v27 = vmul.f32 %v4980_v14, %v4974_v60  ;;  %vm1810_vm13 = vweird.f32 %v4980_v14 }
 0x53e   :  { %vm1811_vm9 = vmor %vm1809_vm14, %vm1810_vm13 }
 0x53f   :  { %v1805_v43 = vmul.f32 %v4980_v14, %v1804_v27 }
 0x541   :  { %v1806_v37 = vmul.f32 0.5, %v1805_v43 }
 0x543   :  { %v1807_v9 = vsub.f32 1.5, %v1806_v37 }
 0x589   :  { %v1694_v33 = vpop.xlane.xlu1 %1693 }
 0x58a   :  { %v4976_v4 = vadd.f32 1.0, %v1694_v33 }
 0x58c   :  { %3573 = vrsqrt.f32 %v4976_v4  ;;  %vm1765_vm7 = vweird.f32 %v4976_v4 }
 0x591   :  { %v1697_v55 = vpop.xlane.xlu2 %1696  ;;  %v1685_v44 = vpop.xlane.xlu1 %1684 }
 0x592   :  { %v1707_v6 = vadd.f32 1.0, %v1697_v55  ;;  %v4982_v35 = vadd.f32 1.0, %v1685_v44  ;;  %v4984_v42 = vpop.eup %3573  ;;  %v1808_v55 = vmul.f32 %v4980_v14, %v1807_v9 }
 0x593   :  { %v1760_v36 = vmul.f32 %v4984_v42, %v4976_v4  ;;  %vm1766_vm15 = vweird.f32 %v4984_v42 }
 0x594   :  { %3575 = vrsqrt.f32 %v1707_v6  ;;  %vm1775_vm0 = vweird.f32 %v1707_v6  ;;  %vm5038_vm8 = vmor %vm1765_vm7, %vm1766_vm15  ;;  %vm1735_vm15 = vweird.f32 %v4982_v35 }
 0x595   :  { %3577 = vrsqrt.f32 %v4982_v35  ;;  %v1761_v40 = vmul.f32 %v4984_v42, %v1760_v36 }
 0x597   :  { %v1762_v7 = vmul.f32 0.5, %v1761_v40 }
 0x599   :  { %v1688_v54 = vpop.xlane.xlu2 %1687  ;;  %v1700_v28 = vpop.xlane.xlu0 %1699  ;;  %v1763_v30 = vsub.f32 1.5, %v1762_v7 }
 0x59a   :  { %v4991_v32 = vadd.f32 1.0, %v1688_v54  ;;  %v1708_v62 = vadd.f32 1.0, %v1700_v28  ;;  %v4993_v15 = vpop.eup %3575 }
 0x59b   :  { %v1770_v20 = vmul.f32 %v4993_v15, %v1707_v6  ;;  %v5000_v45 = vpop.eup %3577  ;;  %vm1776_vm12 = vweird.f32 %v4993_v15  ;;  %v1764_v63 = vmul.f32 %v4984_v42, %v1763_v30 }
 0x59c   :  { %3579 = vrsqrt.f32 %v4991_v32  ;;  %v1730_v8 = vmul.f32 %v5000_v45, %v4982_v35  ;;  %vm5024_vm3 = vmor %vm1775_vm0, %vm1776_vm12  ;;  %vm1785_vm6 = vweird.f32 %v1708_v62  ;;  %vm1736_vm11 = vweird.f32 %v5000_v45 }
 0x59d   :  { %3581 = vrsqrt.f32 %v1708_v62  ;;  %v1771_v2 = vmul.f32 %v4993_v15, %v1770_v20  ;;  %vm1745_vm12 = vweird.f32 %v4991_v32 }
 0x59e   :  { %v1731_v38 = vmul.f32 %v5000_v45, %v1730_v8 }
 0x59f   :  { %v1772_v56 = vmul.f32 0.5, %v1771_v2 }
 0x5a0   :  { %v1732_v27 = vmul.f32 0.5, %v1731_v38 }
 0x5a1   :  { %v1679_v1 = vpop.xlane.xlu2 %1678  ;;  %v1691_v17 = vpop.xlane.xlu0 %1690  ;;  %v1773_v53 = vsub.f32 1.5, %v1772_v56 }
 0x5a2   :  { %v5002_v61 = vpop.eup %3579  ;;  %v5006_v59 = vadd.f32 1.0, %v1679_v1  ;;  %v5008_v22 = vadd.f32 1.0, %v1691_v17  ;;  %v1768_v1 = vsel %vm5038_vm8, %v4984_v42, %v1764_v63 }
 0x5a3   :  { %v3582_v11 = vpop.eup %3581  ;;  %v1740_v49 = vmul.f32 %v5002_v61, %v4991_v32  ;;  %v1774_v31 = vmul.f32 %v4993_v15, %v1773_v53  ;;  %vm1746_vm10 = vweird.f32 %v5002_v61 }
 0x5a4   :  { %v1780_v58 = vmul.f32 %v3582_v11, %v1708_v62  ;;  %3583 = vrsqrt.f32 %v5006_v59  ;;  %vm1786_vm4 = vweird.f32 %v3582_v11  ;;  %v1733_v62 = vsub.f32 1.5, %v1732_v27  ;;  %vm5064_vm0 = vmor %vm1745_vm12, %vm1746_vm10 }
 0x5a5   :  { %v1741_v29 = vmul.f32 %v5002_v61, %v1740_v49  ;;  %3585 = vrsqrt.f32 %v5008_v22  ;;  %v1778_v43 = vsel %vm5024_vm3, %v4993_v15, %v1774_v31  ;;  %vm1787_vm5 = vmor %vm1785_vm6, %vm1786_vm4  ;;  %vm1755_vm4 = vweird.f32 %v5008_v22 }
 0x5a6   :  { %v1781_v23 = vmul.f32 %v3582_v11, %v1780_v58  ;;  %v1819_v60 = vmul.f32 %v1778_v43, %v1675_v3  ;;  %v1818_v58 = vmul.f32 %v1768_v1, %v1674_v13  ;;  %v1734_v46 = vmul.f32 %v5000_v45, %v1733_v62  ;;  %vm5069_vm3 = vmor %vm1735_vm15, %vm1736_vm11  ;;  %v6320_v62 = vld [vmem:[#allocation10_spill] sm:$0xff]  ;;  %v6323_v1 = vld [vmem:[#allocation7_spill] sm:$0xff] }
 0x5a7   :  { %v1742_v41 = vmul.f32 0.5, %v1741_v29  ;;  %vm1715_vm8 = vweird.f32 %v5006_v59 }
 0x5a8   :  { %v1782_v48 = vmul.f32 0.5, %v1781_v23  ;;  %v1738_v23 = vsel %vm5069_vm3, %v5000_v45, %v1734_v46 }
 0x5a9   :  { %v1682_v33 = vpop.xlane.xlu0 %1681  ;;  %v1743_v2 = vsub.f32 1.5, %v1742_v41 }
 0x5aa   :  { %v5022_v44 = vpop.eup %3583  ;;  %v1783_v54 = vsub.f32 1.5, %v1782_v48  ;;  %v5028_v28 = vadd.f32 1.0, %v1682_v33  ;;  %v1815_v33 = vmul.f32 %v1738_v23, %v1671_v24  ;;  %v6333_v23 = vld [vmem:[#allocation23_spill] sm:$0xff] }
 0x5ab   :  { %v3586_v20 = vpop.eup %3585  ;;  %v1710_v6 = vmul.f32 %v5022_v44, %v5006_v59  ;;  %v1744_v53 = vmul.f32 %v5002_v61, %v1743_v2  ;;  %vm1716_vm6 = vweird.f32 %v5022_v44  ;;  %v684_v2 = vld [vmem:[%s6147_s8] sm:$0xff] }
 0x5ac   :  { %v1784_v56 = vmul.f32 %v3582_v11, %v1783_v54  ;;  %v1750_v37 = vmul.f32 %v3586_v20, %v5008_v22  ;;  %3587 = vrsqrt.f32 %v5028_v28  ;;  %vm1756_vm13 = vweird.f32 %v3586_v20 }
 0x5ad   :  { %v1711_v4 = vmul.f32 %v5022_v44, %v1710_v6  ;;  %v1748_v35 = vsel %vm5064_vm0, %v5002_v61, %v1744_v53  ;;  %vm1757_vm7 = vmor %vm1755_vm4, %vm1756_vm13 }
 0x5ae   :  { %v1751_v7 = vmul.f32 %v3586_v20, %v1750_v37  ;;  %v1788_v15 = vsel %vm1787_vm5, %v3582_v11, %v1784_v56  ;;  %v1812_v11 = vsel %vm1811_vm9, %v4980_v14, %v1808_v55  ;;  %v1816_v61 = vmul.f32 %v1748_v35, %v1672_v52  ;;  %vm1717_vm5 = vmor %vm1715_vm8, %vm1716_vm6  ;;  %v6318_v56 = vld [vmem:[#allocation6_spill] sm:$0xff]  ;;  %v6319_v37 = vld [vmem:[#allocation8_spill] sm:$0xff] }
 0x5af   :  { %v1712_v17 = vmul.f32 0.5, %v1711_v4  ;;  %v1820_v8 = vmul.f32 %v1788_v15, %v1676_v25  ;;  %v1827_v30 = vmul.f32 %v1819_v60, %v1812_v11  ;;  %v1826_v29 = vmul.f32 %v1818_v58, %v1812_v11  ;;  %v685_v4 = vld [vmem:[%s6147_s8 + $0x8] sm:$0xff]  ;;  %v6330_v35 = vld [vmem:[#allocation18_spill] sm:$0xff] }
 0x5b0   :  { %v1752_v49 = vmul.f32 0.5, %v1751_v7  ;;  %vm1725_vm9 = vweird.f32 %v5028_v28  ;;  %v1824_v55 = vmul.f32 %v1816_v61, %v1812_v11  ;;  %v1823_v47 = vmul.f32 %v1815_v33, %v1812_v11  ;;  %v6321_v7 = vld [vmem:[#allocation13_spill] sm:$0xff]  ;;  %v6322_v15 = vld [vmem:[#allocation11_spill] sm:$0xff]  ;;  %v6339_v33 = vld [vmem:[#allocation26_spill] sm:$0xff] }
 0x5b1   :  { %v1828_v42 = vmul.f32 %v1820_v8, %v1812_v11  ;;  %v1713_v25 = vsub.f32 1.5, %v1712_v17  ;;  %v6324_v17 = vld [vmem:[#allocation9_spill] sm:$0xff] }
 0x5b2   :  { %v3588_v9 = vpop.eup %3587  ;;  %v1753_v21 = vsub.f32 1.5, %v1752_v49  ;;  %v687_v8 = vld [vmem:[%s6147_s8 + $0x18] sm:$0xff] }
 0x5b3   :  { %v1720_v14 = vmul.f32 %v3588_v9, %v5028_v28  ;;  %1854 = vmatpush.msra.mxu1 %v1828_v42  ;;  %v1714_v31 = vmul.f32 %v5022_v44, %v1713_v25  ;;  %vm1726_vm14 = vweird.f32 %v3588_v9 }
 0x5b4   :  { %v1754_v13 = vmul.f32 %v3586_v20, %v1753_v21  ;;  %vm1727_vm10 = vmor %vm1725_vm9, %vm1726_vm14 }
 0x5b5   :  { %v1721_v32 = vmul.f32 %v3588_v9, %v1720_v14  ;;  %1855 = vmatpush.msra.mxu1 %v1827_v30  ;;  %v1718_v12 = vsel %vm1717_vm5, %v5022_v44, %v1714_v31  ;;  %v688_v30 = vld [vmem:[%s6148_s9] sm:$0xff]  ;;  %v6334_v31 = vld [vmem:[#allocation32_spill] sm:$0xff] }
 0x5b6   :  { %v1758_v38 = vsel %vm1757_vm7, %v3586_v20, %v1754_v13  ;;  %v1813_v59 = vmul.f32 %v1718_v12, %v1669_v0  ;;  %v6327_v13 = vld [vmem:[#allocation17_spill] sm:$0xff] }
 0x5b7   :  { %v1722_v41 = vmul.f32 0.5, %v1721_v32  ;;  %1856 = vmatpush.msra.mxu1 %v1826_v29  ;;  %v1817_v22 = vmul.f32 %v1758_v38, %v1673_v19  ;;  %v6331_v32 = vld [vmem:[#allocation15_spill] sm:$0xff]  ;;  %v6332_v29 = vld [vmem:[#allocation16_spill] sm:$0xff]  ;;  %v6342_v12 = vld [vmem:[#allocation37_spill] sm:$0xff] }
 0x5b8   :  { %v1821_v24 = vmul.f32 %v1813_v59, %v1812_v11  ;;  %v6346_v59 = vld [vmem:[#allocation39_spill] sm:$0xff] }
 0x5b9   :  { %v1723_v48 = vsub.f32 1.5, %v1722_v41  ;;  %v1825_v63 = vmul.f32 %v1817_v22, %v1812_v11  ;;  %v6335_v41 = vld [vmem:[#allocation24_spill] sm:$0xff]  ;;  %v6336_v22 = vld [vmem:[#allocation34_spill] sm:$0xff] }
 0x5bb   :  { %v1724_v45 = vmul.f32 %v3588_v9, %v1723_v48  ;;  %1857 = vmatpush.msra.mxu1 %v1825_v63  ;;  %v6337_v48 = vld [vmem:[#allocation25_spill] sm:$0xff]  ;;  %v6338_v63 = vld [vmem:[#allocation35_spill] sm:$0xff] }
 0x5bd   :  { %1858 = vmatpush.msra.mxu1 %v1824_v55  ;;  %v1728_v52 = vsel %vm1727_vm10, %v3588_v9, %v1724_v45  ;;  %v6340_v45 = vld [vmem:[#allocation36_spill] sm:$0xff]  ;;  %v6341_v55 = vld [vmem:[#allocation27_spill] sm:$0xff] }
 0x5be   :  { %v1814_v19 = vmul.f32 %v1728_v52, %v1670_v51  ;;  %v1829_v51 = vmul.f32 %v1812_v11, %v1812_v11  ;;  %v6344_v52 = vld [vmem:[#allocation38_spill] sm:$0xff] }
 0x5bf   :  { %1859 = vmatpush.msra.mxu1 %v1823_v47  ;;  %v6343_v47 = vld [vmem:[#allocation28_spill] sm:$0xff] }
 0x5c0   :  { %v1822_v26 = vmul.f32 %v1814_v19, %v1812_v11  ;;  %v1833_v44 = vmul.f32 %v1829_v51, %v4136_v34  ;;  %v1832_v36 = vmul.f32 %v1829_v51, %v4138_v5  ;;  %v1831_v28 = vmul.f32 %v1829_v51, %v4126_v18  ;;  %v6345_v19 = vld [vmem:[#allocation29_spill] sm:$0xff] }
 0x5c1   :  { %v1830_v6 = vmul.f32 %v1829_v51, %v4124_v16  ;;  %v6351_v51 = vld [vmem:[#allocation53_spill] sm:$0xff] }
 0x5c2   :  { %1860 = vmatpush.msra.mxu1 %v1822_v26  ;;  %v6347_v26 = vld [vmem:[#allocation30_spill] sm:$0xff] }
 0x5c4   :  { %1861 = vmatpush.msra.mxu1 %v1821_v24  ;;  %v6348_v24 = vld [vmem:[#allocation40_spill] sm:$0xff] }
 0x5c5   :  { %3274 = vmatmul.msk.f32.vlgmr.msra.gmra.mxu1 %vm796_vm2, %v4124_v16 }
 0x5cd   :  { %3275 = vmatmul.msk.f32.gmra.mxu1 %vm796_vm2, %v4126_v18 }
 0x5d5   :  { %3276 = vmatmul.msk.f32.gmra.mxu1 %vm796_vm2, %v4138_v5 }
 0x5dd   :  { %3277 = vmatmul.msk.f32.gmra.mxu1 %vm796_vm2, %v4136_v34 }
 0x642   :  { %v1863_v39 = vpop.f32.mrf.mxu1 }
 0x643   :  { %v1864_v40 = vadd.f32 %v1863_v39, %v1830_v6  ;;  %v6349_v39 = vld [vmem:[#allocation5_spill] sm:$0xff] }
 0x64a   :  { %v1866_v50 = vpop.f32.mrf.mxu1 }
 0x64b   :  { %v1867_v43 = vadd.f32 %v1866_v50, %v1831_v28  ;;  %v6350_v50 = vld [vmem:[#allocation33_spill] sm:$0xff]  ;;  %v6354_v28 = vld [vmem:[#allocation2_spill] sm:$0xff] }
 0x652   :  { %v1869_v0 = vpop.f32.mrf.mxu1 }
 0x653   :  { %v1870_v20 = vadd.f32 %v1869_v0, %v1832_v36  ;;  %v606_v0 = vmul.f32 %v6350_v50, %v6349_v39  ;;  %v6353_v36 = vld [vmem:[#allocation3_spill] sm:$0xff]  ;;  %v3681_v39 = vld [vmem:[%s6143_s4 + $0x40] sm:$0xff] }
 0x65a   :  { %v1872_v27 = vpop.f32.mrf.mxu1 }
 0x65b   :  { %v1873_v54 = vadd.f32 %v1872_v27, %v1833_v44  ;;  %v6352_v44 = vld [vmem:[#allocation4_spill] sm:$0xff] }
 0x65c   :  { %v610_v27 = vmul.f32 %v6350_v50, %v6352_v44  ;;  %v3683_v44 = vld [vmem:[%s6143_s4 + $0x50] sm:$0xff] }
 0x65d   :  { %1899 = vmatpush.msra.mxu1 %v1873_v54  ;;  %v614_v54 = vmul.f32 %v6350_v50, %v6353_v36  ;;  %v3685_v36 = vld [vmem:[%s6143_s4 + $0x60] sm:$0xff] }
 0x65f   :  { %1900 = vmatpush.msra.mxu1 %v1870_v20  ;;  %v618_v20 = vmul.f32 %v6350_v50, %v6354_v28 }
 0x661   :  { %1901 = vmatpush.msra.mxu1 %v1867_v43 }
 0x663   :  { %1902 = vmatpush.msra.mxu1 %v1864_v40 }
 0x664   :  { %3278 = vmatmul.msk.f32.vlgmr.msra.gmra.mxu1 %vm211_vm1, %v684_v2 }
 0x665   :  { %1967 = vmatpush.msra.mxu1 %v3985_v10  ;;  %v686_v10 = vld [vmem:[%s6147_s8 + $0x10] sm:$0xff] }
 0x667   :  { %1968 = vmatpush.msra.mxu1 %v6318_v56  ;;  %v2077_v56 = vpop.f32.mrf.mxu2 }
 0x669   :  { %1969 = vmatpush.msra.mxu1 %v6319_v37  ;;  %v2106_v37 = vpop.f32.mrf.mxu3 }
 0x66b   :  { %1970 = vmatpush.msra.mxu1 %v6320_v62 }
 0x66c   :  { %3279 = vmatmul.msk.f32.gmra.mxu1 %vm211_vm1, %v685_v4  ;;  %v2107_v4 = vadd.f32 1e-06, %v2106_v37 }
 0x66d   :  { %1971 = vmatpush.msra.mxu1 %v6321_v7 }
 0x66f   :  { %1972 = vmatpush.msra.mxu1 %v6322_v15 }
 0x671   :  { %1973 = vmatpush.msra.mxu1 %v6323_v1  ;;  %v2080_v1 = vpop.f32.mrf.mxu2 }
 0x673   :  { %1974 = vmatpush.msra.mxu1 %v6324_v17 }
 0x674   :  { %3280 = vmatmul.msk.f32.gmra.mxu1 %vm211_vm1, %v686_v10 }
 0x67c   :  { %3281 = vmatmul.msk.f32.gmra.mxu1 %vm211_vm1, %v687_v8 }
 0x6e1   :  { %v1904_v60 = vpop.f32.mrf.mxu1 }
 0x6e2   :  { %v1916_v21 = vmax.f32 %v1904_v60, 0.0 }
 0x6e4   :  { %v1920_v14 = vadd.f32 %v1916_v21, %v4124_v16  ;;  %v6329_v16 = vld [vmem:[#allocation19_spill] sm:$0xff] }
 0x6e9   :  { %v1907_v53 = vpop.f32.mrf.mxu1 }
 0x6ea   :  { %v1917_v9 = vmax.f32 %v1907_v53, 0.0 }
 0x6ec   :  { %v1921_v25 = vadd.f32 %v1917_v9, %v4126_v18  ;;  %v689_v18 = vld [vmem:[%s6148_s9 + $0x8] sm:$0xff] }
 0x6f1   :  { %v1910_v49 = vpop.f32.mrf.mxu1 }
 0x6f2   :  { %v1918_v42 = vmax.f32 %v1910_v49, 0.0  ;;  %v2083_v49 = vpop.f32.mrf.mxu2 }
 0x6f4   :  { %v1922_v3 = vadd.f32 %v1918_v42, %v4138_v5  ;;  %v6328_v5 = vld [vmem:[#allocation20_spill] sm:$0xff] }
 0x6f9   :  { %v1913_v11 = vpop.f32.mrf.mxu1 }
 0x6fa   :  { %v1919_v58 = vmax.f32 %v1913_v11, 0.0  ;;  %v2086_v21 = vpop.f32.mrf.mxu2 }
 0x6fc   :  { %v1923_v46 = vadd.f32 %v1919_v58, %v4136_v34  ;;  %v6326_v34 = vld [vmem:[#allocation14_spill] sm:$0xff] }
 0x6fe   :  { %1942 = vmatpush.msra.mxu0 %v1923_v46 }
 0x700   :  { %1943 = vmatpush.msra.mxu0 %v1922_v3 }
 0x702   :  { %1944 = vmatpush.msra.mxu0 %v1921_v25 }
 0x704   :  { %1945 = vmatpush.msra.mxu0 %v1920_v14 }
 0x705   :  { %3282 = vmatmul.msk.f32.vlgmr.msra.gmra.mxu0 %vm211_vm1, %v688_v30 }
 0x706   :  { %1990 = vmatpush.msra.mxu0 %v6325_v57 }
 0x708   :  { %1991 = vmatpush.msra.mxu0 %v6326_v34 }
 0x70a   :  { %1992 = vmatpush.msra.mxu0 %v6327_v13  ;;  %v3673_v13 = vld [vmem:[%s6143_s4] sm:$0xff] }
 0x70c   :  { %1993 = vmatpush.msra.mxu0 %v6328_v5  ;;  %v3674_v5 = vld [vmem:[%s6143_s4 + $0x8] sm:$0xff] }
 0x70d   :  { %3283 = vmatmul.msk.f32.gmra.mxu0 %vm211_vm1, %v689_v18 }
 0x70e   :  { %1994 = vmatpush.msra.mxu0 %v6329_v16  ;;  %v3675_v16 = vld [vmem:[%s6143_s4 + $0x10] sm:$0xff] }
 0x710   :  { %1995 = vmatpush.msra.mxu0 %v6330_v35  ;;  %v3676_v35 = vld [vmem:[%s6143_s4 + $0x18] sm:$0xff] }
 0x712   :  { %1996 = vmatpush.msra.mxu0 %v6331_v32  ;;  %v3677_v32 = vld [vmem:[%s6143_s4 + $0x20] sm:$0xff] }
 0x714   :  { %1997 = vmatpush.msra.mxu0 %v6332_v29  ;;  %v3678_v29 = vld [vmem:[%s6143_s4 + $0x28] sm:$0xff] }
 0x782   :  { %v1947_v38 = vpop.f32.mrf.mxu0 }
 0x783   :  { %3284 = vmatmul.msk.f32.vlgmr.msra.gmra.mxu1 %vm796_vm2, %v1947_v38  ;;  %3286 = vmatmul.msk.f32.vlgmr.msra.gmra.mxu0 %vm796_vm2, %v1947_v38  ;;  %v3679_v38 = vld [vmem:[%s6143_s4 + $0x30] sm:$0xff] }
 0x784   :  { %2039 = vmatpush.xpose.msra.mxu1 %v6333_v23  ;;  %2117 = vmatpush.xpose.msra.mxu0 %v6334_v31 }
 0x788   :  { %2040 = vmatpush.xpose.msra.mxu1 %v6335_v41  ;;  %2118 = vmatpush.xpose.msra.mxu0 %v6336_v22 }
 0x78a   :  { %v1950_v61 = vpop.f32.mrf.mxu0 }
 0x78b   :  { %3285 = vmatmul.msk.f32.gmra.mxu1 %vm796_vm2, %v1950_v61  ;;  %3287 = vmatmul.msk.f32.gmra.mxu0 %vm796_vm2, %v1950_v61  ;;  %v3680_v61 = vld [vmem:[%s6143_s4 + $0x38] sm:$0xff] }
 0x78c   :  { %2041 = vmatpush.xpose.msra.mxu1 %v6337_v48  ;;  %2119 = vmatpush.xpose.msra.mxu0 %v6338_v63 }
 0x790   :  { %2042 = vmatpush.xpose.msra.mxu1 %v6339_v33  ;;  %2120 = vmatpush.xpose.msra.mxu0 %v6340_v45 }
 0x794   :  { %2043 = vmatpush.xpose.msra.mxu1 %v6341_v55  ;;  %2121 = vmatpush.xpose.msra.mxu0 %v6342_v12 }
 0x798   :  { %2044 = vmatpush.xpose.msra.mxu1 %v6343_v47  ;;  %2122 = vmatpush.xpose.msra.mxu0 %v6344_v52 }
 0x79c   :  { %2045 = vmatpush.xpose.msra.mxu1 %v6345_v19  ;;  %2123 = vmatpush.xpose.msra.mxu0 %v6346_v59 }
 0x7a0   :  { %2046 = vmatpush.xpose.msra.mxu1 %v6347_v26  ;;  %2124 = vmatpush.xpose.msra.mxu0 %v6348_v24  ;;  %v3719_v24 = vld [vmem:[%s6146_s7 + $0x70] sm:$0xff] }
 0x7a3   :  { %2047 = vmatmul.f32.vlgmr.msra.gmra.mxu1 %v606_v0  ;;  %2125 = vmatmul.f32.vlgmr.msra.gmra.mxu0 %v6351_v51  ;;  %v3682_v0 = vld [vmem:[%s6143_s4 + $0x48] sm:$0xff] }
 0x7ab   :  { %2050 = vmatmul.f32.gmra.mxu1 %v610_v27  ;;  %v3684_v27 = vld [vmem:[%s6143_s4 + $0x58] sm:$0xff] }
 0x7b3   :  { %2053 = vmatmul.f32.gmra.mxu1 %v614_v54  ;;  %v3686_v54 = vld [vmem:[%s6143_s4 + $0x68] sm:$0xff] }
 0x7bb   :  { %2056 = vmatmul.f32.gmra.mxu1 %v618_v20 }
 0x800   :  { %v5180_v6 = vpop.f32.mrf.mxu1  ;;  %v5182_v43 = vpop.f32.mrf.mxu0 }
 0x801   :  { %6355 = vst [vmem:[#allocation6_spill] sm:$0xff] %v5180_v6 }
 0x802   :  { %6356 = vst [vmem:[#allocation8_spill] sm:$0xff] %v5182_v43 }
 0x808   :  { %v5184_v40 = vpop.f32.mrf.mxu1  ;;  %v5186_v2 = vpop.f32.mrf.mxu0 }
 0x809   :  { %6357 = vst [vmem:[#allocation10_spill] sm:$0xff] %v5184_v40 }
 0x80a   :  { %6358 = vst [vmem:[#allocation13_spill] sm:$0xff] %v5186_v2 }
 0x820   :  { %v2048_v62 = vpop.f32.mrf.mxu1  ;;  %v2126_v7 = vpop.f32.mrf.mxu0 }
 0x821   :  { %v2127_v15 = vadd.f32 %v2126_v7, %v2107_v4  ;;  %v2078_v57 = vadd.f32 %v2077_v56, %v2048_v62  ;;  %v6363_v56 = vld [vmem:[#allocation31_spill] sm:$0xff]  ;;  %v3687_v7 = vld [vmem:[%s6143_s4 + $0x70] sm:$0xff] }
 0x823   :  { %3589 = vrcp.f32 %v2127_v15 }
 0x828   :  { %v2051_v10 = vpop.f32.mrf.mxu1 }
 0x829   :  { %v3590_v17 = vpop.eup %3589  ;;  %v2081_v8 = vadd.f32 %v2080_v1, %v2051_v10 }
 0x82a   :  { %v2130_v60 = vperm.slane %v3590_v17, 0  ;;  %v3688_v17 = vld [vmem:[%s6143_s4 + $0x78] sm:$0xff] }
 0x82c   :  { %v5188_v53 = vmul.f32 %v2130_v60, %v2081_v8  ;;  %v5202_v34 = vmul.f32 %v2130_v60, %v2078_v57  ;;  %v3689_v8 = vld [vmem:[%s6145_s6] sm:$0xff] }
 0x82e   :  { %6359 = vst [vmem:[#allocation11_spill] sm:$0xff] %v5188_v53  ;;  %v2138_v11 = vsel %vm796_vm2, %v5188_v53, 0.0  ;;  %v2135_v18 = vsel %vm796_vm2, %v5202_v34, 0.0 }
 0x82f   :  { %2139 = vadd.xlane.f32.xlu2 %v2138_v11  ;;  %6362 = vst [vmem:[#allocation12_spill] sm:$0xff] %v5202_v34 }
 0x830   :  { %v2054_v42 = vpop.f32.mrf.mxu1 }
 0x831   :  { %v2084_v58 = vadd.f32 %v2083_v49, %v2054_v42  ;;  %v3690_v49 = vld [vmem:[%s6145_s6 + $0x8] sm:$0xff]  ;;  %v3691_v42 = vld [vmem:[%s6145_s6 + $0x10] sm:$0xff] }
 0x833   :  { %v5192_v9 = vmul.f32 %v2130_v60, %v2084_v58 }
 0x835   :  { %6360 = vst [vmem:[#allocation7_spill] sm:$0xff] %v5192_v9  ;;  %v2141_v46 = vsel %vm796_vm2, %v5192_v9, 0.0 }
 0x836   :  { %2142 = vadd.xlane.f32.xlu0 %v2141_v46  ;;  %v3692_v46 = vld [vmem:[%s6145_s6 + $0x18] sm:$0xff] }
 0x838   :  { %v2057_v3 = vpop.f32.mrf.mxu1 }
 0x839   :  { %v2087_v25 = vadd.f32 %v2086_v21, %v2057_v3  ;;  %v3693_v3 = vld [vmem:[%s6145_s6 + $0x20] sm:$0xff] }
 0x83b   :  { %v5196_v14 = vmul.f32 %v2130_v60, %v2087_v25 }
 0x83d   :  { %6361 = vst [vmem:[#allocation9_spill] sm:$0xff] %v5196_v14  ;;  %2548 = vmatpush.msra.mxu0 %v5196_v14  ;;  %v2144_v30 = vsel %vm796_vm2, %v5196_v14, 0.0 }
 0x83e   :  { %2145 = vadd.xlane.f32.xlu1 %v2144_v30  ;;  %v3694_v30 = vld [vmem:[%s6145_s6 + $0x28] sm:$0xff] }
 0x83f   :  { %2549 = vmatpush.msra.mxu0 %v5192_v9 }
 0x841   :  { %2550 = vmatpush.msra.mxu0 %v5188_v53 }
 0x843   :  { %2551 = vmatpush.msra.mxu0 %v5202_v34 }
 0x844   :  { %3336 = vmatmul.msk.f32.vlgmr.msra.gmra.mxu0 %vm211_vm1, %v3673_v13  ;;  %v3695_v13 = vld [vmem:[%s6145_s6 + $0x30] sm:$0xff] }
 0x846   :  { %2136 = vadd.xlane.f32.xlu1 %v2135_v18 }
 0x84c   :  { %3337 = vmatmul.msk.f32.gmra.mxu0 %vm211_vm1, %v3674_v5  ;;  %v3696_v5 = vld [vmem:[%s6145_s6 + $0x38] sm:$0xff] }
 0x854   :  { %3338 = vmatmul.msk.f32.gmra.mxu0 %vm211_vm1, %v3675_v16 }
 0x85c   :  { %3339 = vmatmul.msk.f32.gmra.mxu0 %vm211_vm1, %v3676_v35  ;;  %v3697_v35 = vld [vmem:[%s6145_s6 + $0x40] sm:$0xff] }
 0x864   :  { %3340 = vmatmul.msk.f32.gmra.mxu0 %vm211_vm1, %v3677_v32 }
 0x86c   :  { %3341 = vmatmul.msk.f32.gmra.mxu0 %vm211_vm1, %v3678_v29  ;;  %v3698_v29 = vld [vmem:[%s6145_s6 + $0x48] sm:$0xff] }
 0x874   :  { %3342 = vmatmul.msk.f32.gmra.mxu0 %vm211_vm1, %v3679_v38 }
 0x87c   :  { %3343 = vmatmul.msk.f32.gmra.mxu0 %vm211_vm1, %v3680_v61  ;;  %v3699_v61 = vld [vmem:[%s6145_s6 + $0x50] sm:$0xff] }
 0x884   :  { %3344 = vmatmul.msk.f32.gmra.mxu0 %vm211_vm1, %v3681_v39 }
 0x88c   :  { %3345 = vmatmul.msk.f32.gmra.mxu0 %vm211_vm1, %v3682_v0  ;;  %v3700_v0 = vld [vmem:[%s6145_s6 + $0x58] sm:$0xff] }
 0x894   :  { %3346 = vmatmul.msk.f32.gmra.mxu0 %vm211_vm1, %v3683_v44 }
 0x89c   :  { %3347 = vmatmul.msk.f32.gmra.mxu0 %vm211_vm1, %v3684_v27  ;;  %v3701_v27 = vld [vmem:[%s6145_s6 + $0x60] sm:$0xff] }
 0x8a2   :  { %v2140_v4 = vpop.xlane.xlu2 %2139 }
 0x8a3   :  { %v2148_v15 = vmul.f32 %v2140_v4, %v6363_v56 }
 0x8a4   :  { %3348 = vmatmul.msk.f32.gmra.mxu0 %vm211_vm1, %v3685_v36 }
 0x8a9   :  { %v2143_v28 = vpop.xlane.xlu0 %2142 }
 0x8aa   :  { %v2149_v62 = vmul.f32 %v2143_v28, %v6363_v56 }
 0x8ac   :  { %3349 = vmatmul.msk.f32.gmra.mxu0 %vm211_vm1, %v3686_v54  ;;  %v3702_v54 = vld [vmem:[%s6145_s6 + $0x68] sm:$0xff] }
 0x8b1   :  { %v2146_v20 = vpop.xlane.xlu1 %2145 }
 0x8b2   :  { %v2150_v37 = vmul.f32 %v2146_v20, %v6363_v56  ;;  %v3703_v20 = vld [vmem:[%s6145_s6 + $0x70] sm:$0xff] }
 0x8b4   :  { %2163 = vmatpush.msrb.mxu3 %v2150_v37  ;;  %3350 = vmatmul.msk.f32.gmra.mxu0 %vm211_vm1, %v3687_v7  ;;  %v3704_v37 = vld [vmem:[%s6145_s6 + $0x78] sm:$0xff] }
 0x8b6   :  { %2164 = vmatpush.msrb.mxu3 %v2149_v62  ;;  %v6364_v62 = vld [vmem:[#allocation49_spill] sm:$0xff] }
 0x8b8   :  { %2165 = vmatpush.msrb.mxu3 %v2148_v15  ;;  %v6365_v15 = vld [vmem:[#allocation54_spill] sm:$0xff] }
 0x8b9   :  { %v2137_v1 = vpop.xlane.xlu1 %2136 }
 0x8ba   :  { %v2147_v10 = vmul.f32 %v2137_v1, %v6363_v56 }
 0x8bc   :  { %2166 = vmatpush.msrb.mxu3 %v2147_v10  ;;  %3351 = vmatmul.msk.f32.gmra.mxu0 %vm211_vm1, %v3688_v17  ;;  %v6366_v10 = vld [vmem:[#allocation55_spill] sm:$0xff] }
 0x8bd   :  { %3288 = vmatmul.msk.f32.vlgmr.msrb.gmra.mxu3 %vm211_vm1, %v3689_v8  ;;  %v6367_v8 = vld [vmem:[#allocation56_spill] sm:$0xff] }
 0x8c1   :  { %v5280_v60 = vpop.f32.mrf.mxu0 }
 0x8c5   :  { %3289 = vmatmul.msk.f32.gmra.mxu3 %vm211_vm1, %v3690_v49 }
 0x8c9   :  { %v5286_v11 = vpop.f32.mrf.mxu0 }
 0x8cd   :  { %3290 = vmatmul.msk.f32.gmra.mxu3 %vm211_vm1, %v3691_v42 }
 0x8d1   :  { %v5292_v58 = vpop.f32.mrf.mxu0 }
 0x8d5   :  { %3291 = vmatmul.msk.f32.gmra.mxu3 %vm211_vm1, %v3692_v46  ;;  %v6368_v46 = vld [vmem:[#allocation57_spill] sm:$0xff] }
 0x8d9   :  { %v5298_v21 = vpop.f32.mrf.mxu0 }
 0x8dd   :  { %3292 = vmatmul.msk.f32.gmra.mxu3 %vm211_vm1, %v3693_v3 }
 0x8e1   :  { %v2565_v25 = vpop.f32.mrf.mxu0 }
 0x8e5   :  { %3293 = vmatmul.msk.f32.gmra.mxu3 %vm211_vm1, %v3694_v30  ;;  %v6369_v30 = vld [vmem:[#allocation52_spill] sm:$0xff] }
 0x8e9   :  { %v2568_v57 = vpop.f32.mrf.mxu0 }
 0x8ed   :  { %3294 = vmatmul.msk.f32.gmra.mxu3 %vm211_vm1, %v3695_v13 }
 0x8f1   :  { %v2571_v18 = vpop.f32.mrf.mxu0 }
 0x8f5   :  { %3295 = vmatmul.msk.f32.gmra.mxu3 %vm211_vm1, %v3696_v5  ;;  %v6370_v5 = vld [vmem:[#allocation51_spill] sm:$0xff] }
 0x8f9   :  { %v2574_v16 = vpop.f32.mrf.mxu0 }
 0x8fd   :  { %3296 = vmatmul.msk.f32.gmra.mxu3 %vm211_vm1, %v3697_v35 }
 0x901   :  { %v2577_v32 = vpop.f32.mrf.mxu0 }
 0x905   :  { %3297 = vmatmul.msk.f32.gmra.mxu3 %vm211_vm1, %v3698_v29  ;;  %v6371_v29 = vld [vmem:[#allocation50_spill] sm:$0xff] }
 0x909   :  { %v2580_v38 = vpop.f32.mrf.mxu0 }
 0x90a   :  { %v5372_v35 = vadd.f32 %v2580_v38, %v6370_v5  ;;  %v6374_v38 = vld [vmem:[#allocation48_spill] sm:$0xff] }
 0x90d   :  { %3298 = vmatmul.msk.f32.gmra.mxu3 %vm211_vm1, %v3699_v61  ;;  %v5376_v61 = vadd.f32 %v2577_v32, %v6371_v29  ;;  %v6375_v32 = vld [vmem:[#allocation46_spill] sm:$0xff]  ;;  %v3706_v29 = vld [vmem:[%s6146_s7 + $0x10] sm:$0xff] }
 0x911   :  { %v2583_v39 = vpop.f32.mrf.mxu0 }
 0x912   :  { %v5368_v13 = vadd.f32 %v2583_v39, %v6369_v30  ;;  %v6373_v39 = vld [vmem:[#allocation45_spill] sm:$0xff] }
 0x915   :  { %3299 = vmatmul.msk.f32.gmra.mxu3 %vm211_vm1, %v3700_v0 }
 0x919   :  { %v2586_v44 = vpop.f32.mrf.mxu0 }
 0x91a   :  { %v5364_v3 = vadd.f32 %v2586_v44, %v6368_v46  ;;  %v6372_v44 = vld [vmem:[#allocation47_spill] sm:$0xff] }
 0x91d   :  { %3300 = vmatmul.msk.f32.gmra.mxu3 %vm211_vm1, %v3701_v27  ;;  %v5380_v27 = vadd.f32 %v2574_v16, %v6372_v44  ;;  %v6376_v16 = vld [vmem:[#allocation44_spill] sm:$0xff] }
 0x921   :  { %v2589_v36 = vpop.f32.mrf.mxu0 }
 0x922   :  { %v5360_v49 = vadd.f32 %v2589_v36, %v6367_v8  ;;  %v5384_v36 = vadd.f32 %v2571_v18, %v6373_v39  ;;  %v6377_v18 = vld [vmem:[#allocation43_spill] sm:$0xff] }
 0x925   :  { %3301 = vmatmul.msk.f32.gmra.mxu3 %vm211_vm1, %v3702_v54  ;;  %v5388_v54 = vadd.f32 %v2568_v57, %v6374_v38  ;;  %v6378_v57 = vld [vmem:[#allocation42_spill] sm:$0xff]  ;;  %v3707_v38 = vld [vmem:[%s6146_s7 + $0x18] sm:$0xff] }
 0x929   :  { %v2592_v28 = vpop.f32.mrf.mxu0 }
 0x92a   :  { %v5356_v17 = vadd.f32 %v2592_v28, %v6366_v10  ;;  %v5392_v28 = vadd.f32 %v2565_v25, %v6375_v32  ;;  %v6379_v25 = vld [vmem:[#allocation41_spill] sm:$0xff] }
 0x92d   :  { %3302 = vmatmul.msk.f32.gmra.mxu3 %vm211_vm1, %v3703_v20 }
 0x931   :  { %v2595_v56 = vpop.f32.mrf.mxu0 }
 0x932   :  { %v5352_v1 = vadd.f32 %v2595_v56, %v6365_v15  ;;  %v5397_v56 = vadd.f32 %v5298_v21, %v6376_v16 }
 0x935   :  { %3303 = vmatmul.msk.f32.gmra.mxu3 %vm211_vm1, %v3704_v37  ;;  %v5402_v37 = vadd.f32 %v5292_v58, %v6377_v18  ;;  %v3708_v18 = vld [vmem:[%s6146_s7 + $0x58] sm:$0xff] }
 0x939   :  { %v2598_v4 = vpop.f32.mrf.mxu0 }
 0x93a   :  { %v5349_v7 = vadd.f32 %v2598_v4, %v6364_v62  ;;  %v5407_v4 = vadd.f32 %v5286_v11, %v6378_v57  ;;  %v5412_v62 = vadd.f32 %v5280_v60, %v6379_v25  ;;  %v3705_v60 = vld [vmem:[%s6146_s7] sm:$0xff] }
 0x93c   :  { %3401 = vmatpush.lsf.msrb.mxu1 %v5349_v7 }
 0x93e   :  { %3402 = vmatpush.lsf.msrb.mxu1 %v5352_v1 }
 0x940   :  { %v2168_v42 = vpop.f32.mrf.mxu3  ;;  %3403 = vmatpush.lsf.msrb.mxu1 %v5356_v17 }
 0x941   :  { %v2169_v5 = vadd.f32 %v3705_v60, %v2168_v42  ;;  %v3709_v42 = vld [vmem:[%s6146_s7 + $0x48] sm:$0xff] }
 0x942   :  { %3404 = vmatpush.lsf.msrb.mxu1 %v5360_v49 }
 0x943   :  { %v3304_v39 = vmul.f32 -1.442695, %v2169_v5 }
 0x944   :  { %3405 = vmatpush.lsf.msrb.mxu1 %v5364_v3 }
 0x945   :  { %3591 = vpow2.f32 %v3304_v39 }
 0x946   :  { %3406 = vmatpush.lsf.msrb.mxu1 %v5368_v13 }
 0x948   :  { %v2171_v0 = vpop.f32.mrf.mxu3  ;;  %3407 = vmatpush.lsf.msrb.mxu1 %v5372_v35 }
 0x94a   :  { %3408 = vmatpush.lsf.msrb.mxu1 %v5376_v61 }
 0x94c   :  { %3409 = vmatpush.lsf.msrb.mxu1 %v5380_v27 }
 0x94e   :  { %3410 = vmatpush.lsf.msrb.mxu1 %v5384_v36 }
 0x950   :  { %v2174_v20 = vpop.f32.mrf.mxu3  ;;  %3411 = vmatpush.lsf.msrb.mxu1 %v5388_v54 }
 0x951   :  { %v2175_v44 = vadd.f32 %v3706_v29, %v2174_v20  ;;  %v3710_v20 = vld [vmem:[%s6146_s7 + $0x8] sm:$0xff] }
 0x952   :  { %3412 = vmatpush.lsf.msrb.mxu1 %v5392_v28  ;;  %v2172_v5 = vadd.f32 %v3710_v20, %v2171_v0  ;;  %v3592_v0 = vpop.eup %3591 }
 0x953   :  { %v3306_v25 = vmul.f32 -1.442695, %v2175_v44 }
 0x954   :  { %3413 = vmatpush.lsf.msrb.mxu1 %v5397_v56 }
 0x956   :  { %3414 = vmatpush.lsf.msrb.mxu1 %v5402_v37 }
 0x958   :  { %v2177_v21 = vpop.f32.mrf.mxu3  ;;  %3415 = vmatpush.lsf.msrb.mxu1 %v5407_v4 }
 0x959   :  { %v2178_v32 = vadd.f32 %v3707_v38, %v2177_v21  ;;  %v3711_v38 = vld [vmem:[%s6146_s7 + $0x30] sm:$0xff] }
 0x95a   :  { %3416 = vmatpush.lsf.msrb.mxu1 %v5412_v62 }
 0x95b   :  { %3417 = vllmr.8.mxu1  ;;  %v3307_v29 = vmul.f32 -1.442695, %v2178_v32  ;;  %v3713_v32 = vld [vmem:[%s6146_s7 + $0x28] sm:$0xff] }
 0x960   :  { %v2180_v58 = vpop.f32.mrf.mxu3 }
 0x968   :  { %v2183_v15 = vpop.f32.mrf.mxu3 }
 0x970   :  { %v2186_v10 = vpop.f32.mrf.mxu3 }
 0x971   :  { %v2187_v50 = vadd.f32 %v3711_v38, %v2186_v10  ;;  %v3714_v10 = vld [vmem:[%s6146_s7 + $0x60] sm:$0xff] }
 0x978   :  { %v5416_v8 = vpop.f32.mrf.mxu3 }
 0x980   :  { %v2192_v46 = vpop.f32.mrf.mxu3 }
 0x988   :  { %v2195_v11 = vpop.f32.mrf.mxu3 }
 0x989   :  { %v2196_v60 = vadd.f32 %v3709_v42, %v2195_v11  ;;  %v3712_v11 = vld [vmem:[%s6146_s7 + $0x40] sm:$0xff] }
 0x98a   :  { %v2193_v39 = vadd.f32 %v3712_v11, %v2192_v46  ;;  %v5450_v46 = vadd.f32 1.0, %v3592_v0  ;;  %v3716_v0 = vld [vmem:[%s6146_s7 + $0x68] sm:$0xff] }
 0x98b   :  { %v3313_v44 = vmul.f32 -1.442695, %v2196_v60 }
 0x98c   :  { %v3312_v20 = vmul.f32 -1.442695, %v2193_v39 }
 0x990   :  { %v5418_v30 = vpop.f32.mrf.mxu3 }
 0x998   :  { %v2201_v16 = vpop.f32.mrf.mxu3 }
 0x999   :  { %v2202_v57 = vadd.f32 %v3708_v18, %v2201_v16  ;;  %v3305_v16 = vmul.f32 -1.442695, %v2172_v5  ;;  %v3310_v18 = vmul.f32 -1.442695, %v2187_v50 }
 0x99b   :  { %v3315_v21 = vmul.f32 -1.442695, %v2202_v57  ;;  %v2184_v57 = vadd.f32 %v3713_v32, %v2183_v15 }
 0x99d   :  { %3593 = vpow2.f32 %v3315_v21  ;;  %v3309_v38 = vmul.f32 -1.442695, %v2184_v57 }
 0x99e   :  { %3595 = vpow2.f32 %v3306_v25 }
 0x99f   :  { %3597 = vpow2.f32 %v3307_v29 }
 0x9a0   :  { %v2204_v42 = vpop.f32.mrf.mxu3  ;;  %3599 = vpow2.f32 %v3313_v44 }
 0x9a1   :  { %v2205_v25 = vadd.f32 %v3714_v10, %v2204_v42  ;;  %3601 = vpow2.f32 %v3305_v16  ;;  %v3715_v16 = vld [vmem:[%s6146_s7 + $0x20] sm:$0xff] }
 0x9a2   :  { %3603 = vpow2.f32 %v3310_v18  ;;  %v2181_v39 = vadd.f32 %v3715_v16, %v2180_v58 }
 0x9a3   :  { %v3594_v60 = vpop.eup %3593  ;;  %v3316_v5 = vmul.f32 -1.442695, %v2205_v25 }
 0x9a4   :  { %v3596_v29 = vpop.eup %3595  ;;  %v5452_v50 = vadd.f32 1.0, %v3594_v60  ;;  %v3717_v60 = vld [vmem:[%s6146_s7 + $0x50] sm:$0xff] }
 0x9a5   :  { %v3598_v21 = vpop.eup %3597  ;;  %3605 = vpow2.f32 %v3316_v5  ;;  %v5455_v15 = vadd.f32 1.0, %v3596_v29  ;;  %v2199_v58 = vadd.f32 %v3717_v60, %v5418_v30  ;;  %v3308_v29 = vmul.f32 -1.442695, %v2181_v39  ;;  %v3718_v39 = vld [vmem:[%s6146_s7 + $0x38] sm:$0xff] }
 0x9a6   :  { %3607 = vrcp.f32 %v5452_v50  ;;  %v3600_v11 = vpop.eup %3599  ;;  %v5458_v44 = vadd.f32 1.0, %v3598_v21  ;;  %vm2450_vm12 = vweird.f32 %v5452_v50 }
 0x9a7   :  { %3609 = vpow2.f32 %v3312_v20  ;;  %v3602_v42 = vpop.eup %3601  ;;  %v5467_v25 = vadd.f32 1.0, %v3600_v11  ;;  %v3314_v30 = vmul.f32 -1.442695, %v2199_v58 }
 0x9a8   :  { %3611 = vrcp.f32 %v5450_v46  ;;  %v2207_v18 = vpop.f32.mrf.mxu3  ;;  %v3604_v57 = vpop.eup %3603  ;;  %v5498_v52 = vadd.f32 1.0, %v3602_v42 }
 0x9a9   :  { %3613 = vpow2.f32 %v3309_v38  ;;  %v2208_v32 = vadd.f32 %v3716_v0, %v2207_v18  ;;  %v5479_v11 = vadd.f32 1.0, %v3604_v57  ;;  %v2456_v57 = vand.u32 2147483648, %v5452_v50 }
 0x9aa   :  { %3615 = vrcp.f32 %v5455_v15 }
 0x9ab   :  { %v3606_v10 = vpop.eup %3605  ;;  %v3317_v20 = vmul.f32 -1.442695, %v2208_v32  ;;  %3617 = vrcp.f32 %v5458_v44  ;;  %v2457_v42 = vor.u32 1.1754944e-38, %v2456_v57  ;;  %vm2375_vm10 = vweird.f32 %v5479_v11 }
 0x9ac   :  { %v3608_v5 = vpop.eup %3607  ;;  %v5474_v21 = vadd.f32 1.0, %v3606_v10  ;;  %v2190_v10 = vadd.f32 %v3718_v39, %v5416_v8  ;;  %v2381_v34 = vand.u32 2147483648, %v5479_v11 }
 0x9ad   :  { %v3610_v38 = vpop.eup %3609  ;;  %3619 = vpow2.f32 %v3317_v20  ;;  %v2446_v16 = vmul.f32 %v3608_v5, %v5452_v50  ;;  %vm2451_vm11 = vweird.f32 %v3608_v5 }
 0x9ae   :  { %v5477_v18 = vpop.eup %3611  ;;  %3621 = vrcp.f32 %v5474_v21  ;;  %v5487_v60 = vadd.f32 1.0, %v3610_v38  ;;  %vm2452_vm13 = vmor %vm2450_vm12, %vm2451_vm11  ;;  %vm2465_vm3 = vweird.f32 %v5474_v21  ;;  %vm2420_vm11 = vweird.f32 %v5467_v25 }
 0x9af   :  { %v3614_v0 = vpop.eup %3613  ;;  %3623 = vrcp.f32 %v5467_v25  ;;  %v2447_v32 = vsub.f32 1.0, %v2446_v16  ;;  %v2281_v38 = vmul.f32 %v5477_v18, %v5450_v46 }
 0x9b0   :  { %3625 = vpow2.f32 %v3308_v29  ;;  %v2210_v20 = vpop.f32.mrf.mxu3  ;;  %v5490_v51 = vpop.eup %3615  ;;  %v2454_v29 = vand.u32 2147483647, %v5452_v50  ;;  %v5500_v8 = vadd.f32 1.0, %v3614_v0 }
 0x9b1   :  { %v2211_v58 = vadd.f32 %v3719_v24, %v2210_v20  ;;  %v2448_v16 = vmul.f32 %v3608_v5, %v2447_v32  ;;  %v5496_v59 = vpop.eup %3617  ;;  %3627 = vrcp.f32 %v5479_v11  ;;  %v3311_v32 = vmul.f32 -1.442695, %v2190_v10 }
 0x9b2   :  { %3629 = vpow2.f32 %v3314_v30  ;;  %vm2455_vm15 = vcmp.eq.f32.partialorder %v2454_v29, 8.507059e+37  ;;  %v2326_v10 = vmul.f32 %v5496_v59, %v5458_v44 }
 0x9b3   :  { %v3620_v39 = vpop.eup %3619  ;;  %v3318_v12 = vmul.f32 -1.442695, %v2211_v58  ;;  %v2449_v45 = vadd.f32 %v3608_v5, %v2448_v16  ;;  %3631 = vrcp.f32 %v5487_v60  ;;  %v2282_v16 = vsub.f32 1.0, %v2281_v38 }
 0x9b4   :  { %v3622_v24 = vpop.eup %3621  ;;  %v5507_v20 = vadd.f32 1.0, %v3620_v39 }
 0x9b5   :  { %v5510_v0 = vpop.eup %3623  ;;  %3633 = vpow2.f32 %v3318_v12  ;;  %v2453_v63 = vsel %vm2452_vm13, %v3608_v5, %v2449_v45  ;;  %v2461_v30 = vmul.f32 %v3622_v24, %v5474_v21  ;;  %v2471_v45 = vand.u32 2147483648, %v5474_v21 }
 0x9b6   :  { %v3626_v58 = vpop.eup %3625  ;;  %3635 = vrcp.f32 %v5507_v20  ;;  %v2458_v50 = vsel %vm2455_vm15, %v2457_v42, %v2453_v63  ;;  %v2416_v5 = vmul.f32 %v5510_v0, %v5467_v25  ;;  %v3720_v63 = vld [vmem:[%s6146_s7 + $0x78] sm:$0xff]  ;;  %vm2466_vm0 = vweird.f32 %v3622_v24 }
 0x9b7   :  { %3637 = vrcp.f32 %v5500_v8  ;;  %v3331_v39 = vadd.f32 -0.5, %v2458_v50  ;;  %v2462_v22 = vsub.f32 1.0, %v2461_v30  ;;  %v5517_v57 = vpop.eup %3627  ;;  %v2469_v30 = vand.u32 2147483647, %v5474_v21  ;;  %vm2467_vm4 = vmor %vm2465_vm3, %vm2466_vm0 }
 0x9b8   :  { %3639 = vpow2.f32 %v3311_v32  ;;  %v2213_v12 = vpop.f32.mrf.mxu3  ;;  %v3630_v29 = vpop.eup %3629  ;;  %v2327_v32 = vsub.f32 1.0, %v2326_v10  ;;  %v5530_v31 = vmul.f32 %v5477_v18, %v2282_v16  ;;  %v2472_v10 = vor.u32 1.1754944e-38, %v2471_v45 }
 0x9b9   :  { %v2214_v42 = vadd.f32 %v3720_v63, %v2213_v12  ;;  %2695 = vperm.xlu2 %3430, %v3331_v39   ;;  %v2463_v38 = vmul.f32 %v3622_v24, %v2462_v22  ;;  %v5526_v50 = vpop.eup %3631  ;;  %3641 = vrcp.f32 %v5498_v52  ;;  %v5536_v22 = vmul.f32 %v5490_v51, %v5455_v15 }
 0x9ba   :  { %v5538_v12 = vadd.f32 1.0, %v3630_v29  ;;  %v2417_v16 = vsub.f32 1.0, %v2416_v5  ;;  %vm2470_vm7 = vcmp.eq.f32.partialorder %v2469_v30, 8.507059e+37  ;;  %v5546_v26 = vadd.f32 1.0, %v3626_v58 }
 0x9bb   :  { %v3634_v19 = vpop.eup %3633  ;;  %v3319_v47 = vmul.f32 -1.442695, %v2214_v42  ;;  %v2464_v55 = vadd.f32 %v3622_v24, %v2463_v38  ;;  %v2401_v45 = vmul.f32 %v5526_v50, %v5487_v60  ;;  %vm2480_vm8 = vweird.f32 %v5507_v20 }
 0x9bc   :  { %v3636_v39 = vpop.eup %3635  ;;  %v5540_v63 = vadd.f32 1.0, %v3634_v19  ;;  %v2328_v19 = vmul.f32 %v5496_v59, %v2327_v32  ;;  %v2418_v58 = vmul.f32 %v5510_v0, %v2417_v16  ;;  %vm2421_vm5 = vweird.f32 %v5510_v0 }
 0x9bd   :  { %v5543_v33 = vpop.eup %3637  ;;  %3643 = vpow2.f32 %v3319_v47  ;;  %v2468_v42 = vsel %vm2467_vm4, %v3622_v24, %v2464_v55  ;;  %v2476_v21 = vmul.f32 %v3636_v39, %v5507_v20  ;;  %v2371_v47 = vmul.f32 %v5517_v57, %v5479_v11  ;;  %vm5585_vm12 = vmor %vm2420_vm11, %vm2421_vm5 }
 0x9be   :  { %v3640_v38 = vpop.eup %3639  ;;  %3645 = vrcp.f32 %v5540_v63  ;;  %v2473_v29 = vsel %vm2470_vm7, %v2472_v10, %v2468_v42  ;;  %v2486_v24 = vand.u32 2147483648, %v5507_v20  ;;  %vm2481_vm6 = vweird.f32 %v3636_v39 }
 0x9bf   :  { %v3332_v48 = vadd.f32 -0.5, %v2473_v29  ;;  %v2477_v41 = vsub.f32 1.0, %v2476_v21  ;;  %v5554_v55 = vpop.eup %3641  ;;  %3647 = vrcp.f32 %v5538_v12  ;;  %v5560_v30 = vadd.f32 1.0, %v3640_v38  ;;  %vm2482_vm14 = vmor %vm2480_vm8, %vm2481_vm6 }
 0x9c0   :  { %v2484_v10 = vand.u32 2147483647, %v5507_v20  ;;  %3649 = vrcp.f32 %v5546_v26  ;;  %v5566_v42 = vmul.f32 %v5543_v33, %v5500_v8  ;;  %v5569_v21 = vadd.f32 %v5496_v59, %v2328_v19 }
 0x9c1   :  { %2700 = vperm.xlu0 %3428, %v3332_v48   ;;  %v2478_v32 = vmul.f32 %v3636_v39, %v2477_v41  ;;  %v2402_v48 = vsub.f32 1.0, %v2401_v45  ;;  %v2372_v41 = vsub.f32 1.0, %v2371_v47  ;;  %v2487_v14 = vor.u32 1.1754944e-38, %v2486_v24 }
 0x9c2   :  { %v2419_v9 = vadd.f32 %v5510_v0, %v2418_v58  ;;  %3651 = vrcp.f32 %v5560_v30  ;;  %vm2485_vm9 = vcmp.eq.f32.partialorder %v2484_v10, 8.507059e+37  ;;  %v2426_v47 = vand.u32 2147483648, %v5467_v25 }
 0x9c3   :  { %v3644_v29 = vpop.eup %3643  ;;  %v2479_v5 = vadd.f32 %v3636_v39, %v2478_v32  ;;  %v2499_v53 = vand.u32 2147483647, %v5540_v63  ;;  %vm2376_vm15 = vweird.f32 %v5517_v57  ;;  %v2357_v32 = vsub.f32 1.0, %v5566_v42 }
 0x9c4   :  { %v3646_v38 = vpop.eup %3645  ;;  %v5573_v23 = vadd.f32 1.0, %v3644_v29  ;;  %v2501_v29 = vand.u32 2147483648, %v5540_v63  ;;  %vm2495_vm0 = vweird.f32 %v5540_v63  ;;  %vm2406_vm7 = vweird.f32 %v5526_v50 }
 0x9c5   :  { %v2483_v19 = vsel %vm2482_vm14, %v3636_v39, %v2479_v5  ;;  %v2491_v16 = vmul.f32 %v3646_v38, %v5540_v63  ;;  %v5580_v20 = vpop.eup %3647  ;;  %v2424_v39 = vand.u32 2147483647, %v5467_v25  ;;  %v2373_v5 = vmul.f32 %v5517_v57, %v2372_v41  ;;  %vm5618_vm14 = vmor %vm2375_vm10, %vm2376_vm15 }
 0x9c6   :  { %3653 = vrcp.f32 %v5573_v23  ;;  %v2488_v45 = vsel %vm2485_vm9, %v2487_v14, %v2483_v19  ;;  %v5591_v10 = vpop.eup %3649  ;;  %v2423_v14 = vsel %vm5585_vm12, %v5510_v0, %v2419_v9  ;;  %v2403_v19 = vmul.f32 %v5526_v50, %v2402_v48 }
 0x9c7   :  { %v3333_v24 = vadd.f32 -0.5, %v2488_v45  ;;  %v2492_v58 = vsub.f32 1.0, %v2491_v16  ;;  %v2379_v16 = vand.u32 2147483647, %v5479_v11  ;;  %vm2496_vm13 = vweird.f32 %v3646_v38 }
 0x9c8   :  { %v2431_v25 = vmul.f32 %v5580_v20, %v5538_v12  ;;  %v2427_v41 = vor.u32 1.1754944e-38, %v2426_v47  ;;  %v5605_v9 = vpop.eup %3651  ;;  %vm2425_vm3 = vcmp.eq.f32.partialorder %v2424_v39, 8.507059e+37  ;;  %v2374_v48 = vadd.f32 %v5517_v57, %v2373_v5  ;;  %vm2497_vm4 = vmor %vm2495_vm0, %vm2496_vm13 }
 0x9c9   :  { %2705 = vperm.xlu1 %3429, %v3333_v24   ;;  %v2493_v45 = vmul.f32 %v3646_v38, %v2492_v58  ;;  %v2502_v58 = vor.u32 1.1754944e-38, %v2501_v29  ;;  %v2404_v47 = vadd.f32 %v5526_v50, %v2403_v19  ;;  %vm2500_vm6 = vcmp.eq.f32.partialorder %v2499_v53, 8.507059e+37 }
 0x9ca   :  { %v2428_v2 = vsel %vm2425_vm3, %v2427_v41, %v2423_v14  ;;  %v2432_v43 = vsub.f32 1.0, %v2431_v25  ;;  %vm2405_vm8 = vweird.f32 %v5487_v60  ;;  %v2411_v63 = vand.u32 2147483648, %v5487_v60 }
 0x9cb   :  { %v2494_v0 = vadd.f32 %v3646_v38, %v2493_v45  ;;  %v2358_v5 = vmul.f32 %v5543_v33, %v2357_v32  ;;  %vm2360_vm5 = vweird.f32 %v5500_v8  ;;  %vm2331_vm9 = vweird.f32 %v5496_v59  ;;  %vm5627_vm11 = vmor %vm2405_vm8, %vm2406_vm7 }
 0x9cc   :  { %v3654_v24 = vpop.eup %3653  ;;  %v2409_v11 = vand.u32 2147483647, %v5487_v60  ;;  %v2516_v14 = vand.u32 2147483648, %v5573_v23  ;;  %v2408_v19 = vsel %vm5627_vm11, %v5526_v50, %v2404_v47  ;;  %vm2330_vm10 = vweird.f32 %v5458_v44 }
 0x9cd   :  { %v2498_v40 = vsel %vm2497_vm4, %v3646_v38, %v2494_v0  ;;  %v2506_v42 = vmul.f32 %v3654_v24, %v5573_v23  ;;  %vm2511_vm12 = vweird.f32 %v3654_v24  ;;  %v2514_v60 = vand.u32 2147483647, %v5573_v23 }
 0x9ce   :  { %v2503_v6 = vsel %vm2500_vm6, %v2502_v58, %v2498_v40  ;;  %v3329_v40 = vadd.f32 -0.5, %v2428_v2  ;;  %v2386_v2 = vmul.f32 %v5605_v9, %v5560_v30  ;;  %v2433_v25 = vmul.f32 %v5580_v20, %v2432_v43 }
 0x9cf   :  { %v3334_v53 = vadd.f32 -0.5, %v2503_v6  ;;  %v2507_v38 = vsub.f32 1.0, %v2506_v42  ;;  %v2378_v6 = vsel %vm5618_vm14, %v5517_v57, %v2374_v48  ;;  %v2412_v41 = vor.u32 1.1754944e-38, %v2411_v63 }
 0x9d0   :  { %vm2380_vm13 = vcmp.eq.f32.partialorder %v2379_v16, 8.507059e+37  ;;  %v2382_v50 = vor.u32 1.1754944e-38, %v2381_v34  ;;  %vm2361_vm15 = vweird.f32 %v5543_v33  ;;  %vm2510_vm0 = vweird.f32 %v5573_v23 }
 0x9d1   :  { %2710 = vperm.xlu2 %3430, %v3334_v53   ;;  %2685 = vperm.xlu1 %3429, %v3329_v40   ;;  %v2508_v45 = vmul.f32 %v3654_v24, %v2507_v38  ;;  %vm2410_vm3 = vcmp.eq.f32.partialorder %v2409_v11, 8.507059e+37  ;;  %v2359_v57 = vadd.f32 %v5543_v33, %v2358_v5  ;;  %vm2512_vm4 = vmor %vm2510_vm0, %vm2511_vm12  ;;  %v2517_v0 = vor.u32 1.1754944e-38, %v2516_v14 }
 0x9d2   :  { %v2413_v48 = vsel %vm2410_vm3, %v2412_v41, %v2408_v19  ;;  %v2383_v58 = vsel %vm2380_vm13, %v2382_v50, %v2378_v6  ;;  %v2387_v47 = vsub.f32 1.0, %v2386_v2  ;;  %vm2515_vm7 = vcmp.eq.f32.partialorder %v2514_v60, 8.507059e+37  ;;  %vm5658_vm14 = vmor %vm2360_vm5, %vm2361_vm15 }
 0x9d3   :  { %v2509_v32 = vadd.f32 %v3654_v24, %v2508_v45  ;;  %v2434_v43 = vadd.f32 %v5580_v20, %v2433_v25  ;;  %vm2436_vm6 = vweird.f32 %v5580_v20  ;;  %v2441_v16 = vand.u32 2147483648, %v5538_v12  ;;  %vm5682_vm5 = vmor %vm2330_vm10, %vm2331_vm9 }
 0x9d4   :  { %v2364_v63 = vand.u32 2147483647, %v5500_v8  ;;  %v2366_v23 = vand.u32 2147483648, %v5500_v8  ;;  %v3328_v5 = vadd.f32 -0.5, %v2413_v48  ;;  %vm2435_vm8 = vweird.f32 %v5538_v12 }
 0x9d5   :  { %v2513_v42 = vsel %vm2512_vm4, %v3654_v24, %v2509_v32  ;;  %v2439_v53 = vand.u32 2147483647, %v5538_v12  ;;  %v3326_v40 = vadd.f32 -0.5, %v2383_v58  ;;  %vm5662_vm11 = vmor %vm2435_vm8, %vm2436_vm6  ;;  %v2334_v29 = vand.u32 2147483647, %v5458_v44 }
 0x9d6   :  { %v2518_v34 = vsel %vm2515_vm7, %v2517_v0, %v2513_v42  ;;  %v6390_v11 = vsub.f32 1.0, %v5536_v22  ;;  %v2341_v12 = vmul.f32 %v5591_v10, %v5546_v26  ;;  %v2438_v8 = vsel %vm5662_vm11, %v5580_v20, %v2434_v43 }
 0x9d7   :  { %v3335_v39 = vadd.f32 -0.5, %v2518_v34  ;;  %v2363_v19 = vsel %vm5658_vm14, %v5543_v33, %v2359_v57  ;;  %v2388_v6 = vmul.f32 %v5605_v9, %v2387_v47  ;;  %vm2286_vm12 = vweird.f32 %v5477_v18 }
 0x9d8   :  { %v2313_v14 = vmul.f32 %v5490_v51, %v6390_v11  ;;  %v2442_v2 = vor.u32 1.1754944e-38, %v2441_v16  ;;  %v2367_v45 = vor.u32 1.1754944e-38, %v2366_v23  ;;  %v2333_v33 = vsel %vm5682_vm5, %v5496_v59, %v5569_v21 }
 0x9d9   :  { %2715 = vperm.xlu0 %3428, %v3335_v39   ;;  %2680 = vperm.xlu2 %3430, %v3328_v5   ;;  %v2284_v20 = vadd.f32 %v5477_v18, %v5530_v31  ;;  %vm2440_vm13 = vcmp.eq.f32.partialorder %v2439_v53, 8.507059e+37  ;;  %vm2365_vm9 = vcmp.eq.f32.partialorder %v2364_v63, 8.507059e+37  ;;  %v6393_v60 = vand.u32 2147483648, %v5458_v44 }
 0x9da   :  { %2670 = vperm.xlu1 %3429, %v3326_v40   ;;  %vm2316_vm10 = vweird.f32 %v5490_v51  ;;  %v2443_v41 = vsel %vm2440_vm13, %v2442_v2, %v2438_v8  ;;  %v2368_v50 = vsel %vm2365_vm9, %v2367_v45, %v2363_v19  ;;  %vm2335_vm15 = vcmp.eq.f32.partialorder %v2334_v29, 8.507059e+37 }
 0x9db   :  { %v2337_v25 = vor.u32 1.1754944e-38, %v6393_v60  ;;  %v2314_v32 = vadd.f32 %v5490_v51, %v2313_v14  ;;  %v2389_v0 = vadd.f32 %v5605_v9, %v2388_v6  ;;  %vm2391_vm0 = vweird.f32 %v5605_v9 }
 0x9dc   :  { %v2342_v59 = vsub.f32 1.0, %v2341_v12  ;;  %v2396_v31 = vand.u32 2147483648, %v5560_v30  ;;  %vm2315_vm3 = vweird.f32 %v5455_v15  ;;  %v2319_v44 = vand.u32 2147483647, %v5455_v15 }
 0x9dd   :  { %v2338_v57 = vsel %vm2335_vm15, %v2337_v25, %v2333_v33  ;;  %v2321_v21 = vand.u32 2147483648, %v5455_v15  ;;  %v3330_v48 = vadd.f32 -0.5, %v2443_v41  ;;  %v3325_v58 = vadd.f32 -0.5, %v2368_v50  ;;  %vm5708_vm7 = vmor %vm2315_vm3, %vm2316_vm10 }
 0x9de   :  { %vm2390_vm4 = vweird.f32 %v5560_v30  ;;  %v2394_v47 = vand.u32 2147483647, %v5560_v30  ;;  %v3323_v43 = vadd.f32 -0.5, %v2338_v57  ;;  %vm2285_vm8 = vweird.f32 %v5450_v46 }
 0x9df   :  { %vm5712_vm6 = vmor %vm2390_vm4, %vm2391_vm0  ;;  %v2289_v15 = vand.u32 2147483647, %v5450_v46  ;;  %v2296_v16 = vmul.f32 %v5554_v55, %v5498_v52  ;;  %v2318_v63 = vsel %vm5708_vm7, %v5490_v51, %v2314_v32  ;;  %v2343_v23 = vmul.f32 %v5591_v10, %v2342_v59 }
 0x9e0   :  { %v2393_v30 = vsel %vm5712_vm6, %v5605_v9, %v2389_v0  ;;  %vm2287_vm14 = vmor %vm2285_vm8, %vm2286_vm12  ;;  %v2397_v39 = vor.u32 1.1754944e-38, %v2396_v31  ;;  %v2322_v5 = vor.u32 1.1754944e-38, %v2321_v21  ;;  %vm2395_vm11 = vcmp.eq.f32.partialorder %v2394_v47, 8.507059e+37 }
 0x9e1   :  { %2690 = vperm.xlu0 %3428, %v3330_v48   ;;  %2665 = vperm.xlu2 %3430, %v3325_v58   ;;  %v2288_v53 = vsel %vm2287_vm14, %v5477_v18, %v2284_v20  ;;  %vm2320_vm5 = vcmp.eq.f32.partialorder %v2319_v44, 8.507059e+37  ;;  %v6398_v24 = vand.u32 2147483648, %v5450_v46  ;;  %vm2290_vm13 = vcmp.eq.f32.partialorder %v2289_v15, 8.507059e+37 }
 0x9e2   :  { %2655 = vperm.xlu1 %3429, %v3323_v43   ;;  %v2398_v9 = vsel %vm2395_vm11, %v2397_v39, %v2393_v30  ;;  %v2323_v38 = vsel %vm2320_vm5, %v2322_v5, %v2318_v63  ;;  %v2344_v51 = vadd.f32 %v5591_v10, %v2343_v23  ;;  %vm2346_vm12 = vweird.f32 %v5591_v10 }
 0x9e3   :  { %v2292_v40 = vor.u32 1.1754944e-38, %v6398_v24  ;;  %v2297_v11 = vsub.f32 1.0, %v2296_v16  ;;  %v2351_v14 = vand.u32 2147483648, %v5546_v26  ;;  %v3327_v12 = vadd.f32 -0.5, %v2398_v9 }
 0x9e4   :  { %v3322_v8 = vadd.f32 -0.5, %v2323_v38  ;;  %vm2345_vm9 = vweird.f32 %v5546_v26  ;;  %v2349_v18 = vand.u32 2147483647, %v5546_v26  ;;  %vm2301_vm0 = vweird.f32 %v5554_v55 }
 0x9e5   :  { %v2293_v29 = vsel %vm2290_vm13, %v2292_v40, %v2288_v53  ;;  %vm2347_vm10 = vmor %vm2345_vm9, %vm2346_vm12  ;;  %v2298_v22 = vmul.f32 %v5554_v55, %v2297_v11  ;;  %v2352_v6 = vor.u32 1.1754944e-38, %v2351_v14  ;;  %v2306_v33 = vand.u32 2147483648, %v5498_v52 }
 0x9e6   :  { %v3320_v19 = vadd.f32 -0.5, %v2293_v29  ;;  %v2348_v46 = vsel %vm2347_vm10, %v5591_v10, %v2344_v51  ;;  %vm2350_vm15 = vcmp.eq.f32.partialorder %v2349_v18, 8.507059e+37  ;;  %vm2300_vm3 = vweird.f32 %v5498_v52 }
 0x9e7   :  { %v2353_v2 = vsel %vm2350_vm15, %v2352_v6, %v2348_v46  ;;  %v2299_v45 = vadd.f32 %v5554_v55, %v2298_v22  ;;  %v2304_v26 = vand.u32 2147483647, %v5498_v52  ;;  %vm2302_vm4 = vmor %vm2300_vm3, %vm2301_vm0  ;;  %v2307_v60 = vor.u32 1.1754944e-38, %v2306_v33 }
 0x9e8   :  { %v3324_v20 = vadd.f32 -0.5, %v2353_v2  ;;  %v2602_v50 = vsel %vm796_vm2, %v5407_v4, 0.0  ;;  %v2601_v32 = vsel %vm796_vm2, %v5412_v62, 0.0  ;;  %v2604_v57 = vsel %vm796_vm2, %v5402_v37, 0.0 }
 0x9e9   :  { %2675 = vperm.xlu0 %3428, %v3327_v12   ;;  %2650 = vperm.xlu2 %3430, %v3322_v8   ;;  %v2303_v10 = vsel %vm2302_vm4, %v5554_v55, %v2299_v45  ;;  %vm2305_vm7 = vcmp.eq.f32.partialorder %v2304_v26, 8.507059e+37  ;;  %v2603_v0 = vadd.f32 %v2602_v50, %v2601_v32  ;;  %v2606_v52 = vsel %vm796_vm2, %v5397_v56, 0.0 }
 0x9ea   :  { %2640 = vperm.xlu1 %3429, %v3320_v19   ;;  %v2308_v25 = vsel %vm2305_vm7, %v2307_v60, %v2303_v10  ;;  %v2608_v55 = vsel %vm796_vm2, %v5392_v28, 0.0  ;;  %v2610_v44 = vsel %vm796_vm2, %v5388_v54, 0.0  ;;  %v2612_v48 = vsel %vm796_vm2, %v5384_v36, 0.0 }
 0x9eb   :  { %v3321_v41 = vadd.f32 -0.5, %v2308_v25  ;;  %v2605_v59 = vadd.f32 %v2604_v57, %v2603_v0  ;;  %v2614_v47 = vsel %vm796_vm2, %v5380_v27, 0.0  ;;  %v2616_v43 = vsel %vm796_vm2, %v5376_v61, 0.0 }
 0x9ec   :  { %v2618_v15 = vsel %vm796_vm2, %v5372_v35, 0.0  ;;  %v2620_v30 = vsel %vm796_vm2, %v5368_v13, 0.0  ;;  %v2622_v23 = vsel %vm796_vm2, %v5364_v3, 0.0  ;;  %v2624_v5 = vsel %vm796_vm2, %v5360_v49, 0.0 }
 0x9ed   :  { %v2607_v31 = vadd.f32 %v2606_v52, %v2605_v59  ;;  %v2626_v24 = vsel %vm796_vm2, %v5356_v17, 0.0  ;;  %v2628_v9 = vsel %vm796_vm2, %v5352_v1, 0.0  ;;  %v2630_v29 = vsel %vm796_vm2, %v5349_v7, 0.0 }
 0x9ef   :  { %v2609_v21 = vadd.f32 %v2608_v55, %v2607_v31 }
 0x9f1   :  { %2660 = vperm.xlu0 %3428, %v3324_v20   ;;  %v2611_v58 = vadd.f32 %v2610_v44, %v2609_v21 }
 0x9f3   :  { %v2613_v42 = vadd.f32 %v2612_v48, %v2611_v58 }
 0x9f5   :  { %v2615_v34 = vadd.f32 %v2614_v47, %v2613_v42 }
 0x9f7   :  { %v2617_v16 = vadd.f32 %v2616_v43, %v2615_v34 }
 0x9f9   :  { %2645 = vperm.xlu0 %3428, %v3321_v41   ;;  %v2619_v63 = vadd.f32 %v2618_v15, %v2617_v16 }
 0x9fb   :  { %v2621_v39 = vadd.f32 %v2620_v30, %v2619_v63 }
 0x9fd   :  { %v2623_v53 = vadd.f32 %v2622_v23, %v2621_v39 }
 0x9ff   :  { %v2625_v40 = vadd.f32 %v2624_v5, %v2623_v53 }
 0xa01   :  { %v2627_v38 = vadd.f32 %v2626_v24, %v2625_v40 }
 0xa03   :  { %v2629_v51 = vadd.f32 %v2628_v9, %v2627_v38 }
 0xa05   :  { %v2631_v11 = vadd.f32 %v2630_v29, %v2629_v51 }
 0xa07   :  { %v2632_v14 = vrot.slane %v2631_v11, 4 }
 0xa09   :  { %v2633_v12 = vadd.f32 %v2632_v14, %v2631_v11 }
 0xa0b   :  { %v2634_v8 = vrot.slane %v2633_v12, 2 }
 0xa0d   :  { %v2635_v19 = vadd.f32 %v2634_v8, %v2633_v12 }
 0xa0f   :  { %v2636_v6 = vrot.slane %v2635_v19, 1 }
 0xa11   :  { %v2637_v45 = vadd.f32 %v2636_v6, %v2635_v19 }
 0xa13   :  { %v2696_v18 = vpop.permute.xlu2 %2695  ;;  %v2734_v26 = vmul.f32 0.5, %v2637_v45 }
 0xa14   :  { %v2729_v0 = vmul.f32 %v2696_v18, %v5364_v3 }
 0xa16   :  { %v2746_v44 = vadd.f32 %v2734_v26, %v2729_v0 }
 0xa2b   :  { %v2711_v2 = vpop.permute.xlu2 %2710 }
 0xa2c   :  { %v2732_v10 = vmul.f32 %v2711_v2, %v5352_v1 }
 0xa2e   :  { %v2749_v32 = vadd.f32 %v2734_v26, %v2732_v10 }
 0xa33   :  { %v2701_v22 = vpop.permute.xlu0 %2700  ;;  %v2681_v50 = vpop.permute.xlu2 %2680 }
 0xa34   :  { %v2730_v57 = vmul.f32 %v2701_v22, %v5360_v49 }
 0xa36   :  { %v2747_v55 = vadd.f32 %v2734_v26, %v2730_v57 }
 0xa3b   :  { %v2706_v46 = vpop.permute.xlu1 %2705  ;;  %v2666_v49 = vpop.permute.xlu2 %2665 }
 0xa3c   :  { %v2731_v25 = vmul.f32 %v2706_v46, %v5356_v17  ;;  %v2726_v17 = vmul.f32 %v2681_v50, %v5376_v61 }
 0xa3e   :  { %v2748_v52 = vadd.f32 %v2734_v26, %v2731_v25  ;;  %v2743_v58 = vadd.f32 %v2734_v26, %v2726_v17 }
 0xa43   :  { %v2686_v33 = vpop.permute.xlu1 %2685  ;;  %v2651_v15 = vpop.permute.xlu2 %2650 }
 0xa4b   :  { %v2716_v20 = vpop.permute.xlu0 %2715 }
 0xa4c   :  { %v2733_v60 = vmul.f32 %v2716_v20, %v5349_v7  ;;  %v2671_v1 = vpop.permute.xlu1 %2670  ;;  %v2727_v7 = vmul.f32 %v2686_v33, %v5372_v35 }
 0xa4d   :  { %v2724_v47 = vmul.f32 %v2671_v1, %v5384_v36  ;;  %v2720_v36 = vmul.f32 %v2651_v15, %v5402_v37 }
 0xa4e   :  { %v2750_v41 = vadd.f32 %v2734_v26, %v2733_v60  ;;  %v2744_v48 = vadd.f32 %v2734_v26, %v2727_v7 }
 0xa4f   :  { %v2741_v34 = vadd.f32 %v2734_v26, %v2724_v47  ;;  %v2737_v39 = vadd.f32 %v2734_v26, %v2720_v36 }
 0xa50   :  { %2783 = vmatpush.msra.mxu1 %v2750_v41 }
 0xa52   :  { %2784 = vmatpush.msra.mxu1 %v2749_v32 }
 0xa53   :  { %v2691_v59 = vpop.permute.xlu0 %2690 }
 0xa54   :  { %v2728_v31 = vmul.f32 %v2691_v59, %v5368_v13  ;;  %2785 = vmatpush.msra.mxu1 %v2748_v52  ;;  %v2723_v13 = vmul.f32 %v2666_v49, %v5388_v54  ;;  %v2656_v35 = vpop.permute.xlu1 %2655  ;;  %v690_v59 = vld [vmem:[%s6149_s10] sm:$0xff] }
 0xa55   :  { %v2721_v30 = vmul.f32 %v2656_v35, %v5397_v56 }
 0xa56   :  { %2786 = vmatpush.msra.mxu1 %v2747_v55  ;;  %v2745_v21 = vadd.f32 %v2734_v26, %v2728_v31  ;;  %v2740_v61 = vadd.f32 %v2734_v26, %v2723_v13  ;;  %v691_v55 = vld [vmem:[%s6149_s10 + $0x8] sm:$0xff] }
 0xa57   :  { %v2738_v23 = vadd.f32 %v2734_v26, %v2721_v30 }
 0xa58   :  { %2787 = vmatpush.msra.mxu1 %v2746_v44 }
 0xa5a   :  { %2788 = vmatpush.msra.mxu1 %v2745_v21 }
 0xa5b   :  { %v2676_v3 = vpop.permute.xlu0 %2675 }
 0xa5c   :  { %v2725_v42 = vmul.f32 %v2676_v3, %v5380_v27  ;;  %2789 = vmatpush.msra.mxu1 %v2744_v48  ;;  %v2641_v54 = vpop.permute.xlu1 %2640 }
 0xa5d   :  { %v2718_v53 = vmul.f32 %v2641_v54, %v5412_v62 }
 0xa5e   :  { %v2742_v43 = vadd.f32 %v2734_v26, %v2725_v42  ;;  %2790 = vmatpush.msra.mxu1 %v2743_v58 }
 0xa5f   :  { %v2735_v9 = vadd.f32 %v2734_v26, %v2718_v53 }
 0xa60   :  { %2791 = vmatpush.msra.mxu1 %v2742_v43 }
 0xa62   :  { %2792 = vmatpush.msra.mxu1 %v2741_v34 }
 0xa63   :  { %v2661_v16 = vpop.permute.xlu0 %2660 }
 0xa64   :  { %v2722_v63 = vmul.f32 %v2661_v16, %v5392_v28  ;;  %2793 = vmatpush.msra.mxu1 %v2740_v61 }
 0xa66   :  { %v2739_v27 = vadd.f32 %v2734_v26, %v2722_v63 }
 0xa68   :  { %2794 = vmatpush.msra.mxu1 %v2739_v27 }
 0xa6a   :  { %2795 = vmatpush.msra.mxu1 %v2738_v23 }
 0xa6b   :  { %v2646_v5 = vpop.permute.xlu0 %2645 }
 0xa6c   :  { %v2719_v24 = vmul.f32 %v2646_v5, %v5407_v4  ;;  %2796 = vmatpush.msra.mxu1 %v2737_v39 }
 0xa6e   :  { %v2736_v40 = vadd.f32 %v2734_v26, %v2719_v24 }
 0xa70   :  { %2797 = vmatpush.msra.mxu1 %v2736_v40 }
 0xa72   :  { %2798 = vmatpush.msra.mxu1 %v2735_v9 }
 0xa73   :  { %3418 = vmatmul.lmr.bf16.vlgmr.msra.gmra.8.mxu1 }
 0xa7b   :  { %3419 = vmatmul.lmr.bf16.gmra.8.mxu1 }
 0xa83   :  { %3420 = vmatmul.lmr.bf16.gmra.8.mxu1 }
 0xa8b   :  { %3421 = vmatmul.lmr.bf16.gmra.8.mxu1 }
 0xa93   :  { %3422 = vmatmul.lmr.bf16.gmra.8.mxu1 }
 0xa9b   :  { %3423 = vmatmul.lmr.bf16.gmra.8.mxu1 }
 0xaa3   :  { %3424 = vmatmul.lmr.bf16.gmra.8.mxu1 }
 0xaab   :  { %3425 = vmatmul.lmr.bf16.gmra.8.mxu1 }
 0xaf0   :  { %v5793_v28 = vpop.f32.mrf.mxu1 }
 0xaf1   :  { %v2824_v56 = vmax.f32 %v5793_v28, 0.0 }
 0xaf3   :  { %v2832_v62 = vsel %vm796_vm2, %v2824_v56, 0.0 }
 0xaf8   :  { %v5796_v37 = vpop.f32.mrf.mxu1 }
 0xaf9   :  { %v2825_v4 = vmax.f32 %v5796_v37, 0.0  ;;  %v6416_v37 = vld [vmem:[#allocation9_spill] sm:$0xff] }
 0xafb   :  { %v2835_v38 = vsel %vm796_vm2, %v2825_v4, 0.0 }
 0xafc   :  { %v2944_v29 = vadd.f32 %v2835_v38, %v2832_v62 }
 0xb00   :  { %v5805_v51 = vpop.f32.mrf.mxu1 }
 0xb01   :  { %v2826_v11 = vmax.f32 %v5805_v51, 0.0 }
 0xb03   :  { %v2838_v14 = vsel %vm796_vm2, %v2826_v11, 0.0 }
 0xb04   :  { %v2945_v12 = vadd.f32 %v2944_v29, %v2838_v14 }
 0xb08   :  { %v5811_v8 = vpop.f32.mrf.mxu1 }
 0xb09   :  { %v2827_v18 = vmax.f32 %v5811_v8, 0.0 }
 0xb0b   :  { %v2841_v19 = vsel %vm796_vm2, %v2827_v18, 0.0 }
 0xb0c   :  { %v2946_v46 = vadd.f32 %v2945_v12, %v2841_v19 }
 0xb10   :  { %v5817_v22 = vpop.f32.mrf.mxu1 }
 0xb11   :  { %v2828_v6 = vmax.f32 %v5817_v22, 0.0 }
 0xb13   :  { %v2844_v2 = vsel %vm796_vm2, %v2828_v6, 0.0 }
 0xb14   :  { %v2947_v45 = vadd.f32 %v2946_v46, %v2844_v2 }
 0xb18   :  { %v5823_v33 = vpop.f32.mrf.mxu1 }
 0xb19   :  { %v2829_v20 = vmax.f32 %v5823_v33, 0.0 }
 0xb1b   :  { %v2847_v26 = vsel %vm796_vm2, %v2829_v20, 0.0 }
 0xb1c   :  { %2848 = vadd.xlane.f32.xlu1 %v2847_v26  ;;  %v2948_v10 = vadd.f32 %v2947_v45, %v2847_v26 }
 0xb20   :  { %v5829_v60 = vpop.f32.mrf.mxu1 }
 0xb21   :  { %v2830_v25 = vmax.f32 %v5829_v60, 0.0  ;;  %v3727_v60 = vld [vmem:[%s6147_s8 + $0x10] sm:$0xff] }
 0xb23   :  { %v2850_v41 = vsel %vm796_vm2, %v2830_v25, 0.0 }
 0xb24   :  { %2839 = vadd.xlane.f32.xlu1 %v2838_v14  ;;  %2851 = vadd.xlane.f32.xlu0 %v2850_v41  ;;  %v2949_v50 = vadd.f32 %v2948_v10, %v2850_v41 }
 0xb28   :  { %v5835_v32 = vpop.f32.mrf.mxu1 }
 0xb29   :  { %v2831_v57 = vmax.f32 %v5835_v32, 0.0 }
 0xb2b   :  { %v2853_v0 = vsel %vm796_vm2, %v2831_v57, 0.0 }
 0xb2c   :  { %2842 = vadd.xlane.f32.xlu0 %v2841_v19  ;;  %2854 = vadd.xlane.f32.xlu2 %v2853_v0  ;;  %v2950_v52 = vadd.f32 %v2949_v50, %v2853_v0  ;;  %v6399_v0 = vld [vmem:[#allocation6_spill] sm:$0xff] }
 0xb2e   :  { %v2951_v31 = vrot.slane %v2950_v52, 4 }
 0xb30   :  { %v2952_v1 = vadd.f32 %v2951_v31, %v2950_v52  ;;  %v6400_v52 = vld [vmem:[#allocation21_spill] sm:$0xff]  ;;  %v6402_v31 = vld [vmem:[#allocation22_spill] sm:$0xff] }
 0xb32   :  { %v2953_v44 = vrot.slane %v2952_v1, 2 }
 0xb34   :  { %2833 = vadd.xlane.f32.xlu0 %v2832_v62  ;;  %2845 = vadd.xlane.f32.xlu2 %v2844_v2  ;;  %v2954_v7 = vadd.f32 %v2953_v44, %v2952_v1  ;;  %v6403_v44 = vld [vmem:[#allocation10_spill] sm:$0xff] }
 0xb36   :  { %v2955_v17 = vrot.slane %v2954_v7, 1 }
 0xb38   :  { %v2956_v21 = vadd.f32 %v2955_v17, %v2954_v7  ;;  %v5903_v7 = vmul.f32 %v6400_v52, %v6403_v44 }
 0xb3a   :  { %v5847_v48 = vadd.f32 1.0, %v2956_v21  ;;  %v6404_v21 = vld [vmem:[#allocation13_spill] sm:$0xff] }
 0xb3c   :  { %2836 = vadd.xlane.f32.xlu2 %v2835_v38  ;;  %3655 = vrsqrt.f32 %v5847_v48  ;;  %vm2964_vm0 = vweird.f32 %v5847_v48 }
 0xb3d   :  { %2011 = vperm.xlu1 %3429, %v690_v59   ;;  %v2005_v59 = vmul.f32 %v6400_v52, %v6399_v0 }
 0xb42   :  { %v5855_v13 = vpop.eup %3655 }
 0xb43   :  { %v2959_v34 = vmul.f32 %v5855_v13, %v5847_v48  ;;  %vm2965_vm6 = vweird.f32 %v5855_v13 }
 0xb44   :  { %vm2966_vm3 = vmor %vm2964_vm0, %vm2965_vm6 }
 0xb45   :  { %v2960_v27 = vmul.f32 %v5855_v13, %v2959_v34 }
 0xb47   :  { %v2961_v53 = vmul.f32 0.5, %v2960_v27 }
 0xb49   :  { %v2962_v46 = vsub.f32 1.5, %v2961_v53 }
 0xb54   :  { %2016 = vperm.xlu2 %3430, %v691_v55   ;;  %v6401_v55 = vld [vmem:[#allocation8_spill] sm:$0xff] }
 0xb55   :  { %v2006_v1 = vmul.f32 %v6402_v31, %v6401_v55 }
 0xb8f   :  { %v2849_v49 = vpop.xlane.xlu1 %2848 }
 0xb90   :  { %v5849_v3 = vadd.f32 1.0, %v2849_v49  ;;  %v2008_v49 = vmul.f32 %v6402_v31, %v6404_v21 }
 0xb92   :  { %3657 = vrsqrt.f32 %v5849_v3  ;;  %vm2920_vm13 = vweird.f32 %v5849_v3 }
 0xb97   :  { %v2840_v58 = vpop.xlane.xlu1 %2839  ;;  %v2852_v47 = vpop.xlane.xlu0 %2851 }
 0xb98   :  { %v5853_v42 = vadd.f32 1.0, %v2852_v47  ;;  %v5857_v43 = vadd.f32 1.0, %v2840_v58  ;;  %v5860_v35 = vpop.eup %3657  ;;  %v2963_v58 = vmul.f32 %v5855_v13, %v2962_v46 }
 0xb99   :  { %v2915_v61 = vmul.f32 %v5860_v35, %v5849_v3  ;;  %vm2921_vm8 = vweird.f32 %v5860_v35 }
 0xb9a   :  { %3659 = vrsqrt.f32 %v5853_v42  ;;  %vm2930_vm11 = vweird.f32 %v5853_v42  ;;  %vm5936_vm10 = vmor %vm2920_vm13, %vm2921_vm8 }
 0xb9b   :  { %3661 = vrsqrt.f32 %v5857_v43  ;;  %v2916_v54 = vmul.f32 %v5860_v35, %v2915_v61 }
 0xb9d   :  { %v2917_v40 = vmul.f32 0.5, %v2916_v54 }
 0xb9f   :  { %v2843_v15 = vpop.xlane.xlu0 %2842  ;;  %v2855_v16 = vpop.xlane.xlu2 %2854  ;;  %v2918_v10 = vsub.f32 1.5, %v2917_v40 }
 0xba0   :  { %v5867_v30 = vadd.f32 1.0, %v2843_v15  ;;  %v5869_v63 = vadd.f32 1.0, %v2855_v16  ;;  %v5871_v36 = vpop.eup %3659 }
 0xba1   :  { %v2925_v23 = vmul.f32 %v5871_v36, %v5853_v42  ;;  %v5879_v39 = vpop.eup %3661  ;;  %vm2931_vm14 = vweird.f32 %v5871_v36  ;;  %v2919_v15 = vmul.f32 %v5860_v35, %v2918_v10 }
 0xba2   :  { %3663 = vrsqrt.f32 %v5867_v30  ;;  %v2885_v9 = vmul.f32 %v5879_v39, %v5857_v43  ;;  %vm5927_vm12 = vmor %vm2930_vm11, %vm2931_vm14  ;;  %vm2940_vm9 = vweird.f32 %v5869_v63  ;;  %vm2891_vm7 = vweird.f32 %v5879_v39 }
 0xba3   :  { %3665 = vrsqrt.f32 %v5869_v63  ;;  %v2926_v5 = vmul.f32 %v5871_v36, %v2925_v23  ;;  %vm2900_vm6 = vweird.f32 %v5867_v30  ;;  %vm2890_vm11 = vweird.f32 %v5857_v43 }
 0xba4   :  { %v2886_v41 = vmul.f32 %v5879_v39, %v2885_v9  ;;  %vm6000_vm13 = vmor %vm2890_vm11, %vm2891_vm7 }
 0xba5   :  { %v2927_v24 = vmul.f32 0.5, %v2926_v5 }
 0xba6   :  { %v2887_v16 = vmul.f32 0.5, %v2886_v41 }
 0xba7   :  { %v2834_v62 = vpop.xlane.xlu0 %2833  ;;  %v2846_v38 = vpop.xlane.xlu2 %2845  ;;  %v2928_v45 = vsub.f32 1.5, %v2927_v24 }
 0xba8   :  { %v5884_v29 = vpop.eup %3663  ;;  %v5886_v14 = vadd.f32 1.0, %v2834_v62  ;;  %v5888_v12 = vadd.f32 1.0, %v2846_v38  ;;  %v2888_v10 = vsub.f32 1.5, %v2887_v16 }
 0xba9   :  { %v3666_v19 = vpop.eup %3665  ;;  %v2895_v2 = vmul.f32 %v5884_v29, %v5867_v30  ;;  %v2929_v34 = vmul.f32 %v5871_v36, %v2928_v45  ;;  %v3721_v45 = vld [vmem:[%s6139_s0] sm:$0xff]  ;;  %vm2901_vm4 = vweird.f32 %v5884_v29 }
 0xbaa   :  { %v2935_v26 = vmul.f32 %v3666_v19, %v5869_v63  ;;  %3667 = vrsqrt.f32 %v5886_v14  ;;  %vm2941_vm5 = vweird.f32 %v3666_v19  ;;  %v2889_v44 = vmul.f32 %v5879_v39, %v2888_v10  ;;  %vm5984_vm8 = vmor %vm2900_vm6, %vm2901_vm4 }
 0xbab   :  { %v2896_v50 = vmul.f32 %v5884_v29, %v2895_v2  ;;  %3669 = vrsqrt.f32 %v5888_v12  ;;  %v2933_v63 = vsel %vm5927_vm12, %v5871_v36, %v2929_v34  ;;  %vm2942_vm15 = vmor %vm2940_vm9, %vm2941_vm5  ;;  %v2923_v36 = vsel %vm5936_vm10, %v5860_v35, %v2919_v15 }
 0xbac   :  { %v2936_v17 = vmul.f32 %v3666_v19, %v2935_v26  ;;  %vm2910_vm5 = vweird.f32 %v5888_v12  ;;  %vm2870_vm10 = vweird.f32 %v5886_v14 }
 0xbad   :  { %v2897_v47 = vmul.f32 0.5, %v2896_v50  ;;  %v3722_v50 = vld [vmem:[%s6139_s0 + $0x8] sm:$0xff] }
 0xbae   :  { %v2937_v61 = vmul.f32 0.5, %v2936_v17  ;;  %v2973_v17 = vmul.f32 %v2923_v36, %v2829_v20  ;;  %v3725_v36 = vld [vmem:[%s6147_s8] sm:$0xff] }
 0xbaf   :  { %v5914_v27 = vpop.permute.xlu1 %2011  ;;  %v2837_v23 = vpop.xlane.xlu2 %2836  ;;  %v2898_v62 = vsub.f32 1.5, %v2897_v47 }
 0xbb0   :  { %v5916_v54 = vpop.eup %3667  ;;  %v2938_v5 = vsub.f32 1.5, %v2937_v61  ;;  %v2019_v53 = vadd.f32 %v5914_v27, %v2005_v59  ;;  %v2020_v24 = vadd.f32 %v5914_v27, %v2006_v1  ;;  %v5920_v40 = vadd.f32 1.0, %v2837_v23 }
 0xbb1   :  { %v5922_v9 = vpop.eup %3669  ;;  %v2865_v38 = vmul.f32 %v5916_v54, %v5886_v14  ;;  %v2899_v55 = vmul.f32 %v5884_v29, %v2898_v62  ;;  %v5975_v1 = vsel %vm2966_vm3, %v5855_v13, %v2963_v58  ;;  %v2893_v23 = vsel %vm6000_vm13, %v5879_v39, %v2889_v44  ;;  %v6422_v44 = vld [vmem:[#allocation28_spill] sm:$0xff] }
 0xbb2   :  { %v2939_v2 = vmul.f32 %v3666_v19, %v2938_v5  ;;  %v2905_v3 = vmul.f32 %v5922_v9, %v5888_v12  ;;  %v2023_v26 = vadd.f32 %v3721_v45, %v2019_v53  ;;  %v2024_v0 = vadd.f32 %v3722_v50, %v2020_v24  ;;  %v3723_v12 = vld [vmem:[%s6139_s0 + $0x20] sm:$0xff] }
 0xbb3   :  { %v2866_v41 = vmul.f32 %v5916_v54, %v2865_v38  ;;  %3671 = vrsqrt.f32 %v5920_v40  ;;  %vm2911_vm14 = vweird.f32 %v5922_v9  ;;  %v2903_v20 = vsel %vm5984_vm8, %v5884_v29, %v2899_v55  ;;  %v3724_v29 = vld [vmem:[%s6139_s0 + $0x28] sm:$0xff] }
 0xbb4   :  { %v2943_v52 = vsel %vm2942_vm15, %v3666_v19, %v2939_v2  ;;  %v2906_v59 = vmul.f32 %v5922_v9, %v2905_v3  ;;  %2027 = vst [vmem:[%s6150_s11] sm:$0xff] %v2023_v26  ;;  %v2974_v19 = vmul.f32 %v2933_v63, %v2830_v25  ;;  %vm2912_vm12 = vmor %vm2910_vm5, %vm2911_vm14  ;;  %v2981_v61 = vmul.f32 %v2973_v17, %v5975_v1  ;;  %v6415_v2 = vld [vmem:[#allocation7_spill] sm:$0xff]  ;;  %v6424_v17 = vld [vmem:[#allocation30_spill] sm:$0xff] }
 0xbb5   :  { %v2975_v48 = vmul.f32 %v2943_v52, %v2831_v57  ;;  %2028 = vst [vmem:[%s6150_s11 + $0x8] sm:$0xff] %v2024_v0  ;;  %v2867_v35 = vmul.f32 0.5, %v2866_v41  ;;  %v2971_v53 = vmul.f32 %v2903_v20, %v2827_v18  ;;  %vm2871_vm9 = vweird.f32 %v5916_v54  ;;  %v6417_v55 = vld [vmem:[#allocation23_spill] sm:$0xff] }
 0xbb6   :  { %v2907_v31 = vmul.f32 0.5, %v2906_v59  ;;  %v2982_v33 = vmul.f32 %v2974_v19, %v5975_v1  ;;  %v2970_v39 = vmul.f32 %v2893_v23, %v2826_v11  ;;  %vm2872_vm0 = vmor %vm2870_vm10, %vm2871_vm9  ;;  %vm2880_vm3 = vweird.f32 %v5920_v40  ;;  %v6419_v19 = vld [vmem:[#allocation25_spill] sm:$0xff]  ;;  %v6428_v23 = vld [vmem:[#allocation36_spill] sm:$0xff] }
 0xbb7   :  { %v5979_v32 = vpop.permute.xlu2 %2016  ;;  %v2983_v57 = vmul.f32 %v2975_v48, %v5975_v1  ;;  %v2979_v22 = vmul.f32 %v2971_v53, %v5975_v1  ;;  %v2984_v3 = vmul.f32 %v5975_v1, %v5975_v1  ;;  %v6418_v48 = vld [vmem:[#allocation24_spill] sm:$0xff]  ;;  %v6429_v53 = vld [vmem:[#allocation37_spill] sm:$0xff] }
 0xbb8   :  { %v2908_v25 = vsub.f32 1.5, %v2907_v31  ;;  %v2021_v13 = vadd.f32 %v5979_v32, %v5903_v7  ;;  %v2022_v21 = vadd.f32 %v5979_v32, %v2008_v49  ;;  %v2868_v7 = vsub.f32 1.5, %v2867_v35  ;;  %v6420_v35 = vld [vmem:[#allocation26_spill] sm:$0xff]  ;;  %v3726_v31 = vld [vmem:[%s6147_s8 + $0x8] sm:$0xff] }
 0xbb9   :  { %v3672_v30 = vpop.eup %3671  ;;  %3009 = vmatpush.msra.mxu2 %v2983_v57  ;;  %v2988_v45 = vmul.f32 %v2984_v3, %v6416_v37  ;;  %v2987_v63 = vmul.f32 %v2984_v3, %v6415_v2  ;;  %v6423_v57 = vld [vmem:[#allocation29_spill] sm:$0xff] }
 0xbba   :  { %v2909_v49 = vmul.f32 %v5922_v9, %v2908_v25  ;;  %v2875_v43 = vmul.f32 %v3672_v30, %v5920_v40  ;;  %v2025_v47 = vadd.f32 %v3723_v12, %v2021_v13  ;;  %v2026_v34 = vadd.f32 %v3724_v29, %v2022_v21  ;;  %v6413_v40 = vld [vmem:[#allocation12_spill] sm:$0xff]  ;;  %v3728_v25 = vld [vmem:[%s6147_s8 + $0x18] sm:$0xff] }
 0xbbb   :  { %3010 = vmatpush.msra.mxu2 %v2982_v33  ;;  %v2869_v24 = vmul.f32 %v5916_v54, %v2868_v7  ;;  %vm2881_vm15 = vweird.f32 %v3672_v30  ;;  %v2985_v0 = vmul.f32 %v2984_v3, %v6413_v40 }
 0xbbc   :  { %v2876_v15 = vmul.f32 %v3672_v30, %v2875_v43  ;;  %2029 = vst [vmem:[%s6150_s11 + $0x20] sm:$0xff] %v2025_v47  ;;  %v2913_v16 = vsel %vm2912_vm12, %v5922_v9, %v2909_v49  ;;  %vm2882_vm4 = vmor %vm2880_vm3, %vm2881_vm15 }
 0xbbd   :  { %2030 = vst [vmem:[%s6150_s11 + $0x28] sm:$0xff] %v2026_v34  ;;  %3011 = vmatpush.msra.mxu2 %v2981_v61  ;;  %v2972_v5 = vmul.f32 %v2913_v16, %v2828_v6  ;;  %v2873_v18 = vsel %vm2872_vm0, %v5916_v54, %v2869_v24  ;;  %v2978_v6 = vmul.f32 %v2970_v39, %v5975_v1  ;;  %v6414_v54 = vld [vmem:[#allocation11_spill] sm:$0xff]  ;;  %v3729_v34 = vld [vmem:[%s6148_s9] sm:$0xff]  ;;  %v6425_v61 = vld [vmem:[#allocation32_spill] sm:$0xff] }
 0xbbe   :  { %v2877_v9 = vmul.f32 0.5, %v2876_v15  ;;  %v2968_v11 = vmul.f32 %v2873_v18, %v2824_v56  ;;  %v2986_v41 = vmul.f32 %v2984_v3, %v6414_v54  ;;  %v6426_v15 = vld [vmem:[#allocation34_spill] sm:$0xff]  ;;  %v6427_v16 = vld [vmem:[#allocation35_spill] sm:$0xff] }
 0xbbf   :  { %v2980_v42 = vmul.f32 %v2972_v5, %v5975_v1  ;;  %v3730_v5 = vld [vmem:[%s6148_s9 + $0x8] sm:$0xff]  ;;  %v6430_v24 = vld [vmem:[#allocation38_spill] sm:$0xff] }
 0xbc0   :  { %v2878_v62 = vsub.f32 1.5, %v2877_v9  ;;  %v2976_v46 = vmul.f32 %v2968_v11, %v5975_v1  ;;  %v6431_v9 = vld [vmem:[#allocation39_spill] sm:$0xff] }
 0xbc1   :  { %3012 = vmatpush.msra.mxu2 %v2980_v42  ;;  %v6432_v42 = vld [vmem:[#allocation40_spill] sm:$0xff] }
 0xbc2   :  { %v2879_v8 = vmul.f32 %v3672_v30, %v2878_v62 }
 0xbc3   :  { %3013 = vmatpush.msra.mxu2 %v2979_v22 }
 0xbc4   :  { %v2883_v38 = vsel %vm2882_vm4, %v3672_v30, %v2879_v8  ;;  %v6433_v8 = vld [vmem:[#allocation53_spill] sm:$0xff] }
 0xbc5   :  { %3014 = vmatpush.msra.mxu2 %v2978_v6  ;;  %v2969_v51 = vmul.f32 %v2883_v38, %v2825_v4  ;;  %v3731_v38 = vld [vmem:[%s6139_s0 + $0x18] sm:$0xff] }
 0xbc7   :  { %v2977_v14 = vmul.f32 %v2969_v51, %v5975_v1  ;;  %v6421_v1 = vld [vmem:[#allocation27_spill] sm:$0xff] }
 0xbc9   :  { %3015 = vmatpush.msra.mxu2 %v2977_v14  ;;  %v6434_v14 = vld [vmem:[#allocation33_spill] sm:$0xff] }
 0xbcb   :  { %3016 = vmatpush.msra.mxu2 %v2976_v46 }
 0xbcc   :  { %3352 = vmatmul.msk.f32.vlgmr.msra.gmra.mxu2 %vm796_vm2, %v6413_v40 }
 0xbd4   :  { %3353 = vmatmul.msk.f32.gmra.mxu2 %vm796_vm2, %v6414_v54 }
 0xbdc   :  { %3354 = vmatmul.msk.f32.gmra.mxu2 %vm796_vm2, %v6415_v2 }
 0xbe4   :  { %3355 = vmatmul.msk.f32.gmra.mxu2 %vm796_vm2, %v6416_v37 }
 0xc4f   :  { %v3018_v28 = vpop.f32.mrf.mxu2 }
 0xc50   :  { %v3019_v59 = vadd.f32 %v3018_v28, %v2985_v0 }
 0xc57   :  { %v3021_v56 = vpop.f32.mrf.mxu2 }
 0xc58   :  { %v3022_v52 = vadd.f32 %v3021_v56, %v2986_v41 }
 0xc5f   :  { %v3024_v4 = vpop.f32.mrf.mxu2 }
 0xc60   :  { %v3025_v50 = vadd.f32 %v3024_v4, %v2987_v63  ;;  %v3733_v4 = vld [vmem:[%s6139_s0 + $0x38] sm:$0xff]  ;;  %v3734_v63 = vld [vmem:[%s6139_s0 + $0x30] sm:$0xff] }
 0xc67   :  { %v3027_v26 = vpop.f32.mrf.mxu2 }
 0xc68   :  { %v3028_v10 = vadd.f32 %v3027_v26, %v2988_v45 }
 0xc6a   :  { %3042 = vmatpush.msrb.mxu2 %v3028_v10 }
 0xc6c   :  { %3043 = vmatpush.msrb.mxu2 %v3025_v50 }
 0xc6e   :  { %3044 = vmatpush.msrb.mxu2 %v3022_v52 }
 0xc70   :  { %3045 = vmatpush.msrb.mxu2 %v3019_v59 }
 0xc71   :  { %3356 = vmatmul.msk.f32.vlgmr.msrb.gmra.mxu2 %vm211_vm1, %v3725_v36 }
 0xc72   :  { %3104 = vmatpush.msra.mxu2 %v6417_v55 }
 0xc74   :  { %3105 = vmatpush.msra.mxu2 %v6418_v48 }
 0xc76   :  { %3106 = vmatpush.msra.mxu2 %v6419_v19 }
 0xc78   :  { %3107 = vmatpush.msra.mxu2 %v6420_v35 }
 0xc79   :  { %3357 = vmatmul.msk.f32.gmra.mxu2 %vm211_vm1, %v3726_v31 }
 0xc7a   :  { %3108 = vmatpush.msra.mxu2 %v6421_v1 }
 0xc7c   :  { %3109 = vmatpush.msra.mxu2 %v6422_v44 }
 0xc7e   :  { %3110 = vmatpush.msra.mxu2 %v6423_v57 }
 0xc80   :  { %3111 = vmatpush.msra.mxu2 %v6424_v17 }
 0xc81   :  { %3358 = vmatmul.msk.f32.gmra.mxu2 %vm211_vm1, %v3727_v60 }
 0xc89   :  { %3359 = vmatmul.msk.f32.gmra.mxu2 %vm211_vm1, %v3728_v25 }
 0xcf4   :  { %v3047_v13 = vpop.f32.mrf.mxu2 }
 0xcf5   :  { %v3059_v43 = vmax.f32 %v3047_v13, 0.0 }
 0xcf7   :  { %v3063_v29 = vadd.f32 %v3059_v43, %v6413_v40 }
 0xcfc   :  { %v3050_v21 = vpop.f32.mrf.mxu2 }
 0xcfd   :  { %v3060_v7 = vmax.f32 %v3050_v21, 0.0 }
 0xcff   :  { %v3064_v47 = vadd.f32 %v3060_v7, %v6414_v54 }
 0xd04   :  { %v3053_v30 = vpop.f32.mrf.mxu2 }
 0xd05   :  { %v3061_v20 = vmax.f32 %v3053_v30, 0.0 }
 0xd07   :  { %v3065_v12 = vadd.f32 %v3061_v20, %v6415_v2 }
 0xd0c   :  { %v3056_v33 = vpop.f32.mrf.mxu2 }
 0xd0d   :  { %v3062_v58 = vmax.f32 %v3056_v33, 0.0 }
 0xd0f   :  { %v3066_v49 = vadd.f32 %v3062_v58, %v6416_v37  ;;  %v3732_v37 = vld [vmem:[%s6139_s0 + $0x10] sm:$0xff] }
 0xd11   :  { %3079 = vmatpush.msra.mxu1 %v3066_v49 }
 0xd13   :  { %3080 = vmatpush.msra.mxu1 %v3065_v12 }
 0xd15   :  { %3081 = vmatpush.msra.mxu1 %v3064_v47 }
 0xd17   :  { %3082 = vmatpush.msra.mxu1 %v3063_v29 }
 0xd18   :  { %3360 = vmatmul.msk.f32.vlgmr.msra.gmra.mxu1 %vm211_vm1, %v3729_v34 }
 0xd19   :  { %3127 = vmatpush.msra.mxu1 %v6425_v61 }
 0xd1b   :  { %3128 = vmatpush.msra.mxu1 %v6426_v15 }
 0xd1d   :  { %3129 = vmatpush.msra.mxu1 %v6427_v16 }
 0xd1f   :  { %3130 = vmatpush.msra.mxu1 %v6428_v23 }
 0xd20   :  { %3361 = vmatmul.msk.f32.gmra.mxu1 %vm211_vm1, %v3730_v5 }
 0xd21   :  { %3131 = vmatpush.msra.mxu1 %v6429_v53 }
 0xd23   :  { %3132 = vmatpush.msra.mxu1 %v6430_v24 }
 0xd25   :  { %3133 = vmatpush.msra.mxu1 %v6431_v9 }
 0xd27   :  { %3134 = vmatpush.msra.mxu1 %v6432_v42 }
 0xd95   :  { %v3084_v39 = vpop.f32.mrf.mxu1 }
 0xd96   :  { %3362 = vmatmul.msk.f32.vlgmr.msra.gmra.mxu2 %vm796_vm2, %v3084_v39  ;;  %3364 = vmatmul.msk.f32.vlgmr.msra.gmra.mxu1 %vm796_vm2, %v3084_v39 }
 0xd9d   :  { %v3087_v62 = vpop.f32.mrf.mxu1 }
 0xd9e   :  { %3363 = vmatmul.msk.f32.gmra.mxu2 %vm796_vm2, %v3087_v62  ;;  %3365 = vmatmul.msk.f32.gmra.mxu1 %vm796_vm2, %v3087_v62 }
 0xe13   :  { %v3136_v22 = vpop.f32.mrf.mxu1 }
 0xe14   :  { %v3143_v18 = vmul.f32 %v6433_v8, %v3136_v22 }
 0xe16   :  { %v3147_v6 = vadd.f32 %v3143_v18, %v5914_v27 }
 0xe18   :  { %v3151_v51 = vadd.f32 %v3731_v38, %v3147_v6 }
 0xe19   :  { %v3113_v11 = vpop.f32.mrf.mxu2 }
 0xe1a   :  { %3155 = vst [vmem:[%s6150_s11 + $0x18] sm:$0xff] %v3151_v51  ;;  %v3142_v46 = vmul.f32 %v6434_v14, %v3113_v11 }
 0xe1b   :  { %v3139_v40 = vpop.f32.mrf.mxu1 }
 0xe1c   :  { %v3146_v54 = vadd.f32 %v3142_v46, %v5914_v27  ;;  %v3145_v2 = vmul.f32 %v6433_v8, %v3139_v40 }
 0xe1e   :  { %v3150_v28 = vadd.f32 %v3732_v37, %v3146_v54  ;;  %v3149_v56 = vadd.f32 %v3145_v2, %v5979_v32 }
 0xe20   :  { %3154 = vst [vmem:[%s6150_s11 + $0x10] sm:$0xff] %v3150_v28  ;;  %v3153_v3 = vadd.f32 %v3733_v4, %v3149_v56 }
 0xe21   :  { %v3116_v45 = vpop.f32.mrf.mxu2 }
 0xe22   :  { %3157 = vst [vmem:[%s6150_s11 + $0x38] sm:$0xff] %v3153_v3  ;;  %v3144_v27 = vmul.f32 %v6434_v14, %v3116_v45 }
 0xe24   :  { %v3148_v26 = vadd.f32 %v3144_v27, %v5979_v32 }
 0xe26   :  { %v3152_v10 = vadd.f32 %v3734_v63, %v3148_v26 }
 0xe28   :  { %3156 = vst [vmem:[%s6150_s11 + $0x30] sm:$0xff] %v3152_v10 }

</bundles_post_ra>
